<compile_context>
chip_gen: v6e
topology: v6e:2x2x1
jax: 0.10.0
libtpu: 0.0.40
codegen_flags: <defaults>
</compile_context>

<pallas_src>
import jax
import jax.numpy as jnp
from jax.experimental import pallas as pl
from jax.experimental.pallas import tpu as pltpu

_LANE = 128


def _round_up(c, m=_LANE):
    return ((c + m - 1) // m) * m


def _vmem_budget_bytes():
    # ~75% of per-core VMEM capacity, leaving headroom for Mosaic internal
    # scratch and pipeline double-buffering (≈96 MiB on v5e/v6e's 128 MiB,
    # ≈48 MiB on v7x's 64 MiB).  Conservative fallback if the query fails.
    try:
        cap = int(pltpu.get_tpu_info().vmem_capacity_bytes)
    except Exception:
        cap = 64 * 1024 * 1024
    return int(min(cap * 3 // 4, 100 * 1024 * 1024))


def _step_vmem_bytes(th, W, Cin, Cout, Pp, mm_bytes):
    x_band = 2 * th * W * Cin * 4            # double-buffered f32 input band
    o_band = 2 * th * W * Cout * 4           # double-buffered f32 output band
    halo = 2 * 2 * W * Cin * 4
    t1 = (th + 2) * (W + 2) * Pp * mm_bytes  # padded conv1 output scratch
    conv2_tmp = 3 * th * W * Pp * 4          # accumulator + dot result + headroom
    weights = 2 * (Cin * Pp + 9 * Pp * Pp + Pp * Cout) * mm_bytes + 6 * max(Pp, Cout) * 4
    return x_band + o_band + halo + t1 + conv2_tmp + weights


def _pick_tile_h(H, W, Cin, Cout, Pp, mm_bytes, budget, N):
    divisors = [d for d in range(1, H + 1) if H % d == 0]
    feasible = [d for d in divisors
                if _step_vmem_bytes(d, W, Cin, Cout, Pp, mm_bytes) <= budget]
    if not feasible:
        return 1
    best = max(feasible)
    # Prefer >=2 grid steps (keeps both v7x TensorCores busy) unless that would
    # shrink the conv2 matmul M dim (= tile_h * W) below the ~512 MXU-fill target
    # that a single big band could reach.
    multi = [d for d in feasible if N * (H // d) >= 2]
    if multi and (max(multi) * W >= 512 or max(multi) == best):
        return max(multi)
    return best


def _bottleneck_kernel(x_ref, halo_ref, w1_ref, s1_ref, b1_ref,
                       w2_ref, s2_ref, b2_ref, w3_ref, s3_ref, b3_ref,
                       o_ref, t1_ref):
    TH, W, Cin = x_ref.shape
    Pp = w1_ref.shape[1]
    Cout = w3_ref.shape[1]
    mm = w1_ref.dtype                 # MXU operand dtype (bf16 default, f32 exact path)
    f32 = jnp.float32

    r = pl.program_id(1)
    last_r = pl.num_programs(1) - 1

    # ---- conv1 (1x1) + bn1 + relu, written into the spatially padded scratch ----
    # Left/right zero-pad columns (corners included); cheap, rewritten each step.
    zero_col = jnp.zeros((TH + 2, 1, Pp), t1_ref.dtype)
    t1_ref[:, 0:1, :] = zero_col
    t1_ref[:, W + 1:W + 2, :] = zero_col

    xb = x_ref[...]                                   # (TH, W, Cin) f32; also the residual
    t_band = jnp.dot(xb.reshape(TH * W, Cin).astype(mm), w1_ref[...],
                     preferred_element_type=f32)
    t_band = jnp.maximum(t_band * s1_ref[...] + b1_ref[...], 0.0)
    t1_ref[1:TH + 1, 1:W + 1, :] = t_band.reshape(TH, W, Pp).astype(t1_ref.dtype)

    # Halo rows (row above / below the band).  Rows outside the image must be
    # zero *after* bn1/relu (relu(bias) != 0), so mask just these 2 rows in place.
    hb = halo_ref[...]                                # (2, W, Cin) f32
    t_halo = jnp.dot(hb.reshape(2 * W, Cin).astype(mm), w1_ref[...],
                     preferred_element_type=f32)
    t_halo = jnp.maximum(t_halo * s1_ref[...] + b1_ref[...], 0.0).reshape(2, W, Pp)
    top_valid = (r > 0).astype(f32)
    bot_valid = (r < last_r).astype(f32)
    t1_ref[0:1, 1:W + 1, :] = (t_halo[0:1] * top_valid).astype(t1_ref.dtype)
    t1_ref[TH + 1:TH + 2, 1:W + 1, :] = (t_halo[1:2] * bot_valid).astype(t1_ref.dtype)

    # ---- conv2 (3x3, stride 1, pad 1): 9 accumulating dots (K = Pp each) --------
    acc = None
    for kh in range(3):
        for kw in range(3):
            patch = t1_ref[kh:kh + TH, kw:kw + W, :].reshape(TH * W, Pp)
            d = jnp.dot(patch, w2_ref[kh * 3 + kw], preferred_element_type=f32)
            acc = d if acc is None else acc + d
    t2 = jnp.maximum(acc * s2_ref[...] + b2_ref[...], 0.0)       # (TH*W, Pp) f32

    # ---- conv3 (1x1) + bn3 + residual (downsample is None) + relu ---------------
    t3 = jnp.dot(t2.astype(mm), w3_ref[...], preferred_element_type=f32)
    t3 = t3 * s3_ref[...] + b3_ref[...]
    out = jnp.maximum(t3 + xb.reshape(TH * W, Cout), 0.0)
    o_ref[...] = out.reshape(TH, W, Cout).astype(o_ref.dtype)


def bottleneck_pallas_nhwc(x, params, *, compute_dtype=jnp.bfloat16, tile_h=None):
    """Fused Bottleneck forward on NHWC input (stride=1, downsample=None).

    x: (N, H, W, Cin) float32.  Returns (N, H, W, Cin) float32 (NHWC).
    """
    N, H, W, Cin = x.shape
    P = params["w1"].shape[0]            # planes
    Cout = params["w3"].shape[0]         # planes * expansion
    if Cout != Cin:
        raise ValueError("downsample=None requires inplanes == planes * expansion")
    eps = 1e-5
    f32 = jnp.float32
    cd = compute_dtype
    mm_bytes = jnp.dtype(cd).itemsize
    Pp = _round_up(P)                    # only the internal "planes" dim is lane-padded

    budget = _vmem_budget_bytes()
    if tile_h is None:
        tile_h = _pick_tile_h(H, W, Cin, Cout, Pp, mm_bytes, budget, N)
    assert H % tile_h == 0
    R = H // tile_h

    x = x.astype(f32)
    # TODO(synk): optionally stream x / out as bf16 on v5e to halve HBM traffic.

    # Small halo side array: rows r*TH-1 (top) and (r+1)*TH (bottom) per band,
    # zero where they fall outside the image.  Shape (N, R, 2, W, Cin).
    zrow = jnp.zeros((N, 1, W, Cin), f32)
    top = jnp.concatenate([zrow, x[:, tile_h - 1::tile_h][:, :R - 1]], axis=1)
    bot = jnp.concatenate([x[:, tile_h::tile_h], zrow], axis=1)
    halo = jnp.stack([top, bot], axis=2)

    # Conv weights -> matmul layouts (pad only the planes dim; tap = kh*3 + kw).
    w1 = params["w1"][:, :, 0, 0].T                                   # (Cin, P)
    w1 = jnp.pad(w1, ((0, 0), (0, Pp - P))).astype(cd)
    w2 = jnp.transpose(params["w2"], (2, 3, 1, 0))                    # (3, 3, in, out)
    w2 = jnp.pad(w2, ((0, 0), (0, 0), (0, Pp - P), (0, Pp - P)))
    w2 = w2.reshape(9, Pp, Pp).astype(cd)
    w3 = params["w3"][:, :, 0, 0].T                                   # (P, Cout)
    w3 = jnp.pad(w3, ((0, Pp - P), (0, 0))).astype(cd)

    def fold_bn(stats, cpad):
        g, b, m, v = stats
        s = g / jnp.sqrt(v + eps)
        bb = b - m * s
        s = jnp.pad(s, (0, cpad - s.shape[0])).reshape(1, -1).astype(f32)
        bb = jnp.pad(bb, (0, cpad - bb.shape[0])).reshape(1, -1).astype(f32)
        return s, bb

    s1, b1 = fold_bn(params["bn1"], Pp)
    s2, b2 = fold_bn(params["bn2"], Pp)
    s3, b3 = fold_bn(params["bn3"], Cout)

    const = lambda *shape: pl.BlockSpec(shape, lambda n, r: (0,) * len(shape))

    out = pl.pallas_call(
        _bottleneck_kernel,
        out_shape=jax.ShapeDtypeStruct((N, H, W, Cout), f32),
        grid=(N, R),
        in_specs=[
            pl.BlockSpec((None, tile_h, W, Cin), lambda n, r: (n, r, 0, 0)),       # x band
            pl.BlockSpec((None, None, 2, W, Cin), lambda n, r: (n, r, 0, 0, 0)),   # halo rows
            const(Cin, Pp), const(1, Pp), const(1, Pp),                            # conv1 / bn1
            # TODO(synk): mark constant weight specs pipeline_mode=pl.Buffered(1)
            # (block index never changes) to halve their VMEM on v7x once safe.
            const(9, Pp, Pp), const(1, Pp), const(1, Pp),                          # conv2 / bn2
            const(Pp, Cout), const(1, Cout), const(1, Cout),                       # conv3 / bn3
        ],
        out_specs=pl.BlockSpec((None, tile_h, W, Cout), lambda n, r: (n, r, 0, 0)),
        scratch_shapes=[pltpu.VMEM((tile_h + 2, W + 2, Pp), cd)],
        compiler_params=pltpu.CompilerParams(
            dimension_semantics=("parallel", "parallel"),
            vmem_limit_bytes=budget),
    )(x, halo, w1, s1, b1, w2, s2, b2, w3, s3, b3)
    return out


def bottleneck_pallas(x_nchw, params, *, compute_dtype=jnp.bfloat16, tile_h=None):
    """NCHW compatibility wrapper (adds one transpose each way; prefer the NHWC path)."""
    x = jnp.transpose(x_nchw, (0, 2, 3, 1))
    out = bottleneck_pallas_nhwc(x, params, compute_dtype=compute_dtype, tile_h=tile_h)
    return jnp.transpose(out, (0, 3, 1, 2))


def bottleneck_ref(x, params):
    """Pure-JAX reference matching the PyTorch module (eval-mode BN), NCHW."""
    eps = 1e-5

    def conv(x, w, padding=0):
        return jax.lax.conv_general_dilated(
            x, w, (1, 1), [(padding, padding)] * 2,
            dimension_numbers=("NCHW", "OIHW", "NCHW"))

    def bn(x, stats):
        g, b, m, v = stats
        s = g / jnp.sqrt(v + eps)
        return x * s[None, :, None, None] + (b - m * s)[None, :, None, None]

    out = jax.nn.relu(bn(conv(x, params["w1"]), params["bn1"]))
    out = jax.nn.relu(bn(conv(out, params["w2"], padding=1), params["bn2"]))
    out = bn(conv(out, params["w3"]), params["bn3"])
    return jax.nn.relu(out + x)


def make_params(key, inplanes, planes):
    expansion = 4
    ks = jax.random.split(key, 12)
    f32 = jnp.float32

    def bn_stats(k, c):
        k0, k1, k2, k3 = jax.random.split(k, 4)
        gamma = 1.0 + 0.1 * jax.random.normal(k0, (c,), f32)
        beta = 0.1 * jax.random.normal(k1, (c,), f32)
        mean = 0.1 * jax.random.normal(k2, (c,), f32)
        var = jax.random.uniform(k3, (c,), f32, 0.5, 1.5)
        return (gamma, beta, mean, var)

    return {
        "w1": 0.2 * jax.random.normal(ks[0], (planes, inplanes, 1, 1), f32),
        "bn1": bn_stats(ks[1], planes),
        "w2": 0.2 * jax.random.normal(ks[2], (planes, planes, 3, 3), f32),
        "bn2": bn_stats(ks[3], planes),
        "w3": 0.2 * jax.random.normal(ks[4], (planes * expansion, planes, 1, 1), f32),
        "bn3": bn_stats(ks[5], planes * expansion),
    }


if __name__ == "__main__":
    # inplanes must equal planes * expansion when downsample is None.
    # NOTE: this 16-channel config is a correctness toy; don't tune/benchmark on it
    # (real ResNet stages have planes >= 64, so the P_p padding cost is small/zero).
    N, inplanes, planes, H, W = 2, 16, 4, 16, 16

    key = jax.random.PRNGKey(0)
    kx, kp = jax.random.split(key)
    x_nchw = jax.random.normal(kx, (N, inplanes, H, W), jnp.float32)
    params = make_params(kp, inplanes, planes)

    ref_nchw = bottleneck_ref(x_nchw, params)
    ref_nhwc = jnp.transpose(ref_nchw, (0, 2, 3, 1))
    x_nhwc = jnp.transpose(x_nchw, (0, 2, 3, 1))

    # Exact-semantics path (f32 MXU operands), NHWC native.
    out_f32 = jax.block_until_ready(
        bottleneck_pallas_nhwc(x_nhwc, params, compute_dtype=jnp.float32))
    assert out_f32.shape == ref_nhwc.shape == (N, H, W, inplanes)
    err = float(jnp.max(jnp.abs(out_f32 - ref_nhwc)))
    assert jnp.allclose(out_f32, ref_nhwc, atol=1e-4, rtol=1e-4), err

    # Default fast path: bf16 MXU operands, f32 accumulation / BN / residual.
    out_bf16 = jax.block_until_ready(bottleneck_pallas_nhwc(x_nhwc, params))
    err_bf16 = float(jnp.max(jnp.abs(out_bf16 - ref_nhwc)))
    assert err_bf16 < 0.15, err_bf16

    # NCHW compatibility wrapper (matches the PyTorch module's layout).
    out_nchw = jax.block_until_ready(
        bottleneck_pallas(x_nchw, params, compute_dtype=jnp.float32))
    assert jnp.allclose(out_nchw, ref_nchw, atol=1e-4, rtol=1e-4)

    print("KERNEL_OK")
</pallas_src>

<mosaic_0001>
module attributes {stable_mosaic.version = 11 : i64} {
  func.func @_bottleneck_kernel(%arg0: i32, %arg1: i32, %arg2: memref<1x16x16x16xf32, #tpu.memory_space<vmem>>, %arg3: memref<1x1x2x16x16xf32, #tpu.memory_space<vmem>>, %arg4: memref<16x128xf32, #tpu.memory_space<vmem>>, %arg5: memref<1x128xf32, #tpu.memory_space<vmem>>, %arg6: memref<1x128xf32, #tpu.memory_space<vmem>>, %arg7: memref<9x128x128xf32, #tpu.memory_space<vmem>>, %arg8: memref<1x128xf32, #tpu.memory_space<vmem>>, %arg9: memref<1x128xf32, #tpu.memory_space<vmem>>, %arg10: memref<128x16xf32, #tpu.memory_space<vmem>>, %arg11: memref<1x16xf32, #tpu.memory_space<vmem>>, %arg12: memref<1x16xf32, #tpu.memory_space<vmem>>, %arg13: memref<1x16x16x16xf32, #tpu.memory_space<vmem>>, %arg14: memref<18x18x128xf32, #tpu.memory_space<vmem>>) attributes {dimension_semantics = [#tpu.dimension_semantics<parallel>, #tpu.dimension_semantics<parallel>], iteration_bounds = array<i64: 2, 1>, scalar_prefetch = 0 : i64, scratch_operands = 1 : i64, tpu.core_type = #tpu.core_type<tc>, window_params = [{transform_indices = @transform_0, window_bounds = array<i64: 1, 16, 16, 16>}, {transform_indices = @transform_1, window_bounds = array<i64: 1, 1, 2, 16, 16>}, {pipeline_mode = #tpu.pipeline_mode<synchronous>, transform_indices = @transform_2, window_bounds = array<i64: 16, 128>}, {pipeline_mode = #tpu.pipeline_mode<synchronous>, transform_indices = @transform_3, window_bounds = array<i64: 1, 128>}, {pipeline_mode = #tpu.pipeline_mode<synchronous>, transform_indices = @transform_4, window_bounds = array<i64: 1, 128>}, {pipeline_mode = #tpu.pipeline_mode<synchronous>, transform_indices = @transform_5, window_bounds = array<i64: 9, 128, 128>}, {pipeline_mode = #tpu.pipeline_mode<synchronous>, transform_indices = @transform_6, window_bounds = array<i64: 1, 128>}, {pipeline_mode = #tpu.pipeline_mode<synchronous>, transform_indices = @transform_7, window_bounds = array<i64: 1, 128>}, {pipeline_mode = #tpu.pipeline_mode<synchronous>, transform_indices = @transform_8, window_bounds = array<i64: 128, 16>}, {pipeline_mode = #tpu.pipeline_mode<synchronous>, transform_indices = @transform_9, window_bounds = array<i64: 1, 16>}, {pipeline_mode = #tpu.pipeline_mode<synchronous>, transform_indices = @transform_10, window_bounds = array<i64: 1, 16>}, {transform_indices = @transform_11, window_bounds = array<i64: 1, 16, 16, 16>}]} {
    %cst = arith.constant 0.000000e+00 : f32
    %0 = vector.broadcast %cst : f32 to vector<18x1x128xf32>
    %c0 = arith.constant 0 : index
    %c0_0 = arith.constant 0 : index
    %c0_1 = arith.constant 0 : index
    %1 = vector.load %arg14[%c0, %c0_0, %c0_1] : memref<18x18x128xf32, #tpu.memory_space<vmem>>, vector<18x1x128xf32>
    tpu.vector_store %arg14[%c0, %c0_0, %c0_1], %0 {strides = array<i32>} : memref<18x18x128xf32, #tpu.memory_space<vmem>>, vector<18x1x128xf32>,
    %c0_2 = arith.constant 0 : index
    %c17 = arith.constant 17 : index
    %c0_3 = arith.constant 0 : index
    %2 = vector.load %arg14[%c0_2, %c17, %c0_3] : memref<18x18x128xf32, #tpu.memory_space<vmem>>, vector<18x1x128xf32>
    tpu.vector_store %arg14[%c0_2, %c17, %c0_3], %0 {strides = array<i32>} : memref<18x18x128xf32, #tpu.memory_space<vmem>>, vector<18x1x128xf32>,
    %c0_4 = arith.constant 0 : index
    %c0_5 = arith.constant 0 : index
    %c0_6 = arith.constant 0 : index
    %c0_7 = arith.constant 0 : index
    %3 = vector.load %arg2[%c0_4, %c0_5, %c0_6, %c0_7] : memref<1x16x16x16xf32, #tpu.memory_space<vmem>>, vector<1x16x16x16xf32>
    %4 = vector.shape_cast %3 : vector<1x16x16x16xf32> to vector<16x16x16xf32>
    %5 = vector.shape_cast %4 : vector<16x16x16xf32> to vector<256x16xf32>
    %c0_8 = arith.constant 0 : index
    %c0_9 = arith.constant 0 : index
    %6 = vector.load %arg4[%c0_8, %c0_9] : memref<16x128xf32, #tpu.memory_space<vmem>>, vector<16x128xf32>
    %cst_10 = arith.constant dense<0.000000e+00> : vector<256x128xf32>
    %7 = tpu.matmul %5, %6, %cst_10 {dimension_numbers = #tpu.dot_dimension_numbers<[1], [0], [0], [1], [0, 0, 1, 1], [], []>} : vector<256x16xf32>, vector<16x128xf32>, vector<256x128xf32> -> vector<256x128xf32>
    %c0_11 = arith.constant 0 : index
    %c0_12 = arith.constant 0 : index
    %8 = vector.load %arg5[%c0_11, %c0_12] : memref<1x128xf32, #tpu.memory_space<vmem>>, vector<1x128xf32>
    %9 = vector.broadcast %8 : vector<1x128xf32> to vector<256x128xf32>
    %10 = arith.mulf %7, %9 : vector<256x128xf32>
    %c0_13 = arith.constant 0 : index
    %c0_14 = arith.constant 0 : index
    %11 = vector.load %arg6[%c0_13, %c0_14] : memref<1x128xf32, #tpu.memory_space<vmem>>, vector<1x128xf32>
    %12 = vector.broadcast %11 : vector<1x128xf32> to vector<256x128xf32>
    %13 = arith.addf %10, %12 : vector<256x128xf32>
    %cst_15 = arith.constant 0.000000e+00 : f32
    %14 = vector.broadcast %cst_15 : f32 to vector<256x128xf32>
    %15 = arith.maximumf %13, %14 : vector<256x128xf32>
    %16 = vector.shape_cast %15 : vector<256x128xf32> to vector<16x16x128xf32>
    %c1 = arith.constant 1 : index
    %c1_16 = arith.constant 1 : index
    %c0_17 = arith.constant 0 : index
    %17 = vector.load %arg14[%c1, %c1_16, %c0_17] : memref<18x18x128xf32, #tpu.memory_space<vmem>>, vector<16x16x128xf32>
    tpu.vector_store %arg14[%c1, %c1_16, %c0_17], %16 {strides = array<i32>} : memref<18x18x128xf32, #tpu.memory_space<vmem>>, vector<16x16x128xf32>,
    %c0_18 = arith.constant 0 : index
    %c0_19 = arith.constant 0 : index
    %c0_20 = arith.constant 0 : index
    %c0_21 = arith.constant 0 : index
    %c0_22 = arith.constant 0 : index
    %18 = vector.load %arg3[%c0_18, %c0_19, %c0_20, %c0_21, %c0_22] : memref<1x1x2x16x16xf32, #tpu.memory_space<vmem>>, vector<1x1x2x16x16xf32>
    %19 = vector.shape_cast %18 : vector<1x1x2x16x16xf32> to vector<2x16x16xf32>
    %20 = vector.shape_cast %19 : vector<2x16x16xf32> to vector<32x16xf32>
    %c0_23 = arith.constant 0 : index
    %c0_24 = arith.constant 0 : index
    %21 = vector.load %arg4[%c0_23, %c0_24] : memref<16x128xf32, #tpu.memory_space<vmem>>, vector<16x128xf32>
    %cst_25 = arith.constant dense<0.000000e+00> : vector<32x128xf32>
    %22 = tpu.matmul %20, %21, %cst_25 {dimension_numbers = #tpu.dot_dimension_numbers<[1], [0], [0], [1], [0, 0, 1, 1], [], []>} : vector<32x16xf32>, vector<16x128xf32>, vector<32x128xf32> -> vector<32x128xf32>
    %c0_26 = arith.constant 0 : index
    %c0_27 = arith.constant 0 : index
    %23 = vector.load %arg5[%c0_26, %c0_27] : memref<1x128xf32, #tpu.memory_space<vmem>>, vector<1x128xf32>
    %24 = vector.broadcast %23 : vector<1x128xf32> to vector<32x128xf32>
    %25 = arith.mulf %22, %24 : vector<32x128xf32>
    %c0_28 = arith.constant 0 : index
    %c0_29 = arith.constant 0 : index
    %26 = vector.load %arg6[%c0_28, %c0_29] : memref<1x128xf32, #tpu.memory_space<vmem>>, vector<1x128xf32>
    %27 = vector.broadcast %26 : vector<1x128xf32> to vector<32x128xf32>
    %28 = arith.addf %25, %27 : vector<32x128xf32>
    %cst_30 = arith.constant 0.000000e+00 : f32
    %29 = vector.broadcast %cst_30 : f32 to vector<32x128xf32>
    %30 = arith.maximumf %28, %29 : vector<32x128xf32>
    %31 = vector.shape_cast %30 : vector<32x128xf32> to vector<2x16x128xf32>
    %c0_i32 = arith.constant 0 : i32
    %32 = arith.cmpi sgt, %arg1, %c0_i32 : i32
    %33 = arith.extui %32 : i1 to i32
    %34 = arith.sitofp %33 : i32 to f32
    %c0_i32_31 = arith.constant 0 : i32
    %35 = arith.cmpi slt, %arg1, %c0_i32_31 : i32
    %36 = arith.extui %35 : i1 to i32
    %37 = arith.sitofp %36 : i32 to f32
    %38 = vector.extract_strided_slice %31 {offsets = [0, 0, 0], sizes = [1, 16, 128], strides = [1, 1, 1]} : vector<2x16x128xf32> to vector<1x16x128xf32>
    %39 = vector.broadcast %34 : f32 to vector<1x16x128xf32>
    %40 = arith.mulf %38, %39 : vector<1x16x128xf32>
    %c0_32 = arith.constant 0 : index
    %c1_33 = arith.constant 1 : index
    %c0_34 = arith.constant 0 : index
    %41 = vector.load %arg14[%c0_32, %c1_33, %c0_34] : memref<18x18x128xf32, #tpu.memory_space<vmem>>, vector<1x16x128xf32>
    tpu.vector_store %arg14[%c0_32, %c1_33, %c0_34], %40 {strides = array<i32>} : memref<18x18x128xf32, #tpu.memory_space<vmem>>, vector<1x16x128xf32>,
    %42 = vector.extract_strided_slice %31 {offsets = [1, 0, 0], sizes = [1, 16, 128], strides = [1, 1, 1]} : vector<2x16x128xf32> to vector<1x16x128xf32>
    %43 = vector.broadcast %37 : f32 to vector<1x16x128xf32>
    %44 = arith.mulf %42, %43 : vector<1x16x128xf32>
    %c17_35 = arith.constant 17 : index
    %c1_36 = arith.constant 1 : index
    %c0_37 = arith.constant 0 : index
    %45 = vector.load %arg14[%c17_35, %c1_36, %c0_37] : memref<18x18x128xf32, #tpu.memory_space<vmem>>, vector<1x16x128xf32>
    tpu.vector_store %arg14[%c17_35, %c1_36, %c0_37], %44 {strides = array<i32>} : memref<18x18x128xf32, #tpu.memory_space<vmem>>, vector<1x16x128xf32>,
    %c0_38 = arith.constant 0 : index
    %c0_39 = arith.constant 0 : index
    %c0_40 = arith.constant 0 : index
    %46 = vector.load %arg14[%c0_38, %c0_39, %c0_40] : memref<18x18x128xf32, #tpu.memory_space<vmem>>, vector<16x16x128xf32>
    %47 = vector.shape_cast %46 : vector<16x16x128xf32> to vector<256x128xf32>
    %c0_41 = arith.constant 0 : index
    %c0_42 = arith.constant 0 : index
    %c0_43 = arith.constant 0 : index
    %48 = vector.load %arg7[%c0_41, %c0_42, %c0_43] : memref<9x128x128xf32, #tpu.memory_space<vmem>>, vector<1x128x128xf32>
    %49 = vector.shape_cast %48 : vector<1x128x128xf32> to vector<128x128xf32>
    %cst_44 = arith.constant dense<0.000000e+00> : vector<256x128xf32>
    %50 = tpu.matmul %47, %49, %cst_44 {dimension_numbers = #tpu.dot_dimension_numbers<[1], [0], [0], [1], [0, 0, 1, 1], [], []>} : vector<256x128xf32>, vector<128x128xf32>, vector<256x128xf32> -> vector<256x128xf32>
    %c0_45 = arith.constant 0 : index
    %c1_46 = arith.constant 1 : index
    %c0_47 = arith.constant 0 : index
    %51 = vector.load %arg14[%c0_45, %c1_46, %c0_47] : memref<18x18x128xf32, #tpu.memory_space<vmem>>, vector<16x16x128xf32>
    %52 = vector.shape_cast %51 : vector<16x16x128xf32> to vector<256x128xf32>
    %c1_48 = arith.constant 1 : index
    %c0_49 = arith.constant 0 : index
    %c0_50 = arith.constant 0 : index
    %53 = vector.load %arg7[%c1_48, %c0_49, %c0_50] : memref<9x128x128xf32, #tpu.memory_space<vmem>>, vector<1x128x128xf32>
    %54 = vector.shape_cast %53 : vector<1x128x128xf32> to vector<128x128xf32>
    %cst_51 = arith.constant dense<0.000000e+00> : vector<256x128xf32>
    %55 = tpu.matmul %52, %54, %cst_51 {dimension_numbers = #tpu.dot_dimension_numbers<[1], [0], [0], [1], [0, 0, 1, 1], [], []>} : vector<256x128xf32>, vector<128x128xf32>, vector<256x128xf32> -> vector<256x128xf32>
    %56 = arith.addf %50, %55 : vector<256x128xf32>
    %c0_52 = arith.constant 0 : index
    %c2 = arith.constant 2 : index
    %c0_53 = arith.constant 0 : index
    %57 = vector.load %arg14[%c0_52, %c2, %c0_53] : memref<18x18x128xf32, #tpu.memory_space<vmem>>, vector<16x16x128xf32>
    %58 = vector.shape_cast %57 : vector<16x16x128xf32> to vector<256x128xf32>
    %c2_54 = arith.constant 2 : index
    %c0_55 = arith.constant 0 : index
    %c0_56 = arith.constant 0 : index
    %59 = vector.load %arg7[%c2_54, %c0_55, %c0_56] : memref<9x128x128xf32, #tpu.memory_space<vmem>>, vector<1x128x128xf32>
    %60 = vector.shape_cast %59 : vector<1x128x128xf32> to vector<128x128xf32>
    %cst_57 = arith.constant dense<0.000000e+00> : vector<256x128xf32>
    %61 = tpu.matmul %58, %60, %cst_57 {dimension_numbers = #tpu.dot_dimension_numbers<[1], [0], [0], [1], [0, 0, 1, 1], [], []>} : vector<256x128xf32>, vector<128x128xf32>, vector<256x128xf32> -> vector<256x128xf32>
    %62 = arith.addf %56, %61 : vector<256x128xf32>
    %c1_58 = arith.constant 1 : index
    %c0_59 = arith.constant 0 : index
    %c0_60 = arith.constant 0 : index
    %63 = vector.load %arg14[%c1_58, %c0_59, %c0_60] : memref<18x18x128xf32, #tpu.memory_space<vmem>>, vector<16x16x128xf32>
    %64 = vector.shape_cast %63 : vector<16x16x128xf32> to vector<256x128xf32>
    %c3 = arith.constant 3 : index
    %c0_61 = arith.constant 0 : index
    %c0_62 = arith.constant 0 : index
    %65 = vector.load %arg7[%c3, %c0_61, %c0_62] : memref<9x128x128xf32, #tpu.memory_space<vmem>>, vector<1x128x128xf32>
    %66 = vector.shape_cast %65 : vector<1x128x128xf32> to vector<128x128xf32>
    %cst_63 = arith.constant dense<0.000000e+00> : vector<256x128xf32>
    %67 = tpu.matmul %64, %66, %cst_63 {dimension_numbers = #tpu.dot_dimension_numbers<[1], [0], [0], [1], [0, 0, 1, 1], [], []>} : vector<256x128xf32>, vector<128x128xf32>, vector<256x128xf32> -> vector<256x128xf32>
    %68 = arith.addf %62, %67 : vector<256x128xf32>
    %c1_64 = arith.constant 1 : index
    %c1_65 = arith.constant 1 : index
    %c0_66 = arith.constant 0 : index
    %69 = vector.load %arg14[%c1_64, %c1_65, %c0_66] : memref<18x18x128xf32, #tpu.memory_space<vmem>>, vector<16x16x128xf32>
    %70 = vector.shape_cast %69 : vector<16x16x128xf32> to vector<256x128xf32>
    %c4 = arith.constant 4 : index
    %c0_67 = arith.constant 0 : index
    %c0_68 = arith.constant 0 : index
    %71 = vector.load %arg7[%c4, %c0_67, %c0_68] : memref<9x128x128xf32, #tpu.memory_space<vmem>>, vector<1x128x128xf32>
    %72 = vector.shape_cast %71 : vector<1x128x128xf32> to vector<128x128xf32>
    %cst_69 = arith.constant dense<0.000000e+00> : vector<256x128xf32>
    %73 = tpu.matmul %70, %72, %cst_69 {dimension_numbers = #tpu.dot_dimension_numbers<[1], [0], [0], [1], [0, 0, 1, 1], [], []>} : vector<256x128xf32>, vector<128x128xf32>, vector<256x128xf32> -> vector<256x128xf32>
    %74 = arith.addf %68, %73 : vector<256x128xf32>
    %c1_70 = arith.constant 1 : index
    %c2_71 = arith.constant 2 : index
    %c0_72 = arith.constant 0 : index
    %75 = vector.load %arg14[%c1_70, %c2_71, %c0_72] : memref<18x18x128xf32, #tpu.memory_space<vmem>>, vector<16x16x128xf32>
    %76 = vector.shape_cast %75 : vector<16x16x128xf32> to vector<256x128xf32>
    %c5 = arith.constant 5 : index
    %c0_73 = arith.constant 0 : index
    %c0_74 = arith.constant 0 : index
    %77 = vector.load %arg7[%c5, %c0_73, %c0_74] : memref<9x128x128xf32, #tpu.memory_space<vmem>>, vector<1x128x128xf32>
    %78 = vector.shape_cast %77 : vector<1x128x128xf32> to vector<128x128xf32>
    %cst_75 = arith.constant dense<0.000000e+00> : vector<256x128xf32>
    %79 = tpu.matmul %76, %78, %cst_75 {dimension_numbers = #tpu.dot_dimension_numbers<[1], [0], [0], [1], [0, 0, 1, 1], [], []>} : vector<256x128xf32>, vector<128x128xf32>, vector<256x128xf32> -> vector<256x128xf32>
    %80 = arith.addf %74, %79 : vector<256x128xf32>
    %c2_76 = arith.constant 2 : index
    %c0_77 = arith.constant 0 : index
    %c0_78 = arith.constant 0 : index
    %81 = vector.load %arg14[%c2_76, %c0_77, %c0_78] : memref<18x18x128xf32, #tpu.memory_space<vmem>>, vector<16x16x128xf32>
    %82 = vector.shape_cast %81 : vector<16x16x128xf32> to vector<256x128xf32>
    %c6 = arith.constant 6 : index
    %c0_79 = arith.constant 0 : index
    %c0_80 = arith.constant 0 : index
    %83 = vector.load %arg7[%c6, %c0_79, %c0_80] : memref<9x128x128xf32, #tpu.memory_space<vmem>>, vector<1x128x128xf32>
    %84 = vector.shape_cast %83 : vector<1x128x128xf32> to vector<128x128xf32>
    %cst_81 = arith.constant dense<0.000000e+00> : vector<256x128xf32>
    %85 = tpu.matmul %82, %84, %cst_81 {dimension_numbers = #tpu.dot_dimension_numbers<[1], [0], [0], [1], [0, 0, 1, 1], [], []>} : vector<256x128xf32>, vector<128x128xf32>, vector<256x128xf32> -> vector<256x128xf32>
    %86 = arith.addf %80, %85 : vector<256x128xf32>
    %c2_82 = arith.constant 2 : index
    %c1_83 = arith.constant 1 : index
    %c0_84 = arith.constant 0 : index
    %87 = vector.load %arg14[%c2_82, %c1_83, %c0_84] : memref<18x18x128xf32, #tpu.memory_space<vmem>>, vector<16x16x128xf32>
    %88 = vector.shape_cast %87 : vector<16x16x128xf32> to vector<256x128xf32>
    %c7 = arith.constant 7 : index
    %c0_85 = arith.constant 0 : index
    %c0_86 = arith.constant 0 : index
    %89 = vector.load %arg7[%c7, %c0_85, %c0_86] : memref<9x128x128xf32, #tpu.memory_space<vmem>>, vector<1x128x128xf32>
    %90 = vector.shape_cast %89 : vector<1x128x128xf32> to vector<128x128xf32>
    %cst_87 = arith.constant dense<0.000000e+00> : vector<256x128xf32>
    %91 = tpu.matmul %88, %90, %cst_87 {dimension_numbers = #tpu.dot_dimension_numbers<[1], [0], [0], [1], [0, 0, 1, 1], [], []>} : vector<256x128xf32>, vector<128x128xf32>, vector<256x128xf32> -> vector<256x128xf32>
    %92 = arith.addf %86, %91 : vector<256x128xf32>
    %c2_88 = arith.constant 2 : index
    %c2_89 = arith.constant 2 : index
    %c0_90 = arith.constant 0 : index
    %93 = vector.load %arg14[%c2_88, %c2_89, %c0_90] : memref<18x18x128xf32, #tpu.memory_space<vmem>>, vector<16x16x128xf32>
    %94 = vector.shape_cast %93 : vector<16x16x128xf32> to vector<256x128xf32>
    %c8 = arith.constant 8 : index
    %c0_91 = arith.constant 0 : index
    %c0_92 = arith.constant 0 : index
    %95 = vector.load %arg7[%c8, %c0_91, %c0_92] : memref<9x128x128xf32, #tpu.memory_space<vmem>>, vector<1x128x128xf32>
    %96 = vector.shape_cast %95 : vector<1x128x128xf32> to vector<128x128xf32>
    %cst_93 = arith.constant dense<0.000000e+00> : vector<256x128xf32>
    %97 = tpu.matmul %94, %96, %cst_93 {dimension_numbers = #tpu.dot_dimension_numbers<[1], [0], [0], [1], [0, 0, 1, 1], [], []>} : vector<256x128xf32>, vector<128x128xf32>, vector<256x128xf32> -> vector<256x128xf32>
    %98 = arith.addf %92, %97 : vector<256x128xf32>
    %c0_94 = arith.constant 0 : index
    %c0_95 = arith.constant 0 : index
    %99 = vector.load %arg8[%c0_94, %c0_95] : memref<1x128xf32, #tpu.memory_space<vmem>>, vector<1x128xf32>
    %100 = vector.broadcast %99 : vector<1x128xf32> to vector<256x128xf32>
    %101 = arith.mulf %98, %100 : vector<256x128xf32>
    %c0_96 = arith.constant 0 : index
    %c0_97 = arith.constant 0 : index
    %102 = vector.load %arg9[%c0_96, %c0_97] : memref<1x128xf32, #tpu.memory_space<vmem>>, vector<1x128xf32>
    %103 = vector.broadcast %102 : vector<1x128xf32> to vector<256x128xf32>
    %104 = arith.addf %101, %103 : vector<256x128xf32>
    %cst_98 = arith.constant 0.000000e+00 : f32
    %105 = vector.broadcast %cst_98 : f32 to vector<256x128xf32>
    %106 = arith.maximumf %104, %105 : vector<256x128xf32>
    %c0_99 = arith.constant 0 : index
    %c0_100 = arith.constant 0 : index
    %107 = vector.load %arg10[%c0_99, %c0_100] : memref<128x16xf32, #tpu.memory_space<vmem>>, vector<128x16xf32>
    %cst_101 = arith.constant dense<0.000000e+00> : vector<256x16xf32>
    %108 = tpu.matmul %106, %107, %cst_101 {dimension_numbers = #tpu.dot_dimension_numbers<[1], [0], [0], [1], [0, 0, 1, 1], [], []>} : vector<256x128xf32>, vector<128x16xf32>, vector<256x16xf32> -> vector<256x16xf32>
    %c0_102 = arith.constant 0 : index
    %c0_103 = arith.constant 0 : index
    %109 = vector.load %arg11[%c0_102, %c0_103] : memref<1x16xf32, #tpu.memory_space<vmem>>, vector<1x16xf32>
    %110 = vector.broadcast %109 : vector<1x16xf32> to vector<256x16xf32>
    %111 = arith.mulf %108, %110 : vector<256x16xf32>
    %c0_104 = arith.constant 0 : index
    %c0_105 = arith.constant 0 : index
    %112 = vector.load %arg12[%c0_104, %c0_105] : memref<1x16xf32, #tpu.memory_space<vmem>>, vector<1x16xf32>
    %113 = vector.broadcast %112 : vector<1x16xf32> to vector<256x16xf32>
    %114 = arith.addf %111, %113 : vector<256x16xf32>
    %115 = vector.shape_cast %4 : vector<16x16x16xf32> to vector<256x16xf32>
    %116 = arith.addf %114, %115 : vector<256x16xf32>
    %cst_106 = arith.constant 0.000000e+00 : f32
    %117 = vector.broadcast %cst_106 : f32 to vector<256x16xf32>
    %118 = arith.maximumf %116, %117 : vector<256x16xf32>
    %119 = vector.shape_cast %118 : vector<256x16xf32> to vector<16x16x16xf32>
    %c0_107 = arith.constant 0 : index
    %c0_108 = arith.constant 0 : index
    %c0_109 = arith.constant 0 : index
    %c0_110 = arith.constant 0 : index
    %120 = vector.load %arg13[%c0_107, %c0_108, %c0_109, %c0_110] : memref<1x16x16x16xf32, #tpu.memory_space<vmem>>, vector<1x16x16x16xf32>
    %121 = vector.shape_cast %120 : vector<1x16x16x16xf32> to vector<16x16x16xf32>
    %122 = vector.shape_cast %119 : vector<16x16x16xf32> to vector<1x16x16x16xf32>
    tpu.vector_store %arg13[%c0_107, %c0_108, %c0_109, %c0_110], %122 {strides = array<i32>} : memref<1x16x16x16xf32, #tpu.memory_space<vmem>>, vector<1x16x16x16xf32>,
    return
  }
  func.func @transform_0(%arg0: i32, %arg1: i32) -> (i32, i32, i32, i32) {
    %c0_i32 = arith.constant 0 : i32
    %c0_i32_0 = arith.constant 0 : i32
    %c0_i32_1 = arith.constant 0 : i32
    return %arg0, %arg1, %c0_i32, %c0_i32_0 : i32, i32, i32, i32
  }
  func.func @transform_1(%arg0: i32, %arg1: i32) -> (i32, i32, i32, i32, i32) {
    %c0_i32 = arith.constant 0 : i32
    %c0_i32_0 = arith.constant 0 : i32
    %c0_i32_1 = arith.constant 0 : i32
    %c0_i32_2 = arith.constant 0 : i32
    return %arg0, %arg1, %c0_i32, %c0_i32_0, %c0_i32_1 : i32, i32, i32, i32, i32
  }
  func.func @transform_2(%arg0: i32, %arg1: i32) -> (i32, i32) {
    %c0_i32 = arith.constant 0 : i32
    %c0_i32_0 = arith.constant 0 : i32
    %c0_i32_1 = arith.constant 0 : i32
    return %c0_i32, %c0_i32_0 : i32, i32
  }
  func.func @transform_3(%arg0: i32, %arg1: i32) -> (i32, i32) {
    %c0_i32 = arith.constant 0 : i32
    %c0_i32_0 = arith.constant 0 : i32
    %c0_i32_1 = arith.constant 0 : i32
    return %c0_i32, %c0_i32_0 : i32, i32
  }
  func.func @transform_4(%arg0: i32, %arg1: i32) -> (i32, i32) {
    %c0_i32 = arith.constant 0 : i32
    %c0_i32_0 = arith.constant 0 : i32
    %c0_i32_1 = arith.constant 0 : i32
    return %c0_i32, %c0_i32_0 : i32, i32
  }
  func.func @transform_5(%arg0: i32, %arg1: i32) -> (i32, i32, i32) {
    %c0_i32 = arith.constant 0 : i32
    %c0_i32_0 = arith.constant 0 : i32
    %c0_i32_1 = arith.constant 0 : i32
    %c0_i32_2 = arith.constant 0 : i32
    return %c0_i32, %c0_i32_0, %c0_i32_1 : i32, i32, i32
  }
  func.func @transform_6(%arg0: i32, %arg1: i32) -> (i32, i32) {
    %c0_i32 = arith.constant 0 : i32
    %c0_i32_0 = arith.constant 0 : i32
    %c0_i32_1 = arith.constant 0 : i32
    return %c0_i32, %c0_i32_0 : i32, i32
  }
  func.func @transform_7(%arg0: i32, %arg1: i32) -> (i32, i32) {
    %c0_i32 = arith.constant 0 : i32
    %c0_i32_0 = arith.constant 0 : i32
    %c0_i32_1 = arith.constant 0 : i32
    return %c0_i32, %c0_i32_0 : i32, i32
  }
  func.func @transform_8(%arg0: i32, %arg1: i32) -> (i32, i32) {
    %c0_i32 = arith.constant 0 : i32
    %c0_i32_0 = arith.constant 0 : i32
    %c0_i32_1 = arith.constant 0 : i32
    return %c0_i32, %c0_i32_0 : i32, i32
  }
  func.func @transform_9(%arg0: i32, %arg1: i32) -> (i32, i32) {
    %c0_i32 = arith.constant 0 : i32
    %c0_i32_0 = arith.constant 0 : i32
    %c0_i32_1 = arith.constant 0 : i32
    return %c0_i32, %c0_i32_0 : i32, i32
  }
  func.func @transform_10(%arg0: i32, %arg1: i32) -> (i32, i32) {
    %c0_i32 = arith.constant 0 : i32
    %c0_i32_0 = arith.constant 0 : i32
    %c0_i32_1 = arith.constant 0 : i32
    return %c0_i32, %c0_i32_0 : i32, i32
  }
  func.func @transform_11(%arg0: i32, %arg1: i32) -> (i32, i32, i32, i32) {
    %c0_i32 = arith.constant 0 : i32
    %c0_i32_0 = arith.constant 0 : i32
    %c0_i32_1 = arith.constant 0 : i32
    return %arg0, %arg1, %c0_i32, %c0_i32_0 : i32, i32, i32, i32
  }
}

</mosaic_0001>

<bundles_post_ra>
// kernel: tpu_custom_call.1
= control target key start
LH: loop header
LB: loop body
LE: loop exit
PB: predicated region body
PF: predicated region fallthrough
CT: control target
= control target key end

     0   :  { %s8087_s0 = inlined_call_operand.hbm [shape: f32[2,16,16,16], index: 0, kind: input, shape index: {}]   ;;  %s8088_s1 = inlined_call_operand.vmem [shape: f32[2,1,2,16,16], index: 1, kind: input, shape index: {}]   ;;  %s8089_s2 = inlined_call_operand.vmem [shape: f32[16,128], index: 2, kind: input, shape index: {}]   ;;  %s8090_s3 = inlined_call_operand.vmem [shape: f32[1,128], index: 3, kind: input, shape index: {}]   ;;  %s8091_s4 = inlined_call_operand.vmem [shape: f32[1,128], index: 4, kind: input, shape index: {}]   ;;  %s8092_s5 = inlined_call_operand.hbm [shape: f32[9,128,128], index: 5, kind: input, shape index: {}]   ;;  %s8093_s6 = inlined_call_operand.vmem [shape: f32[1,128], index: 6, kind: input, shape index: {}]   ;;  %s8094_s7 = inlined_call_operand.vmem [shape: f32[1,128], index: 7, kind: input, shape index: {}]   ;;  %s8095_s8 = inlined_call_operand.vmem [shape: f32[128,16], index: 8, kind: input, shape index: {}]   ;;  %s8096_s9 = inlined_call_operand.vmem [shape: f32[1,16], index: 9, kind: input, shape index: {}]   ;;  %s8097_s10 = inlined_call_operand.vmem [shape: f32[1,16], index: 10, kind: input, shape index: {}]   ;;  %s8098_s11 = inlined_call_operand.hbm [shape: f32[2,16,16,16], index: 11, kind: output, shape index: {}]  }
   0x1   :  { %8107 = sst [smem:[#allocation73_spill]] %s8092_s5 }
   0x2   :  { %8108 = sst [smem:[#allocation74_spill]] %s8096_s9 }
   0x3   :  { %8109 = sst [smem:[#allocation75_spill]] %s8097_s10 }
   0x4   :  { %8110 = sst [smem:[#allocation76_spill]] %s8098_s11 }
   0x5   :  { %16 = vsyncpa [#allocation4], 0 }
   0x6   :  { %18 = vsyncpa [#allocation4 + $0x1], 0 }
   0x7   :  { %19 = vsyncpa [#allocation7], 0 }
   0x8   :  { %20 = vsyncpa [#allocation5], 0 }
   0x9   :  { %22 = vsyncpa [#allocation5 + $0x1], 0  ;;  %s6278_s17 = smov 0   ;;  %s6280_s18 = smov 0  }
   0xa   :  { %s6282_s19 = smov 0   ;;  %s6284_s20 = smov 0  }
   0xb   :  { %s6286_s21 = smov 0   ;;  %s6288_s22 = smov 0  }
   0xc LB: > { %8111 = sst [smem:[#allocation12_spill]] %s6188_s17  ;;  %s4506_s23 = sadd.s32 4294967295, %s6208_s22   ;;  %s6208_s22 = sphi %s6288_s22, %s28_s22   ;;  %s6204_s21 = sphi %s6286_s21, %s8250_s21   ;;  %s6200_s20 = sphi %s6284_s20, %s8249_s20   ;;  %s6196_s19 = sphi %s6282_s19, %s8253_s19   ;;  %s6192_s18 = sphi %s6280_s18, %s8252_s18   ;;  %s6188_s17 = sphi %s6278_s17, %s8251_s17  }
   0xd   : > { %8112 = sst [smem:[#allocation13_spill]] %s6204_s21  ;;  %s4507_s24 = sadd.s32 4294967294, %s6208_s22  }
   0xe   : > { %p62_p0 = scmp.ne.s32.totalorder %s6192_s18, %s6188_s17  ;;  %p6312_p1 = scmp.eq.s32.totalorder %s4506_s23, 0 }
   0xf   : > { %p6316_p2 = scmp.eq.s32.totalorder %s4506_s23, 1  ;;  %p311_p3 = scmp.eq.s32.totalorder %s4507_s24, 1 }
  0x10   : > { %p6322_p4 = por %p6312_p1, %p62_p0  ;;  %p4508_p5 = scmp.ge.s32.totalorder %s6208_s22, 1 }
  0x11   : > { %p6327_p6 = por %p311_p3, %p62_p0  ;;  %p318_p7 = scmp.lt.s32.totalorder %s6208_s22, 3 }
  0x12   : > { %s8115_s27 = scalar_select %p6322_p4, 1, 0 }
  0x13   : > { %s8116_s28 = scalar_select %p6327_p6, 1, 0 }
  0x14   : > { %p6332_p8 = pnand %p4508_p5, %p318_p7  ;;  %s6210_s30 = smov [#allocation6]  }
  0x15   : > { %8117 = sst [smem:[#allocation14_spill]] %s8116_s28  ;;  %s339_s12 = sshll.u32 %s6210_s30, 4  ;;  %s340_s12 = int_to_ptr.vmem [resolvable:$true] %s339_s12 }
  0x16   : > { %p5966_p9 = pneg %p6332_p8  ;;  %s40_s14 = sadd.s32 1, %s6204_s21 }
  0x17   : > { %s6081_s15 = scalar_lea.vmem %s340_s12, 18432  ;;  %p6089_p5 = scmp.lt.s32.totalorder %s340_s12, %s340_s12 }
  0x18   : > { %p6341_p11 = pnand %p5966_p9, %p6312_p1  ;;  %p6082_p13 = scmp.ne.s32.totalorder %s340_s12, %s6081_s15 }
  0x19   : > { %p6090_p7 = scmp.lt.s32.totalorder %s6081_s15, %s6081_s15 }
  0x1a   : > { %p6072_p12 = pneg %p6341_p11 }
  0x1b   : > { %p6091_p6 = por %p6090_p7, %p6089_p5 }
  0x1c   : > { %p6084_p0 = pnand %p6082_p13, %p6072_p12 }
  0x1e   : > { %p6085_p3 = pneg %p6084_p0 }
  0x20   : > { %p6092_p4 = pnand %p6091_p6, %p6085_p3 }
  0x22   : > { %6095 = shalt.err (!%p6092_p4)
}
  0x23   : > { %s8102_s16 = smov 128   ;;  %s8103_s23 = smov 8  }
  0x24   : > { %s8120_s5 = sld [smem:[#allocation73_spill]]  ;;  %p42_p4 = scmp.ge.s32.totalorder %s40_s14, 2 }
  0x25   : > { %s49_s15 = sadd.s32 1, %s6196_s19  ;;  %p56_p6 = scmp.ne.s32.totalorder %s6196_s19, %s6192_s18 }
  0x26   : > { %p57_p9 = scmp.eq.s32.totalorder %s6208_s22, 0  ;;  %s8255_s14 = smov (%p42_p4, %s40_s14), 0 }
  0x27   : > { %8121 = sst [smem:[#allocation15_spill]] %s8255_s14  ;;  %p6368_p13 = por %p6316_p2, %p56_p6 }
  0x28   : > { %p6362_p12 = por %p57_p9, %p56_p6  ;;  %s44_s17 = ssub.s32 %s6204_s21, %s8255_s14 }
  0x29   : > { %p5979_p0 = scmp.lt.s32.totalorder %s6208_s22, 2 }
  0x2a   : > { %5969 = dma.hbm_to_vmem [thread:$0]  (!%p6341_p11), %s8120_s5, 18432, %s340_s12, [#allocation7], %s8102_s16, %s8102_s16, %s8103_s23  }
  0x2b   : > { %p47_p11 = scmp.eq.s32.totalorder %s44_s17, 0  ;;  %s368_s12 = sand.u32 1, %s6196_s19  }
  0x2c   : > { %s4511_s24 = sshll.u32 %s368_s12, 8  ;;  %s4569_s16 = sshll.u32 %s6204_s21, 12 }
  0x2d   : > { %s6377_s30 = scalar_select %p47_p11, %s6196_s19, %s49_s15  }
  0x2e   : > { %s381_s11 = scalar_lea.hbm %s8087_s0, %s4569_s16  ;;  %s372_s10 = scalar_lea.vmem [#allocation3], %s4511_s24 }
  0x2f   : > { %s382_s9 = sshll.u32 %s372_s10, 4  ;;  %p6385_p2 = pnand %p5979_p0, %p6362_p12  ;;  %s383_s9 = int_to_ptr.vmem [resolvable:$true] %s382_s9 }
  0x30   : > { %s369_s14 = scalar_lea.sflag [#allocation4], %s368_s12  ;;  %s6109_s17 = scalar_lea.vmem %s383_s9, 4096 }
  0x31   : > { %p6098_p3 = pneg %p6385_p2  ;;  %p6110_p5 = scmp.ne.s32.totalorder %s383_s9, %s6109_s17 }
  0x32   : > { %s6213_s15 = smov [#allocation3]  }
  0x33   : > { %p6112_p7 = pnand %p6110_p5, %p6098_p3  ;;  %s6114_s21 = sshll.u32 %s6213_s15, 4  ;;  %s6115_s21 = int_to_ptr.vmem [resolvable:$false] %s6114_s21 }
  0x34   : > { %s6116_s5 = scalar_lea.vmem %s6115_s21, 8192  ;;  %p6117_p6 = scmp.lt.s32.totalorder %s383_s9, %s6115_s21 }
  0x35   : > { %p6113_p4 = pneg %p6112_p7  ;;  %p6118_p9 = scmp.lt.s32.totalorder %s6116_s5, %s6109_s17 }
  0x37   : > { %p6119_p11 = por %p6118_p9, %p6117_p6 }
  0x39   : > { %p6120_p10 = pnand %p6119_p11, %p6113_p4 }
  0x3b   : > { %6123 = shalt.err (!%p6120_p10)
}
  0x3c   : > { %s8125_s10 = smov 8   ;;  %s8126_s28 = smov 128  }
  0x3d   : > { %5973 = dma.hbm_to_vmem [thread:$0]  (!%p6385_p2), %s381_s11, 4096, %s383_s9, %s369_s14, %s8126_s28, %s8126_s28, %s8125_s10  }
  0x3e   : > { %406 = sbr.rel (%p6332_p8) target bundleno = 1037 (0x40d), region = 64 }
  0x43   : > { %s6399_s16 = sand.u32 1, %s6192_s18   ;;  %p8127_p10 = scmp.ne.s32.totalorder %s8115_s27, 0 }
  0x44   : > { %s4515_s21 = sshll.u32 %s6399_s16, 8  ;;  %s409_s23 = scalar_lea.sflag [#allocation4], %s6399_s16 }
  0x45   : > { %s6405_s12 = scalar_lea.vmem [#allocation3], %s4515_s21 }
  0x46   : > { %6175 = dma.done.wait (%p8127_p10), %s409_s23, 4096  }
  0x47   : > { %6177 = vsyncadd (%p8127_p10), %s409_s23, 4294963200 }
  0x48   : > { %6179 = dma.done.wait (%p6312_p1), [#allocation7], 18432  }
  0x49   : > { %6181 = vsyncadd (%p6312_p1), [#allocation7], 4294948864  ;;  %vm545_vm0 = vcmask 130048   ;;  %v544_v0 = vld [vmem:[%s8089_s2 + $0x8] sm:$0xff]  ;;  %v543_v1 = vld [vmem:[%s8089_s2] sm:$0xff]  ;;  %p465_p1 = scmp.lt.s32.totalorder %s6200_s20, 1 }
  0x4a   : > { %v535_v2 = vld [vmem:[%s6405_s12 + $0xc0] sm:$0xff]  ;;  %5954 = vmatprep.subr.mxu1 %v544_v0  ;;  %v536_v3 = vld [vmem:[%s6405_s12 + $0xc8] sm:$0xff]  ;;  %5092 = vmatprep.subr.mxu0 %v544_v0  ;;  %v537_v4 = vld [vmem:[%s6405_s12 + $0xd0] sm:$0xff]  ;;  %v6214_v46 = vmov 0.0   ;;  %s8242_s15 = sld [smem:[#allocation74_spill]]  ;;  %s7879_s23 = scalar_lea.vmem [#allocation8], %s4515_s21 }
  0x4b   : > { %5132 = vmatprep.mubr.msk.f32.mxu1 %vm545_vm0, %v535_v2  ;;  %5956 = vmatpush3.msra.mxu1 %v544_v0  ;;  %s466_s25 = scalar_select %p465_p1, %s6200_s20, 1  ;;  %v511_v5 = vld [vmem:[%s6405_s12] sm:$0xff]  ;;  %v538_v6 = vld [vmem:[%s6405_s12 + $0xd8] sm:$0xff]  ;;  %v512_v7 = vld [vmem:[%s6405_s12 + $0x8] sm:$0xff]  ;;  %475 = vst [vmem:[#allocation2] sm:$0x1] %v6214_v46 }
  0x4c   : > { %5955 = vmatprep.subr.mxu1 %v543_v1  ;;  %5093 = vmatpush3.msra.mxu0 %v544_v0  ;;  %v539_v8 = vld [vmem:[%s6405_s12 + $0xe0] sm:$0xff]  ;;  %v513_v9 = vld [vmem:[%s6405_s12 + $0x10] sm:$0xff]  ;;  %v540_v10 = vld [vmem:[%s6405_s12 + $0xe8] sm:$0xff]  ;;  %476 = vst [vmem:[#allocation2 + $0x18] sm:$0x1] %v6214_v46  ;;  %s8243_s28 = sld [smem:[#allocation75_spill]] }
  0x4d   : > { %5957 = vmatpush3.msra.mxu1 %v543_v1  ;;  %5094 = vmatprep.subr.mxu0 %v543_v1  ;;  %s4570_s27 = sshll.u32 %s466_s25, 5  ;;  %v514_v11 = vld [vmem:[%s6405_s12 + $0x18] sm:$0xff]  ;;  %v541_v12 = vld [vmem:[%s6405_s12 + $0xf0] sm:$0xff]  ;;  %v515_v13 = vld [vmem:[%s6405_s12 + $0x20] sm:$0xff]  ;;  %477 = vst [vmem:[#allocation2 + $0x30] sm:$0x1] %v6214_v46 }
  0x4e   : > { %5133 = vmatmul.mubr.msk.f32.vlgmr.msra.gmra.mxu1 %vm545_vm0, %v536_v3  ;;  %5144 = vmatprep.subr.mxu1 %v544_v0  ;;  %s6446_s17 = scalar_lea.vmem %s8088_s1, %s4570_s27  ;;  %v542_v14 = vld [vmem:[%s6405_s12 + $0xf8] sm:$0xff]  ;;  %v516_v15 = vld [vmem:[%s6405_s12 + $0x28] sm:$0xff]  ;;  %v517_v17 = vld [vmem:[%s6405_s12 + $0x30] sm:$0xff]  ;;  %478 = vst [vmem:[#allocation2 + $0x48] sm:$0x1] %v6214_v46  ;;  %s4571_s21 = sshll.u32 %s6200_s20, 12 }
  0x4f   : > { %5145 = vmatpush3.msra.mxu1 %v544_v0  ;;  %5135 = vmatprep.mubr.msk.f32.mxu1 %vm545_vm0, %v537_v4  ;;  %v1010_v16 = vld [vmem:[%s6446_s17] sm:$0xff]  ;;  %v1011_v18 = vld [vmem:[%s6446_s17 + $0x8] sm:$0xff]  ;;  %v519_v20 = vld [vmem:[%s6405_s12 + $0x40] sm:$0xff]  ;;  %479 = vst [vmem:[#allocation2 + $0x60] sm:$0x1] %v6214_v46  ;;  %s4388_s9 = sshll.u32 %s7879_s23, 4  ;;  %s8035_s9 = int_to_ptr.vmem [resolvable:$true] %s4388_s9 }
  0x50   : > { %5146 = vmatprep.subr.mxu1 %v543_v1  ;;  %5095 = vmatpush3.msra.mxu0 %v543_v1  ;;  %v518_v19 = vld [vmem:[%s6405_s12 + $0x38] sm:$0xff]  ;;  %v520_v21 = vld [vmem:[%s6405_s12 + $0x48] sm:$0xff]  ;;  %v521_v22 = vld [vmem:[%s6405_s12 + $0x50] sm:$0xff]  ;;  %480 = vst [vmem:[#allocation2 + $0x78] sm:$0x1] %v6214_v46  ;;  %s8244_s14 = sld [smem:[#allocation76_spill]] }
  0x51   : > { %5147 = vmatpush3.msra.mxu1 %v543_v1  ;;  %5096 = vmatprep.mubr.msk.f32.mxu0 %vm545_vm0, %v511_v5  ;;  %v522_v23 = vld [vmem:[%s6405_s12 + $0x58] sm:$0xff]  ;;  %v523_v24 = vld [vmem:[%s6405_s12 + $0x60] sm:$0xff]  ;;  %v524_v25 = vld [vmem:[%s6405_s12 + $0x68] sm:$0xff]  ;;  %481 = vst [vmem:[#allocation2 + $0x90] sm:$0x1] %v6214_v46  ;;  %s4372_s20 = scalar_lea.sflag [#allocation5], %s6399_s16 }
  0x52   : > { %5136 = vmatmul.mubr.msk.f32.gmra.mxu1 %vm545_vm0, %v538_v6  ;;  %5097 = vmatmul.mubr.msk.f32.vlgmr.msra.gmra.mxu0 %vm545_vm0, %v512_v7  ;;  %v525_v26 = vld [vmem:[%s6405_s12 + $0x70] sm:$0xff]  ;;  %v526_v27 = vld [vmem:[%s6405_s12 + $0x78] sm:$0xff]  ;;  %v527_v28 = vld [vmem:[%s6405_s12 + $0x80] sm:$0xff]  ;;  %482 = vst [vmem:[#allocation2 + $0xa8] sm:$0x1] %v6214_v46  ;;  %s6124_s27 = scalar_lea.vmem %s8035_s9, 4096 }
  0x53   : > { %5138 = vmatprep.mubr.msk.f32.mxu1 %vm545_vm0, %v539_v8  ;;  %5099 = vmatprep.mubr.msk.f32.mxu0 %vm545_vm0, %v513_v9  ;;  %v528_v29 = vld [vmem:[%s6405_s12 + $0x88] sm:$0xff]  ;;  %v529_v30 = vld [vmem:[%s6405_s12 + $0x90] sm:$0xff]  ;;  %v530_v31 = vld [vmem:[%s6405_s12 + $0x98] sm:$0xff]  ;;  %483 = vst [vmem:[#allocation2 + $0xc0] sm:$0x1] %v6214_v46  ;;  %p6125_p8 = scmp.ne.s32.totalorder %s8035_s9, %s6124_s27 }
  0x54   : > { %v531_v32 = vld [vmem:[%s6405_s12 + $0xa0] sm:$0xff]  ;;  %v532_v33 = vld [vmem:[%s6405_s12 + $0xa8] sm:$0xff]  ;;  %v533_v34 = vld [vmem:[%s6405_s12 + $0xb0] sm:$0xff]  ;;  %484 = vst [vmem:[#allocation2 + $0xd8] sm:$0x1] %v6214_v46 }
  0x55   : > { %v534_v35 = vld [vmem:[%s6405_s12 + $0xb8] sm:$0xff]  ;;  %v1251_v37 = vld [vmem:[#allocation6 + $0xf0] sm:$0xff]  ;;  %v1250_v38 = vld [vmem:[#allocation6 + $0xe8] sm:$0xff]  ;;  %485 = vst [vmem:[#allocation2 + $0xf0] sm:$0x1] %v6214_v46  ;;  %p6126_p12 = pnand %p6125_p8, %p6368_p13 }
  0x56   : > { %5139 = vmatmul.mubr.msk.f32.gmra.mxu1 %vm545_vm0, %v540_v10  ;;  %5100 = vmatmul.mubr.msk.f32.gmra.mxu0 %vm545_vm0, %v514_v11  ;;  %v1252_v36 = vld [vmem:[#allocation6 + $0xf8] sm:$0xff]  ;;  %v1249_v39 = vld [vmem:[#allocation6 + $0xe0] sm:$0xff]  ;;  %v1202_v42 = vld [vmem:[#allocation6 + $0x70] sm:$0xff]  ;;  %486 = vst [vmem:[#allocation2 + $0x108] sm:$0x1] %v6214_v46  ;;  %s8033_s25 = scalar_lea.hbm %s8244_s14, %s4571_s21 }
  0x57   : > { %5141 = vmatprep.mubr.msk.f32.mxu1 %vm545_vm0, %v541_v12  ;;  %5102 = vmatprep.mubr.msk.f32.mxu0 %vm545_vm0, %v515_v13  ;;  %v1203_v40 = vld [vmem:[#allocation6 + $0x78] sm:$0xff]  ;;  %v1247_v43 = vld [vmem:[#allocation6 + $0xd0] sm:$0xff]  ;;  %v1201_v44 = vld [vmem:[#allocation6 + $0x68] sm:$0xff]  ;;  %487 = vst [vmem:[#allocation2 + $0x120] sm:$0x1] %v6214_v46  ;;  %p6127_p0 = pneg %p6126_p12 }
  0x58   : > { %5154 = vmatprep.subr.mxu1 %v1252_v36  ;;  %v1248_v41 = vld [vmem:[#allocation6 + $0xd8] sm:$0xff]  ;;  %5234 = vmatprep.subr.mxu0 %v1203_v40  ;;  %v1246_v45 = vld [vmem:[#allocation6 + $0xc8] sm:$0xff]  ;;  %488 = vst [vmem:[#allocation2 + $0x138] sm:$0x1] %v6214_v46  ;;  %489 = vst [vmem:[#allocation2 + $0x150] sm:$0x1] %v6214_v46 }
  0x59   : > { %5235 = vmatpush3.msra.mxu0 %v1203_v40  ;;  %490 = vst [vmem:[#allocation2 + $0x168] sm:$0x1] %v6214_v46  ;;  %491 = vst [vmem:[#allocation2 + $0x180] sm:$0x1] %v6214_v46  ;;  %v1200_v47 = vld [vmem:[#allocation6 + $0x60] sm:$0xff]  ;;  %v1199_v49 = vld [vmem:[#allocation6 + $0x58] sm:$0xff] }
  0x5a   : > { %5142 = vmatmul.mubr.msk.f32.gmra.mxu1 %vm545_vm0, %v542_v14  ;;  %5103 = vmatmul.mubr.msk.f32.gmra.mxu0 %vm545_vm0, %v516_v15  ;;  %492 = vst [vmem:[#allocation2 + $0x198] sm:$0x1] %v6214_v46  ;;  %493 = vst [vmem:[#allocation2 + $0x11] sm:$0x1] %v6214_v46  ;;  %v1245_v48 = vld [vmem:[#allocation6 + $0xc0] sm:$0xff]  ;;  %v1244_v50 = vld [vmem:[#allocation6 + $0xb8] sm:$0xff] }
  0x5b   : > { %5148 = vmatprep.mubr.msk.f32.mxu1 %vm545_vm0, %v1010_v16  ;;  %5105 = vmatprep.mubr.msk.f32.mxu0 %vm545_vm0, %v517_v17  ;;  %494 = vst [vmem:[#allocation2 + $0x29] sm:$0x1] %v6214_v46  ;;  %495 = vst [vmem:[#allocation2 + $0x41] sm:$0x1] %v6214_v46  ;;  %v1198_v51 = vld [vmem:[#allocation6 + $0x50] sm:$0xff]  ;;  %v1197_v53 = vld [vmem:[#allocation6 + $0x48] sm:$0xff] }
  0x5c   : > { %5236 = vmatprep.subr.mxu0 %v1202_v42  ;;  %496 = vst [vmem:[#allocation2 + $0x59] sm:$0x1] %v6214_v46  ;;  %497 = vst [vmem:[#allocation2 + $0x71] sm:$0x1] %v6214_v46  ;;  %v1243_v52 = vld [vmem:[#allocation6 + $0xb0] sm:$0xff]  ;;  %v1242_v54 = vld [vmem:[#allocation6 + $0xa8] sm:$0xff] }
  0x5d   : > { %5237 = vmatpush3.msra.mxu0 %v1202_v42  ;;  %498 = vst [vmem:[#allocation2 + $0x89] sm:$0x1] %v6214_v46  ;;  %499 = vst [vmem:[#allocation2 + $0xa1] sm:$0x1] %v6214_v46  ;;  %v1196_v55 = vld [vmem:[#allocation6 + $0x40] sm:$0xff]  ;;  %v1195_v57 = vld [vmem:[#allocation6 + $0x38] sm:$0xff] }
  0x5e   : > { %5149 = vmatmul.mubr.msk.f32.vlgmr.msra.gmra.mxu1 %vm545_vm0, %v1011_v18  ;;  %5106 = vmatmul.mubr.msk.f32.gmra.mxu0 %vm545_vm0, %v518_v19  ;;  %500 = vst [vmem:[#allocation2 + $0xb9] sm:$0x1] %v6214_v46  ;;  %501 = vst [vmem:[#allocation2 + $0xd1] sm:$0x1] %v6214_v46  ;;  %v1241_v56 = vld [vmem:[#allocation6 + $0xa0] sm:$0xff]  ;;  %v1240_v58 = vld [vmem:[#allocation6 + $0x98] sm:$0xff] }
  0x5f   : > { %5108 = vmatprep.mubr.msk.f32.mxu0 %vm545_vm0, %v519_v20  ;;  %5155 = vmatpush3.msra.mxu1 %v1252_v36  ;;  %502 = vst [vmem:[#allocation2 + $0xe9] sm:$0x1] %v6214_v46  ;;  %503 = vst [vmem:[#allocation2 + $0x101] sm:$0x1] %v6214_v46  ;;  %v1012_v59 = vld [vmem:[%s6446_s17 + $0x10] sm:$0xff]  ;;  %v1194_v60 = vld [vmem:[#allocation6 + $0x30] sm:$0xff] }
  0x60   : > { %5156 = vmatprep.subr.mxu1 %v1251_v37  ;;  %504 = vst [vmem:[#allocation2 + $0x119] sm:$0x1] %v6214_v46  ;;  %505 = vst [vmem:[#allocation2 + $0x131] sm:$0x1] %v6214_v46  ;;  %5238 = vmatprep.subr.mxu0 %v1201_v44  ;;  %v1239_v61 = vld [vmem:[#allocation6 + $0x90] sm:$0xff]  ;;  %v1013_v62 = vld [vmem:[%s6446_s17 + $0x18] sm:$0xff] }
  0x61   : > { %5157 = vmatpush3.msra.mxu1 %v1251_v37  ;;  %506 = vst [vmem:[#allocation2 + $0x149] sm:$0x1] %v6214_v46  ;;  %507 = vst [vmem:[#allocation2 + $0x161] sm:$0x1] %v6214_v46  ;;  %5239 = vmatpush3.msra.mxu0 %v1201_v44  ;;  %v1193_v63 = vld [vmem:[#allocation6 + $0x28] sm:$0xff]  ;;  %v1192_v1 = vld [vmem:[#allocation6 + $0x20] sm:$0xff] }
  0x62   : > { %5109 = vmatmul.mubr.msk.f32.gmra.mxu0 %vm545_vm0, %v520_v21  ;;  %5158 = vmatprep.subr.mxu1 %v1250_v38  ;;  %508 = vst [vmem:[#allocation2 + $0x179] sm:$0x1] %v6214_v46  ;;  %509 = vst [vmem:[#allocation2 + $0x191] sm:$0x1] %v6214_v46  ;;  %v1238_v0 = vld [vmem:[#allocation6 + $0x88] sm:$0xff]  ;;  %v1237_v2 = vld [vmem:[#allocation6 + $0x80] sm:$0xff] }
  0x63   : > { %5111 = vmatprep.mubr.msk.f32.mxu0 %vm545_vm0, %v521_v22  ;;  %5159 = vmatpush3.msra.mxu1 %v1250_v38  ;;  %510 = vst [vmem:[#allocation2 + $0x1a9] sm:$0x1] %v6214_v46  ;;  %v1191_v3 = vld [vmem:[#allocation6 + $0x18] sm:$0xff]  ;;  %v1190_v4 = vld [vmem:[#allocation6 + $0x10] sm:$0xff]  ;;  %v1189_v5 = vld [vmem:[#allocation6 + $0x8] sm:$0xff] }
  0x64   : > { %5160 = vmatprep.subr.mxu1 %v1249_v39  ;;  %5240 = vmatprep.subr.mxu0 %v1200_v47  ;;  %v1188_v6 = vld [vmem:[#allocation6] sm:$0xff]  ;;  %v6500_v7 = vld [vmem:[#allocation6 + $0x178] sm:$0xff]  ;;  %v6509_v9 = vld [vmem:[%s8090_s3] ss:$0 sm:$0xff] }
  0x65   : > { %5161 = vmatpush3.msra.mxu1 %v1249_v39  ;;  %5241 = vmatpush3.msra.mxu0 %v1200_v47  ;;  %v6503_v8 = vld [vmem:[#allocation6 + $0x1f8] sm:$0xff]  ;;  %v6514_v11 = vld [vmem:[%s8091_s4] ss:$0 sm:$0xff] }
  0x66   : > { %5112 = vmatmul.mubr.msk.f32.gmra.mxu0 %vm545_vm0, %v522_v23  ;;  %5162 = vmatprep.subr.mxu1 %v1248_v41 }
  0x67   : > { %5114 = vmatprep.mubr.msk.f32.mxu0 %vm545_vm0, %v523_v24  ;;  %5163 = vmatpush3.msra.mxu1 %v1248_v41 }
  0x68   : > { %5164 = vmatprep.subr.mxu1 %v1247_v43  ;;  %5242 = vmatprep.subr.mxu0 %v1199_v49 }
  0x69   : > { %5165 = vmatpush3.msra.mxu1 %v1247_v43  ;;  %5243 = vmatpush3.msra.mxu0 %v1199_v49 }
  0x6a   : > { %5115 = vmatmul.mubr.msk.f32.gmra.mxu0 %vm545_vm0, %v524_v25  ;;  %5166 = vmatprep.subr.mxu1 %v1246_v45 }
  0x6b   : > { %5117 = vmatprep.mubr.msk.f32.mxu0 %vm545_vm0, %v525_v26  ;;  %5167 = vmatpush3.msra.mxu1 %v1246_v45 }
  0x6c   : > { %5168 = vmatprep.subr.mxu1 %v1245_v48  ;;  %5244 = vmatprep.subr.mxu0 %v1198_v51 }
  0x6d   : > { %5169 = vmatpush3.msra.mxu1 %v1245_v48  ;;  %5245 = vmatpush3.msra.mxu0 %v1198_v51 }
  0x6e   : > { %5118 = vmatmul.mubr.msk.f32.gmra.mxu0 %vm545_vm0, %v526_v27  ;;  %5170 = vmatprep.subr.mxu1 %v1244_v50 }
  0x6f   : > { %5120 = vmatprep.mubr.msk.f32.mxu0 %vm545_vm0, %v527_v28  ;;  %5171 = vmatpush3.msra.mxu1 %v1244_v50 }
  0x70   : > { %5172 = vmatprep.subr.mxu1 %v1243_v52  ;;  %5246 = vmatprep.subr.mxu0 %v1197_v53 }
  0x71   : > { %5173 = vmatpush3.msra.mxu1 %v1243_v52  ;;  %5247 = vmatpush3.msra.mxu0 %v1197_v53 }
  0x72   : > { %5121 = vmatmul.mubr.msk.f32.gmra.mxu0 %vm545_vm0, %v528_v29  ;;  %5174 = vmatprep.subr.mxu1 %v1242_v54 }
  0x73   : > { %5123 = vmatprep.mubr.msk.f32.mxu0 %vm545_vm0, %v529_v30  ;;  %5175 = vmatpush3.msra.mxu1 %v1242_v54 }
  0x74   : > { %5248 = vmatprep.subr.mxu0 %v1196_v55  ;;  %5176 = vmatprep.subr.mxu1 %v1241_v56 }
  0x75   : > { %5249 = vmatpush3.msra.mxu0 %v1196_v55  ;;  %5177 = vmatpush3.msra.mxu1 %v1241_v56 }
  0x76   : > { %5124 = vmatmul.mubr.msk.f32.gmra.mxu0 %vm545_vm0, %v530_v31  ;;  %5250 = vmatprep.subr.mxu0 %v1195_v57 }
  0x77   : > { %5126 = vmatprep.mubr.msk.f32.mxu0 %vm545_vm0, %v531_v32  ;;  %5178 = vmatprep.subr.mxu1 %v1240_v58 }
  0x78   : > { %5251 = vmatpush3.msra.mxu0 %v1195_v57  ;;  %5179 = vmatpush3.msra.mxu1 %v1240_v58 }
  0x79   : > { %5252 = vmatprep.subr.mxu0 %v1194_v60  ;;  %5151 = vmatprep.mubr.msk.f32.mxu1 %vm545_vm0, %v1012_v59 }
  0x7a   : > { %5127 = vmatmul.mubr.msk.f32.gmra.mxu0 %vm545_vm0, %v532_v33  ;;  %5180 = vmatprep.subr.mxu1 %v1239_v61 }
  0x7b   : > { %5129 = vmatprep.mubr.msk.f32.mxu0 %vm545_vm0, %v533_v34  ;;  %5253 = vmatpush3.msra.mxu0 %v1194_v60 }
  0x7c   : > { %5254 = vmatprep.subr.mxu0 %v1193_v63  ;;  %5152 = vmatmul.mubr.msk.f32.gmra.mxu1 %vm545_vm0, %v1013_v62 }
  0x7d   : > { %5255 = vmatpush3.msra.mxu0 %v1193_v63  ;;  %5181 = vmatpush3.msra.mxu1 %v1239_v61 }
  0x7e   : > { %5130 = vmatmul.mubr.msk.f32.gmra.mxu0 %vm545_vm0, %v534_v35  ;;  %5256 = vmatprep.subr.mxu0 %v1192_v1 }
  0x7f   : > { %5182 = vmatprep.subr.mxu1 %v1238_v0  ;;  %5257 = vmatpush3.msra.mxu0 %v1192_v1 }
  0x80   : > { %5183 = vmatpush3.msra.mxu1 %v1238_v0  ;;  %5258 = vmatprep.subr.mxu0 %v1191_v3 }
  0x81   : > { %5184 = vmatprep.subr.mxu1 %v1237_v2  ;;  %5259 = vmatpush3.msra.mxu0 %v1191_v3 }
  0x82   : > { %5185 = vmatpush3.msra.mxu1 %v1237_v2  ;;  %5260 = vmatprep.subr.mxu0 %v1190_v4 }
  0x83   : > { %5261 = vmatpush3.msra.mxu0 %v1190_v4  ;;  %5314 = vmatprep.subr.mxu1 %v6500_v7 }
  0x84   : > { %5262 = vmatprep.subr.mxu0 %v1189_v5 }
  0x85   : > { %5263 = vmatpush3.msra.mxu0 %v1189_v5 }
  0x86   : > { %5264 = vmatprep.subr.mxu0 %v1188_v6 }
  0x87   : > { %5265 = vmatpush3.msra.mxu0 %v1188_v6 }
  0x88   : > { %5394 = vmatprep.subr.mxu0 %v6503_v8 }
 0x10e   : > { %v5134_v10 = vpop.f32.mrf.mxu1 }
 0x10f   : > { %v899_v12 = vmul.f32 %v5134_v10, %v6509_v9 }
 0x110   : > { %v828_v13 = vpop.f32.mrf.mxu1 }
 0x111   : > { %v6518_v14 = vadd.f32 %v6514_v11, %v899_v12  ;;  %v898_v15 = vmul.f32 %v6509_v9, %v828_v13 }
 0x112   : > { %v5137_v16 = vpop.f32.mrf.mxu1  ;;  %v5098_v17 = vpop.f32.mrf.mxu0 }
 0x113   : > { %v970_v18 = vmax.f32 %v6518_v14, 0.0  ;;  %v6523_v19 = vadd.f32 %v6514_v11, %v898_v15  ;;  %v901_v20 = vmul.f32 %v5137_v16, %v6509_v9  ;;  %v875_v21 = vmul.f32 %v5098_v17, %v6509_v9  ;;  %v2044_v14 = vld [vmem:[#allocation6 + $0x190] sm:$0xff] }
 0x114   : > { %v838_v22 = vpop.f32.mrf.mxu1  ;;  %v708_v23 = vpop.f32.mrf.mxu0 }
 0x115   : > { %1003 = vst [vmem:[#allocation2 + $0x141] sm:$0xff] %v970_v18  ;;  %v969_v24 = vmax.f32 %v6523_v19, 0.0  ;;  %v6531_v25 = vadd.f32 %v6514_v11, %v901_v20  ;;  %v900_v26 = vmul.f32 %v6509_v9, %v838_v22  ;;  %v6535_v27 = vadd.f32 %v6514_v11, %v875_v21 }
 0x116   : > { %v5140_v28 = vpop.f32.mrf.mxu1  ;;  %v874_v29 = vmul.f32 %v6509_v9, %v708_v23  ;;  %v5101_v30 = vpop.f32.mrf.mxu0 }
 0x117   : > { %1002 = vst [vmem:[#allocation2 + $0x139] sm:$0xff] %v969_v24  ;;  %v972_v31 = vmax.f32 %v6531_v25, 0.0  ;;  %v6542_v32 = vadd.f32 %v6514_v11, %v900_v26  ;;  %v903_v33 = vmul.f32 %v5140_v28, %v6509_v9  ;;  %v946_v34 = vmax.f32 %v6535_v27, 0.0 }
 0x118   : > { %v848_v35 = vpop.f32.mrf.mxu1  ;;  %v6547_v36 = vadd.f32 %v6514_v11, %v874_v29  ;;  %v877_v37 = vmul.f32 %v5101_v30, %v6509_v9  ;;  %v718_v38 = vpop.f32.mrf.mxu0 }
 0x119   : > { %1005 = vst [vmem:[#allocation2 + $0x159] sm:$0xff] %v972_v31  ;;  %v971_v39 = vmax.f32 %v6542_v32, 0.0  ;;  %v6554_v40 = vadd.f32 %v6514_v11, %v903_v33  ;;  %v902_v41 = vmul.f32 %v6509_v9, %v848_v35  ;;  %979 = vst [vmem:[#allocation2 + $0x21] sm:$0xff] %v946_v34  ;;  %v876_v42 = vmul.f32 %v6509_v9, %v718_v38  ;;  %v2043_v32 = vld [vmem:[#allocation6 + $0x188] sm:$0xff] }
 0x11a   : > { %v5143_v43 = vpop.f32.mrf.mxu1  ;;  %v945_v44 = vmax.f32 %v6547_v36, 0.0  ;;  %v6562_v45 = vadd.f32 %v6514_v11, %v877_v37  ;;  %v5104_v46 = vpop.f32.mrf.mxu0 }
 0x11b   : > { %1004 = vst [vmem:[#allocation2 + $0x151] sm:$0xff] %v971_v39  ;;  %v974_v47 = vmax.f32 %v6554_v40, 0.0  ;;  %v6568_v48 = vadd.f32 %v6514_v11, %v902_v41  ;;  %v905_v49 = vmul.f32 %v5143_v43, %v6509_v9  ;;  %v6572_v50 = vadd.f32 %v6514_v11, %v876_v42 }
 0x11c   : > { %v858_v51 = vpop.f32.mrf.mxu1  ;;  %978 = vst [vmem:[#allocation2 + $0x19] sm:$0xff] %v945_v44  ;;  %v948_v52 = vmax.f32 %v6562_v45, 0.0  ;;  %v879_v53 = vmul.f32 %v5104_v46, %v6509_v9  ;;  %v728_v54 = vpop.f32.mrf.mxu0 }
 0x11d   : > { %1007 = vst [vmem:[#allocation2 + $0x171] sm:$0xff] %v974_v47  ;;  %v973_v55 = vmax.f32 %v6568_v48, 0.0  ;;  %v944_v56 = vadd.f32 %v6514_v11, %v905_v49  ;;  %v904_v57 = vmul.f32 %v6509_v9, %v858_v51  ;;  %v947_v58 = vmax.f32 %v6572_v50, 0.0 }
 0x11e   : > { %v5150_v59 = vpop.f32.mrf.mxu1  ;;  %981 = vst [vmem:[#allocation2 + $0x39] sm:$0xff] %v948_v52  ;;  %v6587_v60 = vadd.f32 %v6514_v11, %v879_v53  ;;  %v878_v61 = vmul.f32 %v6509_v9, %v728_v54  ;;  %v5107_v62 = vpop.f32.mrf.mxu0  ;;  %v1750_v54 = vld [vmem:[#allocation6 + $0x170] sm:$0xff] }
 0x11f   : > { %1006 = vst [vmem:[#allocation2 + $0x169] sm:$0xff] %v973_v55  ;;  %v976_v63 = vmax.f32 %v944_v56, 0.0  ;;  %v943_v0 = vadd.f32 %v6514_v11, %v904_v57  ;;  %v1121_v1 = vmul.f32 %v5150_v59, %v6509_v9  ;;  %980 = vst [vmem:[#allocation2 + $0x31] sm:$0xff] %v947_v58  ;;  %v881_v2 = vmul.f32 %v5107_v62, %v6509_v9 }
 0x120   : > { %v1094_v3 = vpop.f32.mrf.mxu1  ;;  %v950_v4 = vmax.f32 %v6587_v60, 0.0  ;;  %v6599_v5 = vadd.f32 %v6514_v11, %v878_v61  ;;  %v738_v6 = vpop.f32.mrf.mxu0 }
 0x121   : > { %1009 = vst [vmem:[#allocation2 + $0x189] sm:$0xff] %v976_v63  ;;  %v975_v10 = vmax.f32 %v943_v0, 0.0  ;;  %v1132_v12 = vadd.f32 %v6514_v11, %v1121_v1  ;;  %v1120_v13 = vmul.f32 %v6509_v9, %v1094_v3  ;;  %v6604_v15 = vadd.f32 %v6514_v11, %v881_v2  ;;  %v1749_v63 = vld [vmem:[#allocation6 + $0x168] sm:$0xff]  ;;  %v1748_v2 = vld [vmem:[#allocation6 + $0x160] sm:$0xff] }
 0x122   : > { %983 = vst [vmem:[#allocation2 + $0x51] sm:$0xff] %v950_v4  ;;  %v949_v16 = vmax.f32 %v6599_v5, 0.0  ;;  %v880_v17 = vmul.f32 %v6509_v9, %v738_v6  ;;  %v5110_v20 = vpop.f32.mrf.mxu0  ;;  %v6862_v48 = vld [vmem:[#allocation2 + $0x158] sm:$0xff] }
 0x123   : > { %1008 = vst [vmem:[#allocation2 + $0x181] sm:$0xff] %v975_v10  ;;  %v1136_v21 = vmax.f32 %v1132_v12, 0.0  ;;  %v1131_v22 = vadd.f32 %v6514_v11, %v1120_v13  ;;  %v952_v23 = vmax.f32 %v6604_v15, 0.0  ;;  %v883_v26 = vmul.f32 %v5110_v20, %v6509_v9  ;;  %v6667_v27 = vld [vmem:[#allocation2 + $0x18] sm:$0xff] }
 0x124   : > { %982 = vst [vmem:[#allocation2 + $0x49] sm:$0xff] %v949_v16  ;;  %v6616_v28 = vadd.f32 %v6514_v11, %v880_v17  ;;  %v748_v29 = vpop.f32.mrf.mxu0 }
 0x125   : > { %v1147_v30 = vmul.f32 0.0, %v1136_v21  ;;  %v1135_v33 = vmax.f32 %v1131_v22, 0.0  ;;  %985 = vst [vmem:[#allocation2 + $0x69] sm:$0xff] %v952_v23  ;;  %v6621_v35 = vadd.f32 %v6514_v11, %v883_v26  ;;  %v882_v37 = vmul.f32 %v6509_v9, %v748_v29  ;;  %v1747_v21 = vld [vmem:[#allocation6 + $0x158] sm:$0xff]  ;;  %v2056_v26 = vld [vmem:[#allocation6 + $0x1f0] sm:$0xff] }
 0x126   : > { %v951_v38 = vmax.f32 %v6616_v28, 0.0  ;;  %v5113_v41 = vpop.f32.mrf.mxu0 }
 0x127   : > { %1149 = vst [vmem:[#allocation2 + $0x9] sm:$0xff] %v1147_v30  ;;  %v1146_v42 = vmul.f32 0.0, %v1135_v33  ;;  %v954_v43 = vmax.f32 %v6621_v35, 0.0  ;;  %v6627_v46 = vadd.f32 %v6514_v11, %v882_v37  ;;  %v885_v49 = vmul.f32 %v5113_v41, %v6509_v9  ;;  %v6688_v37 = vld [vmem:[#allocation2 + $0x30] sm:$0xff] }
 0x128   : > { %984 = vst [vmem:[#allocation2 + $0x61] sm:$0xff] %v951_v38  ;;  %v758_v51 = vpop.f32.mrf.mxu0 }
 0x129   : > { %1148 = vst [vmem:[#allocation2 + $0x1] sm:$0xff] %v1146_v42  ;;  %5186 = vmatprep.mubr.f32.mxu1 %v1146_v42  ;;  %987 = vst [vmem:[#allocation2 + $0x81] sm:$0xff] %v954_v43  ;;  %v953_v53 = vmax.f32 %v6627_v46, 0.0  ;;  %v6636_v56 = vadd.f32 %v6514_v11, %v885_v49  ;;  %v884_v57 = vmul.f32 %v6509_v9, %v758_v51  ;;  %v1746_v42 = vld [vmem:[#allocation6 + $0x150] sm:$0xff]  ;;  %v2055_v49 = vld [vmem:[#allocation6 + $0x1e8] sm:$0xff] }
 0x12a   : > { %5187 = vmatmul.mubr.f32.vlgmr.msra.gmra.mxu1 %v1147_v30  ;;  %v5116_v59 = vpop.f32.mrf.mxu0 }
 0x12b   : > { %5315 = vmatpush3.msra.mxu1 %v6500_v7  ;;  %5189 = vmatprep.mubr.f32.mxu1 %v945_v44  ;;  %986 = vst [vmem:[#allocation2 + $0x79] sm:$0xff] %v953_v53  ;;  %v956_v61 = vmax.f32 %v6636_v56, 0.0  ;;  %v6646_v62 = vadd.f32 %v6514_v11, %v884_v57  ;;  %v887_v0 = vmul.f32 %v5116_v59, %v6509_v9  ;;  %v6711_v59 = vld [vmem:[#allocation2 + $0x48] sm:$0xff] }
 0x12c   : > { %5316 = vmatprep.subr.mxu1 %v1750_v54  ;;  %v768_v1 = vpop.f32.mrf.mxu0 }
 0x12d   : > { %989 = vst [vmem:[#allocation2 + $0x99] sm:$0xff] %v956_v61  ;;  %5317 = vmatpush3.msra.mxu1 %v1750_v54  ;;  %v955_v7 = vmax.f32 %v6646_v62, 0.0  ;;  %v6653_v36 = vadd.f32 %v6514_v11, %v887_v0  ;;  %v886_v44 = vmul.f32 %v6509_v9, %v768_v1  ;;  %v1745_v0 = vld [vmem:[#allocation6 + $0x148] sm:$0xff] }
 0x12e   : > { %5190 = vmatmul.mubr.f32.gmra.mxu1 %v946_v34  ;;  %5318 = vmatprep.subr.mxu1 %v1749_v63  ;;  %v5119_v3 = vpop.f32.mrf.mxu0  ;;  %v1704_v40 = vld [vmem:[#allocation2 + $0xa] sm:$0xff] }
 0x12f   : > { %5192 = vmatprep.mubr.f32.mxu1 %v947_v58  ;;  %988 = vst [vmem:[#allocation2 + $0x91] sm:$0xff] %v955_v7  ;;  %v958_v6 = vmax.f32 %v6653_v36, 0.0  ;;  %5319 = vmatpush3.msra.mxu1 %v1749_v63  ;;  %v6664_v10 = vadd.f32 %v6514_v11, %v886_v44  ;;  %v889_v12 = vmul.f32 %v5119_v3, %v6509_v9  ;;  %v2054_v44 = vld [vmem:[#allocation6 + $0x1e0] sm:$0xff] }
 0x130   : > { %v1156_v13 = vld [vmem:[#allocation2] sm:$0xff]  ;;  %v1157_v17 = vld [vmem:[#allocation2 + $0x8] sm:$0xff]  ;;  %5320 = vmatprep.subr.mxu1 %v1748_v2  ;;  %v778_v34 = vpop.f32.mrf.mxu0  ;;  %v2050_v36 = vld [vmem:[#allocation6 + $0x1c0] sm:$0xff] }
 0x131   : > { %5266 = vmatprep.mubr.f32.mxu0 %v1156_v13  ;;  %991 = vst [vmem:[#allocation2 + $0xb1] sm:$0xff] %v958_v6  ;;  %v957_v50 = vmax.f32 %v6664_v10, 0.0  ;;  %v6673_v58 = vadd.f32 %v6514_v11, %v889_v12  ;;  %5321 = vmatpush3.msra.mxu1 %v1748_v2  ;;  %v888_v20 = vmul.f32 %v6509_v9, %v778_v34  ;;  %v6733_v13 = vld [vmem:[#allocation2 + $0x60] sm:$0xff]  ;;  %v1744_v34 = vld [vmem:[#allocation6 + $0x140] sm:$0xff]  ;;  %v2051_v10 = vld [vmem:[#allocation6 + $0x1c8] sm:$0xff] }
 0x132   : > { %5267 = vmatmul.mubr.f32.vlgmr.msra.gmra.mxu0 %v1157_v17  ;;  %5193 = vmatmul.mubr.f32.gmra.mxu1 %v948_v52  ;;  %v5122_v22 = vpop.f32.mrf.mxu0  ;;  %v6691_v52 = vld [vmem:[#allocation2 + $0x20] sm:$0xff] }
 0x133   : > { %5269 = vmatprep.mubr.f32.mxu0 %v6667_v27  ;;  %5195 = vmatprep.mubr.f32.mxu1 %v949_v16  ;;  %990 = vst [vmem:[#allocation2 + $0xa9] sm:$0xff] %v957_v50  ;;  %v960_v29 = vmax.f32 %v6673_v58, 0.0  ;;  %v6685_v30 = vadd.f32 %v6514_v11, %v888_v20  ;;  %v891_v33 = vmul.f32 %v5122_v22, %v6509_v9  ;;  %v2049_v58 = vld [vmem:[#allocation6 + $0x1b8] sm:$0xff] }
 0x134   : > { %5322 = vmatprep.subr.mxu1 %v1747_v21  ;;  %v788_v45 = vpop.f32.mrf.mxu0  ;;  %5395 = vmatpush3.msra.mxu0 %v6503_v8  ;;  %v1703_v25 = vld [vmem:[#allocation2 + $0x2] sm:$0xff] }
 0x135   : > { %993 = vst [vmem:[#allocation2 + $0xc9] sm:$0xff] %v960_v29  ;;  %v959_v5 = vmax.f32 %v6685_v30, 0.0  ;;  %v6697_v16 = vadd.f32 %v6514_v11, %v891_v33  ;;  %5323 = vmatpush3.msra.mxu1 %v1747_v21  ;;  %v890_v41 = vmul.f32 %v6509_v9, %v788_v45  ;;  %5396 = vmatprep.subr.mxu0 %v2056_v26  ;;  %v2053_v21 = vld [vmem:[#allocation6 + $0x1d8] sm:$0xff]  ;;  %v6755_v45 = vld [vmem:[#allocation2 + $0x78] sm:$0xff] }
 0x136   : > { %5270 = vmatmul.mubr.f32.gmra.mxu0 %v6691_v52  ;;  %5196 = vmatmul.mubr.f32.gmra.mxu1 %v950_v4  ;;  %v5125_v8 = vpop.f32.mrf.mxu0  ;;  %v6713_v4 = vld [vmem:[#allocation2 + $0x38] sm:$0xff] }
 0x137   : > { %5272 = vmatprep.mubr.f32.mxu0 %v6688_v37  ;;  %5198 = vmatprep.mubr.f32.mxu1 %v951_v38  ;;  %992 = vst [vmem:[#allocation2 + $0xc1] sm:$0xff] %v959_v5  ;;  %v962_v51 = vmax.f32 %v6697_v16, 0.0  ;;  %v929_v54 = vadd.f32 %v6514_v11, %v890_v41  ;;  %v893_v57 = vmul.f32 %v5125_v8, %v6509_v9  ;;  %v2052_v8 = vld [vmem:[#allocation6 + $0x1d0] sm:$0xff] }
 0x138   : > { %5324 = vmatprep.subr.mxu1 %v1746_v42  ;;  %v798_v60 = vpop.f32.mrf.mxu0  ;;  %5397 = vmatpush3.msra.mxu0 %v2056_v26  ;;  %v2048_v16 = vld [vmem:[#allocation6 + $0x1b0] sm:$0xff] }
 0x139   : > { %995 = vst [vmem:[#allocation2 + $0xe1] sm:$0xff] %v962_v51  ;;  %v6717_v28 = vmax.f32 %v929_v54, 0.0  ;;  %v6720_v38 = vadd.f32 %v6514_v11, %v893_v57  ;;  %5325 = vmatpush3.msra.mxu1 %v1746_v42  ;;  %v892_v63 = vmul.f32 %v6509_v9, %v798_v60  ;;  %5398 = vmatprep.subr.mxu0 %v2055_v49  ;;  %v1743_v42 = vld [vmem:[#allocation6 + $0x138] sm:$0xff]  ;;  %v6775_v57 = vld [vmem:[#allocation2 + $0x90] sm:$0xff]  ;;  %v6777_v60 = vld [vmem:[#allocation2 + $0x80] sm:$0xff] }
 0x13a   : > { %5273 = vmatmul.mubr.f32.gmra.mxu0 %v6713_v4  ;;  %5199 = vmatmul.mubr.f32.gmra.mxu1 %v952_v23  ;;  %v5128_v1 = vpop.f32.mrf.mxu0  ;;  %v6735_v23 = vld [vmem:[#allocation2 + $0x50] sm:$0xff] }
 0x13b   : > { %5275 = vmatprep.mubr.f32.mxu0 %v6711_v59  ;;  %5201 = vmatprep.mubr.f32.mxu1 %v953_v53  ;;  %994 = vst [vmem:[#allocation2 + $0xd9] sm:$0xff] %v6717_v28  ;;  %v964_v2 = vmax.f32 %v6720_v38, 0.0  ;;  %v931_v3 = vadd.f32 %v6514_v11, %v892_v63  ;;  %v895_v12 = vmul.f32 %v5128_v1, %v6509_v9  ;;  %v6791_v63 = vld [vmem:[#allocation2 + $0x98] sm:$0xff]  ;;  %v6800_v30 = vld [vmem:[#allocation2 + $0xb0] sm:$0xff] }
 0x13c   : > { %5326 = vmatprep.subr.mxu1 %v1745_v0  ;;  %v808_v15 = vpop.f32.mrf.mxu0  ;;  %5399 = vmatpush3.msra.mxu0 %v2055_v49  ;;  %v2047_v38 = vld [vmem:[#allocation6 + $0x1a8] sm:$0xff] }
 0x13d   : > { %997 = vst [vmem:[#allocation2 + $0xf9] sm:$0xff] %v964_v2  ;;  %v6739_v46 = vmax.f32 %v931_v3, 0.0  ;;  %v6742_v53 = vadd.f32 %v6514_v11, %v895_v12  ;;  %5327 = vmatpush3.msra.mxu1 %v1745_v0  ;;  %v894_v17 = vmul.f32 %v6509_v9, %v808_v15  ;;  %5400 = vmatprep.subr.mxu0 %v2054_v44  ;;  %v1741_v0 = vld [vmem:[#allocation6 + $0x128] sm:$0xff]  ;;  %v1738_v12 = vld [vmem:[#allocation6 + $0x110] sm:$0xff] }
 0x13e   : > { %5276 = vmatmul.mubr.f32.gmra.mxu0 %v6735_v23  ;;  %5202 = vmatmul.mubr.f32.gmra.mxu1 %v954_v43  ;;  %v5131_v20 = vpop.f32.mrf.mxu0  ;;  %v6757_v43 = vld [vmem:[#allocation2 + $0x68] sm:$0xff] }
 0x13f   : > { %5278 = vmatprep.mubr.f32.mxu0 %v6733_v13  ;;  %5204 = vmatprep.mubr.f32.mxu1 %v955_v7  ;;  %996 = vst [vmem:[#allocation2 + $0xf1] sm:$0xff] %v6739_v46  ;;  %v966_v22 = vmax.f32 %v6742_v53, 0.0  ;;  %v933_v26 = vadd.f32 %v6514_v11, %v894_v17  ;;  %v897_v33 = vmul.f32 %v5131_v20, %v6509_v9  ;;  %v6809_v1 = vld [vmem:[#allocation2 + $0xc8] sm:$0xff]  ;;  %v1737_v17 = vld [vmem:[#allocation6 + $0x108] sm:$0xff]  ;;  %v2046_v53 = vld [vmem:[#allocation6 + $0x1a0] sm:$0xff] }
 0x140   : > { %5328 = vmatprep.subr.mxu1 %v1744_v34  ;;  %v818_v35 = vpop.f32.mrf.mxu0  ;;  %5401 = vmatpush3.msra.mxu0 %v2054_v44  ;;  %v1739_v44 = vld [vmem:[#allocation6 + $0x118] sm:$0xff] }
 0x141   : > { %999 = vst [vmem:[#allocation2 + $0x111] sm:$0xff] %v966_v22  ;;  %v6761_v62 = vmax.f32 %v933_v26, 0.0  ;;  %v936_v7 = vadd.f32 %v6514_v11, %v897_v33  ;;  %5329 = vmatpush3.msra.mxu1 %v1744_v34  ;;  %v896_v41 = vmul.f32 %v6509_v9, %v818_v35  ;;  %5402 = vmatprep.subr.mxu0 %v2053_v21  ;;  %v6847_v26 = vld [vmem:[#allocation2 + $0x138] sm:$0xff]  ;;  %v6867_v33 = vld [vmem:[#allocation2 + $0x168] sm:$0xff]  ;;  %v5153_v35 = vpop.f32.mrf.mxu1 }
 0x142   : > { %5279 = vmatmul.mubr.f32.gmra.mxu0 %v6757_v43  ;;  %5205 = vmatmul.mubr.f32.gmra.mxu1 %v956_v61  ;;  %v1742_v61 = vld [vmem:[#allocation6 + $0x130] sm:$0xff] }
 0x143   : > { %5281 = vmatprep.mubr.f32.mxu0 %v6755_v45  ;;  %5207 = vmatprep.mubr.f32.mxu1 %v957_v50  ;;  %998 = vst [vmem:[#allocation2 + $0x109] sm:$0xff] %v6761_v62  ;;  %v6772_v49 = vmax.f32 %v936_v7, 0.0  ;;  %v935_v54 = vadd.f32 %v6514_v11, %v896_v41  ;;  %v6789_v50 = vld [vmem:[#allocation2 + $0xa8] sm:$0xff]  ;;  %v6818_v3 = vld [vmem:[#allocation2 + $0xe0] sm:$0xff]  ;;  %v1123_v41 = vmul.f32 %v5153_v35, %v6509_v9 }
 0x144   : > { %5330 = vmatprep.subr.mxu1 %v1743_v42  ;;  %5403 = vmatpush3.msra.mxu0 %v2053_v21  ;;  %v1736_v21 = vld [vmem:[#allocation6 + $0x100] sm:$0xff]  ;;  %v6870_v7 = vld [vmem:[#allocation2 + $0x1a] sm:$0xff] }
 0x145   : > { %1001 = vst [vmem:[#allocation2 + $0x129] sm:$0xff] %v6772_v49  ;;  %v6780_v56 = vmax.f32 %v935_v54, 0.0  ;;  %5331 = vmatpush3.msra.mxu1 %v1743_v42  ;;  %5404 = vmatprep.subr.mxu0 %v2052_v8  ;;  %v6874_v42 = vld [vmem:[#allocation2 + $0x170] sm:$0xff]  ;;  %v1134_v54 = vadd.f32 %v6514_v11, %v1123_v41  ;;  %v6942_v35 = vld [vmem:[#allocation2 + $0xda] sm:$0xff] }
 0x146   : > { %5282 = vmatmul.mubr.f32.gmra.mxu0 %v6777_v60  ;;  %5208 = vmatmul.mubr.f32.gmra.mxu1 %v958_v6  ;;  %v6798_v6 = vld [vmem:[#allocation2 + $0xc0] sm:$0xff]  ;;  %v6827_v15 = vld [vmem:[#allocation2 + $0xf8] sm:$0xff]  ;;  %v2662_v41 = vld [vmem:[#allocation6 + $0x2c0] sm:$0xff] }
 0x147   : > { %5284 = vmatprep.mubr.f32.mxu0 %v6775_v57  ;;  %5210 = vmatprep.mubr.f32.mxu1 %v959_v5  ;;  %1000 = vst [vmem:[#allocation2 + $0x121] sm:$0xff] %v6780_v56  ;;  %v1740_v5 = vld [vmem:[#allocation6 + $0x120] sm:$0xff] }
 0x148   : > { %5332 = vmatprep.subr.mxu1 %v1742_v61  ;;  %5405 = vmatpush3.msra.mxu0 %v2052_v8  ;;  %v2361_v8 = vld [vmem:[#allocation6 + $0x268] sm:$0xff] }
 0x149   : > { %5333 = vmatpush3.msra.mxu1 %v1742_v61  ;;  %5406 = vmatprep.subr.mxu0 %v2051_v10  ;;  %v1104_v61 = vpop.f32.mrf.mxu1 }
 0x14a   : > { %5285 = vmatmul.mubr.f32.gmra.mxu0 %v6791_v63  ;;  %5211 = vmatmul.mubr.f32.gmra.mxu1 %v960_v29  ;;  %v6807_v29 = vld [vmem:[#allocation2 + $0xd8] sm:$0xff]  ;;  %v6836_v20 = vld [vmem:[#allocation2 + $0x110] sm:$0xff] }
 0x14b   : > { %5287 = vmatprep.mubr.f32.mxu0 %v6789_v50  ;;  %5213 = vmatprep.mubr.f32.mxu1 %v6717_v28 }
 0x14c   : > { %5334 = vmatprep.subr.mxu1 %v1741_v0  ;;  %5407 = vmatpush3.msra.mxu0 %v2051_v10  ;;  %v6880_v10 = vld [vmem:[#allocation2 + $0x22] sm:$0xff] }
 0x14d   : > { %5335 = vmatpush3.msra.mxu1 %v1741_v0  ;;  %5408 = vmatprep.subr.mxu0 %v2050_v36  ;;  %v2360_v0 = vld [vmem:[#allocation6 + $0x260] sm:$0xff] }
 0x14e   : > { %5288 = vmatmul.mubr.f32.gmra.mxu0 %v6800_v30  ;;  %5214 = vmatmul.mubr.f32.gmra.mxu1 %v962_v51  ;;  %v6816_v51 = vld [vmem:[#allocation2 + $0xf0] sm:$0xff]  ;;  %v6834_v34 = vld [vmem:[#allocation2 + $0x120] sm:$0xff]  ;;  %v6844_v19 = vld [vmem:[#allocation2 + $0x128] sm:$0xff] }
 0x14f   : > { %5290 = vmatprep.mubr.f32.mxu0 %v6798_v6  ;;  %5216 = vmatprep.mubr.f32.mxu1 %v6739_v46 }
 0x150   : > { %5336 = vmatprep.subr.mxu1 %v1740_v5  ;;  %5409 = vmatpush3.msra.mxu0 %v2050_v36  ;;  %v1122_v36 = vmul.f32 %v6509_v9, %v1104_v61  ;;  %v2358_v9 = vld [vmem:[#allocation6 + $0x250] sm:$0xff]  ;;  %v6958_v61 = vld [vmem:[#allocation2 + $0x10a] sm:$0xff] }
 0x151   : > { %5337 = vmatpush3.msra.mxu1 %v1740_v5  ;;  %5410 = vmatprep.subr.mxu0 %v2049_v58  ;;  %v6884_v5 = vld [vmem:[#allocation2 + $0x32] sm:$0xff] }
 0x152   : > { %5291 = vmatmul.mubr.f32.gmra.mxu0 %v6809_v1  ;;  %5217 = vmatmul.mubr.f32.gmra.mxu1 %v964_v2  ;;  %v6825_v2 = vld [vmem:[#allocation2 + $0x108] sm:$0xff] }
 0x153   : > { %5293 = vmatprep.mubr.f32.mxu0 %v6807_v29  ;;  %5219 = vmatprep.mubr.f32.mxu1 %v6761_v62 }
 0x154   : > { %5338 = vmatprep.subr.mxu1 %v1739_v44  ;;  %5411 = vmatpush3.msra.mxu0 %v2049_v58  ;;  %v1138_v58 = vmax.f32 %v1134_v54, 0.0  ;;  %v2661_v54 = vld [vmem:[#allocation6 + $0x2b8] sm:$0xff] }
 0x155   : > { %5339 = vmatpush3.msra.mxu1 %v1739_v44  ;;  %5412 = vmatprep.subr.mxu0 %v2048_v16  ;;  %v2359_v44 = vld [vmem:[#allocation6 + $0x258] sm:$0xff] }
 0x156   : > { %5294 = vmatmul.mubr.f32.gmra.mxu0 %v6818_v3  ;;  %5220 = vmatmul.mubr.f32.gmra.mxu1 %v966_v22  ;;  %v2045_v22 = vld [vmem:[#allocation6 + $0x198] sm:$0xff] }
 0x157   : > { %5296 = vmatprep.mubr.f32.mxu0 %v6816_v51  ;;  %5222 = vmatprep.mubr.f32.mxu1 %v6780_v56 }
 0x158   : > { %5413 = vmatpush3.msra.mxu0 %v2048_v16  ;;  %5340 = vmatprep.subr.mxu1 %v1738_v12  ;;  %v1133_v16 = vadd.f32 %v6514_v11, %v1122_v36  ;;  %v2357_v11 = vld [vmem:[#allocation6 + $0x248] sm:$0xff]  ;;  %v6966_v36 = vld [vmem:[#allocation2 + $0x122] sm:$0xff] }
 0x159   : > { %5414 = vmatprep.subr.mxu0 %v2047_v38  ;;  %5341 = vmatpush3.msra.mxu1 %v1738_v12  ;;  %v6890_v12 = vld [vmem:[#allocation2 + $0x3a] sm:$0xff] }
 0x15a   : > { %5297 = vmatmul.mubr.f32.gmra.mxu0 %v6827_v15  ;;  %5223 = vmatmul.mubr.f32.gmra.mxu1 %v6772_v49 }
 0x15b   : > { %5299 = vmatprep.mubr.f32.mxu0 %v6825_v2  ;;  %5225 = vmatprep.mubr.f32.mxu1 %v969_v24  ;;  %v2363_v24 = vld [vmem:[#allocation6 + $0x278] sm:$0xff] }
 0x15c   : > { %5415 = vmatpush3.msra.mxu0 %v2047_v38  ;;  %5342 = vmatprep.subr.mxu1 %v1737_v17  ;;  %v1137_v38 = vmax.f32 %v1133_v16, 0.0  ;;  %v2657_v16 = vld [vmem:[#allocation6 + $0x298] sm:$0xff] }
 0x15d   : > { %5416 = vmatprep.subr.mxu0 %v2046_v53  ;;  %5343 = vmatpush3.msra.mxu1 %v1737_v17  ;;  %v6893_v17 = vld [vmem:[#allocation2 + $0x4a] sm:$0xff] }
 0x15e   : > { %5300 = vmatmul.mubr.f32.gmra.mxu0 %v6836_v20  ;;  %5226 = vmatmul.mubr.f32.gmra.mxu1 %v970_v18  ;;  %v6854_v18 = vld [vmem:[#allocation2 + $0x140] sm:$0xff] }
 0x15f   : > { %5302 = vmatprep.mubr.f32.mxu0 %v6834_v34  ;;  %5228 = vmatprep.mubr.f32.mxu1 %v971_v39  ;;  %v6857_v39 = vld [vmem:[#allocation2 + $0x150] sm:$0xff] }
 0x160   : > { %5417 = vmatpush3.msra.mxu0 %v2046_v53  ;;  %5344 = vmatprep.subr.mxu1 %v1736_v21  ;;  %v2356_v53 = vld [vmem:[#allocation6 + $0x240] sm:$0xff] }
 0x161   : > { %5418 = vmatprep.subr.mxu0 %v2045_v22  ;;  %5345 = vmatpush3.msra.mxu1 %v1736_v21  ;;  %v6901_v21 = vld [vmem:[#allocation2 + $0x62] sm:$0xff] }
 0x162   : > { %5303 = vmatmul.mubr.f32.gmra.mxu0 %v6844_v19  ;;  %5229 = vmatmul.mubr.f32.gmra.mxu1 %v972_v31  ;;  %v2042_v31 = vld [vmem:[#allocation6 + $0x180] sm:$0xff] }
 0x163   : > { %5305 = vmatprep.mubr.f32.mxu0 %v6847_v26  ;;  %5231 = vmatprep.mubr.f32.mxu1 %v973_v55  ;;  %v6864_v55 = vld [vmem:[#allocation6 + $0x2f8] sm:$0xff] }
 0x164   : > { %5419 = vmatpush3.msra.mxu0 %v2045_v22  ;;  %5474 = vmatprep.subr.mxu1 %v2363_v24  ;;  %v2355_v22 = vld [vmem:[#allocation6 + $0x238] sm:$0xff] }
 0x165   : > { %5420 = vmatprep.subr.mxu0 %v2044_v14 }
 0x166   : > { %5306 = vmatmul.mubr.f32.gmra.mxu0 %v6854_v18  ;;  %5232 = vmatmul.mubr.f32.gmra.mxu1 %v974_v47  ;;  %v2362_v47 = vld [vmem:[#allocation6 + $0x270] sm:$0xff] }
 0x167   : > { %5308 = vmatprep.mubr.f32.mxu0 %v6857_v39  ;;  %5421 = vmatpush3.msra.mxu0 %v2044_v14  ;;  %v2668_v14 = vld [vmem:[#allocation6 + $0x2f0] sm:$0xff] }
 0x168   : > { %5422 = vmatprep.subr.mxu0 %v2043_v32  ;;  %5346 = vmatprep.mubr.f32.mxu1 %v1703_v25  ;;  %v2353_v25 = vld [vmem:[#allocation6 + $0x228] sm:$0xff] }
 0x169   : > { %5423 = vmatpush3.msra.mxu0 %v2043_v32  ;;  %v6918_v32 = vld [vmem:[#allocation2 + $0x92] sm:$0xff] }
 0x16a   : > { %5309 = vmatmul.mubr.f32.gmra.mxu0 %v6862_v48  ;;  %5424 = vmatprep.subr.mxu0 %v2042_v31 }
 0x16b   : > { %5311 = vmatprep.mubr.f32.mxu0 %v6867_v33  ;;  %5425 = vmatpush3.msra.mxu0 %v2042_v31  ;;  %v6926_v31 = vld [vmem:[#allocation2 + $0xaa] sm:$0xff] }
 0x16c   : > { %5347 = vmatmul.mubr.f32.vlgmr.msra.gmra.mxu1 %v1704_v40  ;;  %5554 = vmatprep.subr.mxu0 %v6864_v55  ;;  %v6934_v40 = vld [vmem:[#allocation2 + $0xc2] sm:$0xff] }
 0x16d   : > { %5349 = vmatprep.mubr.f32.mxu1 %v6870_v7  ;;  %5475 = vmatpush3.msra.mxu1 %v2363_v24  ;;  %v6909_v24 = vld [vmem:[#allocation2 + $0x7a] sm:$0xff] }
 0x16e   : > { %5312 = vmatmul.mubr.f32.gmra.mxu0 %v6874_v42  ;;  %5476 = vmatprep.subr.mxu1 %v2362_v47 }
 0x16f   : > { %5426 = vmatprep.mubr.f32.mxu0 %v6667_v27  ;;  %5477 = vmatpush3.msra.mxu1 %v2362_v47  ;;  %v1152_v27 = vmul.f32 0.0, %v1138_v58  ;;  %v2664_v47 = vld [vmem:[#allocation6 + $0x2d0] sm:$0xff]  ;;  %v2658_v58 = vld [vmem:[#allocation6 + $0x2a0] sm:$0xff] }
 0x170   : > { %5350 = vmatmul.mubr.f32.gmra.mxu1 %v6880_v10  ;;  %5478 = vmatprep.subr.mxu1 %v2361_v8 }
 0x171   : > { %5352 = vmatprep.mubr.f32.mxu1 %v6884_v5  ;;  %5479 = vmatpush3.msra.mxu1 %v2361_v8  ;;  %1155 = vst [vmem:[#allocation2 + $0x1a1] sm:$0xff] %v1152_v27  ;;  %v6950_v8 = vld [vmem:[#allocation2 + $0xf2] sm:$0xff] }
 0x172   : > { %5427 = vmatmul.mubr.f32.vlgmr.msra.gmra.mxu0 %v6691_v52  ;;  %5480 = vmatprep.subr.mxu1 %v2360_v0  ;;  %v1151_v52 = vmul.f32 0.0, %v1137_v38  ;;  %v6982_v27 = vld [vmem:[#allocation2 + $0x152] sm:$0xff]  ;;  %v6990_v38 = vld [vmem:[#allocation2 + $0x16a] sm:$0xff] }
 0x173   : > { %5429 = vmatprep.mubr.f32.mxu0 %v6688_v37  ;;  %5481 = vmatpush3.msra.mxu1 %v2360_v0  ;;  %v6898_v37 = vld [vmem:[#allocation2 + $0x52] sm:$0xff]  ;;  %v2660_v0 = vld [vmem:[#allocation6 + $0x2b0] sm:$0xff] }
 0x174   : > { %5353 = vmatmul.mubr.f32.gmra.mxu1 %v6890_v12  ;;  %5482 = vmatprep.subr.mxu1 %v2359_v44  ;;  %1154 = vst [vmem:[#allocation2 + $0x199] sm:$0xff] %v1151_v52  ;;  %v2315_v52 = vld [vmem:[#allocation2 + $0x19] sm:$0xff] }
 0x175   : > { %5355 = vmatprep.mubr.f32.mxu1 %v6893_v17  ;;  %5483 = vmatpush3.msra.mxu1 %v2359_v44  ;;  %v6974_v44 = vld [vmem:[#allocation2 + $0x13a] sm:$0xff] }
 0x176   : > { %5430 = vmatmul.mubr.f32.gmra.mxu0 %v6713_v4  ;;  %5484 = vmatprep.subr.mxu1 %v2358_v9  ;;  %v2354_v4 = vld [vmem:[#allocation6 + $0x230] sm:$0xff] }
 0x177   : > { %5432 = vmatprep.mubr.f32.mxu0 %v6711_v59  ;;  %5485 = vmatpush3.msra.mxu1 %v2358_v9  ;;  %v6906_v59 = vld [vmem:[#allocation2 + $0x6a] sm:$0xff]  ;;  %v2656_v9 = vld [vmem:[#allocation6 + $0x290] sm:$0xff] }
 0x178   : > { %5356 = vmatmul.mubr.f32.gmra.mxu1 %v6898_v37  ;;  %5486 = vmatprep.subr.mxu1 %v2357_v11 }
 0x179   : > { %5358 = vmatprep.mubr.f32.mxu1 %v6901_v21  ;;  %5487 = vmatpush3.msra.mxu1 %v2357_v11  ;;  %v2654_v11 = vld [vmem:[#allocation6 + $0x280] sm:$0xff] }
 0x17a   : > { %5433 = vmatmul.mubr.f32.gmra.mxu0 %v6735_v23  ;;  %5488 = vmatprep.subr.mxu1 %v2356_v53  ;;  %v6914_v23 = vld [vmem:[#allocation2 + $0x82] sm:$0xff] }
 0x17b   : > { %5435 = vmatprep.mubr.f32.mxu0 %v6733_v13  ;;  %5489 = vmatpush3.msra.mxu1 %v2356_v53  ;;  %v2667_v13 = vld [vmem:[#allocation6 + $0x2e8] sm:$0xff]  ;;  %v6998_v53 = vld [vmem:[#allocation6 + $0x3f8] sm:$0xff] }
 0x17c   : > { %5359 = vmatmul.mubr.f32.gmra.mxu1 %v6906_v59  ;;  %5490 = vmatprep.subr.mxu1 %v2355_v22 }
 0x17d   : > { %5361 = vmatprep.mubr.f32.mxu1 %v6909_v24  ;;  %5491 = vmatpush3.msra.mxu1 %v2355_v22  ;;  %v7001_v22 = vld [vmem:[#allocation2 + $0x180] sm:$0xff] }
 0x17e   : > { %5436 = vmatmul.mubr.f32.gmra.mxu0 %v6757_v43  ;;  %5492 = vmatprep.subr.mxu1 %v2354_v4  ;;  %v2666_v43 = vld [vmem:[#allocation6 + $0x2e0] sm:$0xff] }
 0x17f   : > { %5438 = vmatprep.mubr.f32.mxu0 %v6755_v45  ;;  %5555 = vmatpush3.msra.mxu0 %v6864_v55  ;;  %v6923_v45 = vld [vmem:[#allocation2 + $0x9a] sm:$0xff]  ;;  %v2665_v55 = vld [vmem:[#allocation6 + $0x2d8] sm:$0xff] }
 0x180   : > { %5362 = vmatmul.mubr.f32.gmra.mxu1 %v6914_v23  ;;  %5556 = vmatprep.subr.mxu0 %v2668_v14 }
 0x181   : > { %5364 = vmatprep.mubr.f32.mxu1 %v6918_v32  ;;  %5557 = vmatpush3.msra.mxu0 %v2668_v14  ;;  %v7007_v14 = vld [vmem:[#allocation2 + $0x188] sm:$0xff] }
 0x182   : > { %5439 = vmatmul.mubr.f32.gmra.mxu0 %v6777_v60  ;;  %5558 = vmatprep.subr.mxu0 %v2667_v13  ;;  %v6931_v60 = vld [vmem:[#allocation2 + $0xb2] sm:$0xff] }
 0x183   : > { %5441 = vmatprep.mubr.f32.mxu0 %v6775_v57  ;;  %5493 = vmatpush3.msra.mxu1 %v2354_v4  ;;  %v2352_v57 = vld [vmem:[#allocation6 + $0x220] sm:$0xff] }
 0x184   : > { %5365 = vmatmul.mubr.f32.gmra.mxu1 %v6923_v45  ;;  %5559 = vmatpush3.msra.mxu0 %v2667_v13  ;;  %v7004_v4 = vld [vmem:[#allocation2 + $0x31] sm:$0xff] }
 0x185   : > { %5367 = vmatprep.mubr.f32.mxu1 %v6926_v31  ;;  %5560 = vmatprep.subr.mxu0 %v2666_v43  ;;  %v2974_v13 = vld [vmem:[#allocation6 + $0x368] sm:$0xff] }
 0x186   : > { %5442 = vmatmul.mubr.f32.gmra.mxu0 %v6791_v63  ;;  %5494 = vmatprep.subr.mxu1 %v2353_v25  ;;  %v6939_v63 = vld [vmem:[#allocation2 + $0xca] sm:$0xff] }
 0x187   : > { %5444 = vmatprep.mubr.f32.mxu0 %v6789_v50  ;;  %5561 = vmatpush3.msra.mxu0 %v2666_v43  ;;  %v2663_v50 = vld [vmem:[#allocation6 + $0x2c8] sm:$0xff]  ;;  %v2973_v43 = vld [vmem:[#allocation6 + $0x360] sm:$0xff] }
 0x188   : > { %5368 = vmatmul.mubr.f32.gmra.mxu1 %v6931_v60  ;;  %5562 = vmatprep.subr.mxu0 %v2665_v55 }
 0x189   : > { %5370 = vmatprep.mubr.f32.mxu1 %v6934_v40  ;;  %5495 = vmatpush3.msra.mxu1 %v2353_v25  ;;  %v7015_v25 = vld [vmem:[#allocation2 + $0x49] sm:$0xff] }
 0x18a   : > { %5445 = vmatmul.mubr.f32.gmra.mxu0 %v6800_v30  ;;  %5496 = vmatprep.subr.mxu1 %v2352_v57  ;;  %v6947_v30 = vld [vmem:[#allocation2 + $0xe2] sm:$0xff] }
 0x18b   : > { %5447 = vmatprep.mubr.f32.mxu0 %v6798_v6  ;;  %5563 = vmatpush3.msra.mxu0 %v2665_v55  ;;  %v2351_v6 = vld [vmem:[#allocation6 + $0x218] sm:$0xff] }
 0x18c   : > { %5371 = vmatmul.mubr.f32.gmra.mxu1 %v6939_v63  ;;  %5564 = vmatprep.subr.mxu0 %v2664_v47  ;;  %v2972_v55 = vld [vmem:[#allocation6 + $0x358] sm:$0xff] }
 0x18d   : > { %5373 = vmatprep.mubr.f32.mxu1 %v6942_v35  ;;  %5565 = vmatpush3.msra.mxu0 %v2664_v47  ;;  %v7023_v47 = vld [vmem:[#allocation2 + $0x61] sm:$0xff] }
 0x18e   : > { %5448 = vmatmul.mubr.f32.gmra.mxu0 %v6809_v1  ;;  %5566 = vmatprep.subr.mxu0 %v2663_v50  ;;  %v6955_v1 = vld [vmem:[#allocation2 + $0xfa] sm:$0xff] }
 0x18f   : > { %5450 = vmatprep.mubr.f32.mxu0 %v6807_v29  ;;  %5497 = vmatpush3.msra.mxu1 %v2352_v57  ;;  %v2350_v29 = vld [vmem:[#allocation6 + $0x210] sm:$0xff]  ;;  %v7020_v57 = vld [vmem:[#allocation2 + $0x51] sm:$0xff] }
 0x190   : > { %5374 = vmatmul.mubr.f32.gmra.mxu1 %v6947_v30  ;;  %5567 = vmatpush3.msra.mxu0 %v2663_v50  ;;  %v2970_v50 = vld [vmem:[#allocation6 + $0x348] sm:$0xff] }
 0x191   : > { %5376 = vmatprep.mubr.f32.mxu1 %v6950_v8  ;;  %5568 = vmatprep.subr.mxu0 %v2662_v41 }
 0x192   : > { %5451 = vmatmul.mubr.f32.gmra.mxu0 %v6818_v3  ;;  %5498 = vmatprep.subr.mxu1 %v2351_v6  ;;  %v6963_v3 = vld [vmem:[#allocation2 + $0x112] sm:$0xff] }
 0x193   : > { %5453 = vmatprep.mubr.f32.mxu0 %v6816_v51  ;;  %5569 = vmatpush3.msra.mxu0 %v2662_v41  ;;  %v2659_v51 = vld [vmem:[#allocation6 + $0x2a8] sm:$0xff] }
 0x194   : > { %5377 = vmatmul.mubr.f32.gmra.mxu1 %v6955_v1  ;;  %5570 = vmatprep.subr.mxu0 %v2661_v54  ;;  %v7031_v41 = vld [vmem:[#allocation2 + $0x79] sm:$0xff] }
 0x195   : > { %5379 = vmatprep.mubr.f32.mxu1 %v6958_v61  ;;  %5499 = vmatpush3.msra.mxu1 %v2351_v6  ;;  %v2968_v6 = vld [vmem:[#allocation6 + $0x338] sm:$0xff] }
 0x196   : > { %5454 = vmatmul.mubr.f32.gmra.mxu0 %v6827_v15  ;;  %5500 = vmatprep.subr.mxu1 %v2350_v29  ;;  %v6971_v15 = vld [vmem:[#allocation2 + $0x12a] sm:$0xff] }
 0x197   : > { %5456 = vmatprep.mubr.f32.mxu0 %v6825_v2  ;;  %5571 = vmatpush3.msra.mxu0 %v2661_v54  ;;  %v2349_v2 = vld [vmem:[#allocation6 + $0x208] sm:$0xff] }
 0x198   : > { %5380 = vmatmul.mubr.f32.gmra.mxu1 %v6963_v3  ;;  %5572 = vmatprep.subr.mxu0 %v2660_v0  ;;  %v7039_v54 = vld [vmem:[#allocation2 + $0x91] sm:$0xff] }
 0x199   : > { %5382 = vmatprep.mubr.f32.mxu1 %v6966_v36  ;;  %5573 = vmatpush3.msra.mxu0 %v2660_v0  ;;  %v7048_v0 = vld [vmem:[#allocation2 + $0xa9] sm:$0xff] }
 0x19a   : > { %5457 = vmatmul.mubr.f32.gmra.mxu0 %v6836_v20  ;;  %5574 = vmatprep.subr.mxu0 %v2659_v51  ;;  %v6979_v20 = vld [vmem:[#allocation2 + $0x142] sm:$0xff] }
 0x19b   : > { %5459 = vmatprep.mubr.f32.mxu0 %v6834_v34  ;;  %5501 = vmatpush3.msra.mxu1 %v2350_v29  ;;  %v2348_v34 = vld [vmem:[#allocation6 + $0x200] sm:$0xff]  ;;  %v3281_v29 = vld [vmem:[#allocation6 + $0x3f0] sm:$0xff] }
 0x19c   : > { %5383 = vmatmul.mubr.f32.gmra.mxu1 %v6971_v15  ;;  %5575 = vmatpush3.msra.mxu0 %v2659_v51  ;;  %v2966_v51 = vld [vmem:[#allocation6 + $0x328] sm:$0xff] }
 0x19d   : > { %5385 = vmatprep.mubr.f32.mxu1 %v6974_v44  ;;  %5576 = vmatprep.subr.mxu0 %v2658_v58 }
 0x19e   : > { %5460 = vmatmul.mubr.f32.gmra.mxu0 %v6844_v19  ;;  %5502 = vmatprep.subr.mxu1 %v2349_v2  ;;  %v6987_v19 = vld [vmem:[#allocation2 + $0x15a] sm:$0xff] }
 0x19f   : > { %5462 = vmatprep.mubr.f32.mxu0 %v6847_v26  ;;  %5577 = vmatpush3.msra.mxu0 %v2658_v58  ;;  %v2655_v26 = vld [vmem:[#allocation6 + $0x288] sm:$0xff]  ;;  %v7056_v58 = vld [vmem:[#allocation2 + $0xc1] sm:$0xff] }
 0x1a0   : > { %5386 = vmatmul.mubr.f32.gmra.mxu1 %v6979_v20  ;;  %5578 = vmatprep.subr.mxu0 %v2657_v16 }
 0x1a1   : > { %5388 = vmatprep.mubr.f32.mxu1 %v6982_v27  ;;  %5503 = vmatpush3.msra.mxu1 %v2349_v2  ;;  %v3278_v2 = vld [vmem:[#allocation6 + $0x3d8] sm:$0xff] }
 0x1a2   : > { %5463 = vmatmul.mubr.f32.gmra.mxu0 %v6854_v18  ;;  %5504 = vmatprep.subr.mxu1 %v2348_v34  ;;  %v6995_v18 = vld [vmem:[#allocation2 + $0x172] sm:$0xff] }
 0x1a3   : > { %5465 = vmatprep.mubr.f32.mxu0 %v6857_v39  ;;  %5579 = vmatpush3.msra.mxu0 %v2657_v16  ;;  %v2976_v39 = vld [vmem:[#allocation6 + $0x378] sm:$0xff]  ;;  %v3277_v16 = vld [vmem:[#allocation6 + $0x3d0] sm:$0xff] }
 0x1a4   : > { %5389 = vmatmul.mubr.f32.gmra.mxu1 %v6987_v19  ;;  %5580 = vmatprep.subr.mxu0 %v2656_v9 }
 0x1a5   : > { %5391 = vmatprep.mubr.f32.mxu1 %v6990_v38  ;;  %5581 = vmatpush3.msra.mxu0 %v2656_v9  ;;  %v7102_v9 = vld [vmem:[#allocation2 + $0x169] sm:$0xff] }
 0x1a6   : > { %5466 = vmatmul.mubr.f32.gmra.mxu0 %v6862_v48  ;;  %5582 = vmatprep.subr.mxu0 %v2655_v26  ;;  %v2316_v48 = vld [vmem:[#allocation2 + $0x21] sm:$0xff] }
 0x1a7   : > { %5468 = vmatprep.mubr.f32.mxu0 %v6867_v33  ;;  %5505 = vmatpush3.msra.mxu1 %v2348_v34  ;;  %v2975_v33 = vld [vmem:[#allocation6 + $0x370] sm:$0xff]  ;;  %v3274_v34 = vld [vmem:[#allocation6 + $0x3b8] sm:$0xff] }
 0x1a8   : > { %5392 = vmatmul.mubr.f32.gmra.mxu1 %v6995_v18  ;;  %5583 = vmatpush3.msra.mxu0 %v2655_v26  ;;  %v3269_v26 = vld [vmem:[#allocation6 + $0x390] sm:$0xff] }
 0x1a9   : > { %5506 = vmatprep.mubr.f32.mxu1 %v2315_v52  ;;  %5584 = vmatprep.subr.mxu0 %v2654_v11  ;;  %v2928_v52 = vld [vmem:[#allocation2 + $0x30] sm:$0xff] }
 0x1aa   : > { %5469 = vmatmul.mubr.f32.gmra.mxu0 %v6874_v42  ;;  %5634 = vmatprep.subr.mxu1 %v2976_v39  ;;  %v7012_v42 = vld [vmem:[#allocation2 + $0x39] sm:$0xff] }
 0x1ab   : > { %5471 = vmatprep.mubr.f32.mxu0 %v7001_v22  ;;  %5585 = vmatpush3.msra.mxu0 %v2654_v11  ;;  %v7110_v11 = vld [vmem:[#allocation2 + $0x181] sm:$0xff] }
 0x1ac   : > { %5507 = vmatmul.mubr.f32.vlgmr.msra.gmra.mxu1 %v2316_v48  ;;  %5714 = vmatprep.subr.mxu0 %v6998_v53 }
 0x1ad   : > { %5509 = vmatprep.mubr.f32.mxu1 %v7004_v4  ;;  %5635 = vmatpush3.msra.mxu1 %v2976_v39  ;;  %v3267_v39 = vld [vmem:[#allocation6 + $0x380] sm:$0xff] }
 0x1ae   : > { %5472 = vmatmul.mubr.f32.gmra.mxu0 %v7007_v14  ;;  %5636 = vmatprep.subr.mxu1 %v2975_v33 }
 0x1af   : > { %5586 = vmatprep.mubr.f32.mxu0 %v6870_v7  ;;  %5637 = vmatpush3.msra.mxu1 %v2975_v33  ;;  %v2971_v7 = vld [vmem:[#allocation6 + $0x350] sm:$0xff]  ;;  %v2930_v33 = vld [vmem:[#allocation2 + $0x48] sm:$0xff] }
 0x1b0   : > { %5510 = vmatmul.mubr.f32.gmra.mxu1 %v7012_v42  ;;  %5638 = vmatprep.subr.mxu1 %v2974_v13 }
 0x1b1   : > { %5512 = vmatprep.mubr.f32.mxu1 %v7015_v25  ;;  %5639 = vmatpush3.msra.mxu1 %v2974_v13 }
 0x1b2   : > { %5587 = vmatmul.mubr.f32.vlgmr.msra.gmra.mxu0 %v6880_v10  ;;  %5640 = vmatprep.subr.mxu1 %v2973_v43  ;;  %v7028_v10 = vld [vmem:[#allocation2 + $0x69] sm:$0xff] }
 0x1b3   : > { %5589 = vmatprep.mubr.f32.mxu0 %v6884_v5  ;;  %5641 = vmatpush3.msra.mxu1 %v2973_v43  ;;  %v2969_v5 = vld [vmem:[#allocation6 + $0x340] sm:$0xff] }
 0x1b4   : > { %5513 = vmatmul.mubr.f32.gmra.mxu1 %v7020_v57  ;;  %5642 = vmatprep.subr.mxu1 %v2972_v55  ;;  %v7122_v43 = vld [vmem:[#allocation2 + $0x18a] sm:$0xff] }
 0x1b5   : > { %5515 = vmatprep.mubr.f32.mxu1 %v7023_v47  ;;  %5643 = vmatpush3.msra.mxu1 %v2972_v55  ;;  %v3586_v55 = vld [vmem:[#allocation6 + $0x468] sm:$0xff] }
 0x1b6   : > { %5590 = vmatmul.mubr.f32.gmra.mxu0 %v6890_v12  ;;  %5644 = vmatprep.subr.mxu1 %v2971_v7  ;;  %v7036_v12 = vld [vmem:[#allocation2 + $0x81] sm:$0xff] }
 0x1b7   : > { %5592 = vmatprep.mubr.f32.mxu0 %v6893_v17  ;;  %5645 = vmatpush3.msra.mxu1 %v2971_v7  ;;  %v2967_v17 = vld [vmem:[#allocation6 + $0x330] sm:$0xff]  ;;  %v2931_v7 = vld [vmem:[#allocation2 + $0x50] sm:$0xff] }
 0x1b8   : > { %5516 = vmatmul.mubr.f32.gmra.mxu1 %v7028_v10  ;;  %5646 = vmatprep.subr.mxu1 %v2970_v50 }
 0x1b9   : > { %5518 = vmatprep.mubr.f32.mxu1 %v7031_v41  ;;  %5647 = vmatpush3.msra.mxu1 %v2970_v50  ;;  %v3585_v50 = vld [vmem:[#allocation6 + $0x460] sm:$0xff] }
 0x1ba   : > { %5593 = vmatmul.mubr.f32.gmra.mxu0 %v6898_v37  ;;  %5648 = vmatprep.subr.mxu1 %v2969_v5  ;;  %v7044_v37 = vld [vmem:[#allocation2 + $0x99] sm:$0xff] }
 0x1bb   : > { %5595 = vmatprep.mubr.f32.mxu0 %v6901_v21  ;;  %5649 = vmatpush3.msra.mxu1 %v2969_v5  ;;  %v3280_v21 = vld [vmem:[#allocation6 + $0x3e8] sm:$0xff]  ;;  %v2932_v5 = vld [vmem:[#allocation2 + $0x60] sm:$0xff] }
 0x1bc   : > { %5519 = vmatmul.mubr.f32.gmra.mxu1 %v7036_v12  ;;  %5650 = vmatprep.subr.mxu1 %v2968_v6 }
 0x1bd   : > { %5521 = vmatprep.mubr.f32.mxu1 %v7039_v54  ;;  %5651 = vmatpush3.msra.mxu1 %v2968_v6 }
 0x1be   : > { %5596 = vmatmul.mubr.f32.gmra.mxu0 %v6906_v59  ;;  %5652 = vmatprep.subr.mxu1 %v2967_v17  ;;  %v3279_v59 = vld [vmem:[#allocation6 + $0x3e0] sm:$0xff] }
 0x1bf   : > { %5598 = vmatprep.mubr.f32.mxu0 %v6909_v24  ;;  %5715 = vmatpush3.msra.mxu0 %v6998_v53  ;;  %v7053_v24 = vld [vmem:[#allocation2 + $0xb1] sm:$0xff]  ;;  %v7119_v53 = vld [vmem:[#allocation2 + $0x182] sm:$0xff] }
 0x1c0   : > { %5522 = vmatmul.mubr.f32.gmra.mxu1 %v7044_v37  ;;  %5716 = vmatprep.subr.mxu0 %v3281_v29 }
 0x1c1   : > { %5524 = vmatprep.mubr.f32.mxu1 %v7048_v0  ;;  %5717 = vmatpush3.msra.mxu0 %v3281_v29 }
 0x1c2   : > { %5599 = vmatmul.mubr.f32.gmra.mxu0 %v6914_v23  ;;  %5718 = vmatprep.subr.mxu0 %v3280_v21  ;;  %v7061_v23 = vld [vmem:[#allocation2 + $0xc9] sm:$0xff] }
 0x1c3   : > { %5601 = vmatprep.mubr.f32.mxu0 %v6918_v32  ;;  %5653 = vmatpush3.msra.mxu1 %v2967_v17  ;;  %v2965_v32 = vld [vmem:[#allocation6 + $0x320] sm:$0xff]  ;;  %v3584_v17 = vld [vmem:[#allocation6 + $0x458] sm:$0xff] }
 0x1c4   : > { %5525 = vmatmul.mubr.f32.gmra.mxu1 %v7053_v24  ;;  %5719 = vmatpush3.msra.mxu0 %v3280_v21 }
 0x1c5   : > { %5527 = vmatprep.mubr.f32.mxu1 %v7056_v58  ;;  %5720 = vmatprep.subr.mxu0 %v3279_v59 }
 0x1c6   : > { %5602 = vmatmul.mubr.f32.gmra.mxu0 %v6923_v45  ;;  %5654 = vmatprep.subr.mxu1 %v2966_v51  ;;  %v7067_v45 = vld [vmem:[#allocation2 + $0xe1] sm:$0xff] }
 0x1c7   : > { %5604 = vmatprep.mubr.f32.mxu0 %v6926_v31  ;;  %5721 = vmatpush3.msra.mxu0 %v3279_v59  ;;  %v3276_v31 = vld [vmem:[#allocation6 + $0x3c8] sm:$0xff] }
 0x1c8   : > { %5528 = vmatmul.mubr.f32.gmra.mxu1 %v7061_v23  ;;  %5722 = vmatprep.subr.mxu0 %v3278_v2 }
 0x1c9   : > { %5530 = vmatprep.mubr.f32.mxu1 %v6717_v28  ;;  %5655 = vmatpush3.msra.mxu1 %v2966_v51  ;;  %v3275_v28 = vld [vmem:[#allocation6 + $0x3c0] sm:$0xff]  ;;  %v3583_v51 = vld [vmem:[#allocation6 + $0x450] sm:$0xff] }
 0x1ca   : > { %5605 = vmatmul.mubr.f32.gmra.mxu0 %v6931_v60  ;;  %5656 = vmatprep.subr.mxu1 %v2965_v32  ;;  %v7073_v60 = vld [vmem:[#allocation2 + $0xf9] sm:$0xff] }
 0x1cb   : > { %5607 = vmatprep.mubr.f32.mxu0 %v6934_v40  ;;  %5723 = vmatpush3.msra.mxu0 %v3278_v2  ;;  %v2964_v40 = vld [vmem:[#allocation6 + $0x318] sm:$0xff] }
 0x1cc   : > { %5531 = vmatmul.mubr.f32.gmra.mxu1 %v7067_v45  ;;  %5724 = vmatprep.subr.mxu0 %v3277_v16 }
 0x1cd   : > { %5533 = vmatprep.mubr.f32.mxu1 %v6739_v46  ;;  %5725 = vmatpush3.msra.mxu0 %v3277_v16  ;;  %v7079_v46 = vld [vmem:[#allocation2 + $0x111] sm:$0xff] }
 0x1ce   : > { %5608 = vmatmul.mubr.f32.gmra.mxu0 %v6939_v63  ;;  %5726 = vmatprep.subr.mxu0 %v3276_v31  ;;  %v2963_v63 = vld [vmem:[#allocation6 + $0x310] sm:$0xff] }
 0x1cf   : > { %5610 = vmatprep.mubr.f32.mxu0 %v6942_v35  ;;  %5657 = vmatpush3.msra.mxu1 %v2965_v32  ;;  %v3273_v35 = vld [vmem:[#allocation6 + $0x3b0] sm:$0xff]  ;;  %v2934_v32 = vld [vmem:[#allocation2 + $0x78] sm:$0xff] }
 0x1d0   : > { %5534 = vmatmul.mubr.f32.gmra.mxu1 %v7073_v60  ;;  %5727 = vmatpush3.msra.mxu0 %v3276_v31 }
 0x1d1   : > { %5536 = vmatprep.mubr.f32.mxu1 %v6761_v62  ;;  %5728 = vmatprep.subr.mxu0 %v3275_v28  ;;  %v3272_v62 = vld [vmem:[#allocation6 + $0x3a8] sm:$0xff] }
 0x1d2   : > { %5611 = vmatmul.mubr.f32.gmra.mxu0 %v6947_v30  ;;  %5658 = vmatprep.subr.mxu1 %v2964_v40  ;;  %v7086_v30 = vld [vmem:[#allocation2 + $0x139] sm:$0xff] }
 0x1d3   : > { %5613 = vmatprep.mubr.f32.mxu0 %v6950_v8  ;;  %5729 = vmatpush3.msra.mxu0 %v3275_v28  ;;  %v7091_v8 = vld [vmem:[#allocation2 + $0x141] sm:$0xff]  ;;  %v3582_v28 = vld [vmem:[#allocation6 + $0x448] sm:$0xff] }
 0x1d4   : > { %5537 = vmatmul.mubr.f32.gmra.mxu1 %v7079_v46  ;;  %5730 = vmatprep.subr.mxu0 %v3274_v34 }
 0x1d5   : > { %5539 = vmatprep.mubr.f32.mxu1 %v6780_v56  ;;  %5659 = vmatpush3.msra.mxu1 %v2964_v40  ;;  %v3271_v56 = vld [vmem:[#allocation6 + $0x3a0] sm:$0xff] }
 0x1d6   : > { %5614 = vmatmul.mubr.f32.gmra.mxu0 %v6955_v1  ;;  %5660 = vmatprep.subr.mxu1 %v2963_v63  ;;  %v2962_v1 = vld [vmem:[#allocation6 + $0x308] sm:$0xff] }
 0x1d7   : > { %5616 = vmatprep.mubr.f32.mxu0 %v6958_v61  ;;  %5731 = vmatpush3.msra.mxu0 %v3274_v34  ;;  %v7094_v61 = vld [vmem:[#allocation2 + $0x151] sm:$0xff] }
 0x1d8   : > { %5540 = vmatmul.mubr.f32.gmra.mxu1 %v6772_v49  ;;  %5732 = vmatprep.subr.mxu0 %v3273_v35  ;;  %v3270_v49 = vld [vmem:[#allocation6 + $0x398] sm:$0xff] }
 0x1d9   : > { %5542 = vmatprep.mubr.f32.mxu1 %v7086_v30  ;;  %5733 = vmatpush3.msra.mxu0 %v3273_v35 }
 0x1da   : > { %5617 = vmatmul.mubr.f32.gmra.mxu0 %v6963_v3  ;;  %5734 = vmatprep.subr.mxu0 %v3272_v62  ;;  %v7099_v3 = vld [vmem:[#allocation2 + $0x159] sm:$0xff] }
 0x1db   : > { %5619 = vmatprep.mubr.f32.mxu0 %v6966_v36  ;;  %5661 = vmatpush3.msra.mxu1 %v2963_v63  ;;  %v2961_v36 = vld [vmem:[#allocation6 + $0x300] sm:$0xff] }
 0x1dc   : > { %5543 = vmatmul.mubr.f32.gmra.mxu1 %v7091_v8  ;;  %5735 = vmatpush3.msra.mxu0 %v3272_v62  ;;  %v3581_v63 = vld [vmem:[#allocation6 + $0x440] sm:$0xff] }
 0x1dd   : > { %5545 = vmatprep.mubr.f32.mxu1 %v7094_v61  ;;  %5736 = vmatprep.subr.mxu0 %v3271_v56  ;;  %v2936_v62 = vld [vmem:[#allocation2 + $0x90] sm:$0xff] }
 0x1de   : > { %5620 = vmatmul.mubr.f32.gmra.mxu0 %v6971_v15  ;;  %5662 = vmatprep.subr.mxu1 %v2962_v1  ;;  %v7107_v15 = vld [vmem:[#allocation2 + $0x171] sm:$0xff] }
 0x1df   : > { %5622 = vmatprep.mubr.f32.mxu0 %v6974_v44  ;;  %5737 = vmatpush3.msra.mxu0 %v3271_v56  ;;  %v3268_v44 = vld [vmem:[#allocation6 + $0x388] sm:$0xff] }
 0x1e0   : > { %5546 = vmatmul.mubr.f32.gmra.mxu1 %v7099_v3  ;;  %5738 = vmatprep.subr.mxu0 %v3270_v49 }
 0x1e1   : > { %5548 = vmatprep.mubr.f32.mxu1 %v7102_v9  ;;  %5663 = vmatpush3.msra.mxu1 %v2962_v1 }
 0x1e2   : > { %5623 = vmatmul.mubr.f32.gmra.mxu0 %v6979_v20  ;;  %5664 = vmatprep.subr.mxu1 %v2961_v36  ;;  %v7115_v20 = vld [vmem:[#allocation2 + $0x189] sm:$0xff] }
 0x1e3   : > { %5625 = vmatprep.mubr.f32.mxu0 %v6982_v27  ;;  %5739 = vmatpush3.msra.mxu0 %v3270_v49  ;;  %v3588_v27 = vld [vmem:[#allocation6 + $0x478] sm:$0xff] }
 0x1e4   : > { %5549 = vmatmul.mubr.f32.gmra.mxu1 %v7107_v15  ;;  %5740 = vmatprep.subr.mxu0 %v3269_v26  ;;  %v3580_v49 = vld [vmem:[#allocation6 + $0x438] sm:$0xff] }
 0x1e5   : > { %5551 = vmatprep.mubr.f32.mxu1 %v7110_v11  ;;  %5741 = vmatpush3.msra.mxu0 %v3269_v26 }
 0x1e6   : > { %5626 = vmatmul.mubr.f32.gmra.mxu0 %v6987_v19  ;;  %5742 = vmatprep.subr.mxu0 %v3268_v44  ;;  %v2929_v19 = vld [vmem:[#allocation2 + $0x38] sm:$0xff] }
 0x1e7   : > { %5628 = vmatprep.mubr.f32.mxu0 %v6990_v38  ;;  %5665 = vmatpush3.msra.mxu1 %v2961_v36  ;;  %v3587_v38 = vld [vmem:[#allocation6 + $0x470] sm:$0xff] }
 0x1e8   : > { %5552 = vmatmul.mubr.f32.gmra.mxu1 %v7115_v20  ;;  %5743 = vmatpush3.msra.mxu0 %v3268_v44  ;;  %v3579_v44 = vld [vmem:[#allocation6 + $0x430] sm:$0xff] }
 0x1e9   : > { %5666 = vmatprep.mubr.f32.mxu1 %v2928_v52  ;;  %5744 = vmatprep.subr.mxu0 %v3267_v39 }
 0x1ea   : > { %5629 = vmatmul.mubr.f32.gmra.mxu0 %v6995_v18  ;;  %v5188_v48 = vpop.f32.mrf.mxu1  ;;  %5794 = vmatprep.subr.mxu1 %v3588_v27 }
 0x1eb   : > { %5631 = vmatprep.mubr.f32.mxu0 %v7119_v53  ;;  %5745 = vmatpush3.msra.mxu0 %v3267_v39 }
 0x1ec   : > { %5667 = vmatmul.mubr.f32.vlgmr.msra.gmra.mxu1 %v2929_v19  ;;  %v1319_v13 = vpop.f32.mrf.mxu1  ;;  %v3578_v19 = vld [vmem:[#allocation6 + $0x428] sm:$0xff] }
 0x1ed   : > { %5669 = vmatprep.mubr.f32.mxu1 %v2930_v33  ;;  %5795 = vmatpush3.msra.mxu1 %v3588_v27  ;;  %v2938_v27 = vld [vmem:[#allocation2 + $0xa8] sm:$0xff] }
 0x1ee   : > { %5632 = vmatmul.mubr.f32.gmra.mxu0 %v7122_v43  ;;  %v5191_v18 = vpop.f32.mrf.mxu1  ;;  %5796 = vmatprep.subr.mxu1 %v3587_v38 }
 0x1ef   : > { %5746 = vmatprep.mubr.f32.mxu0 %v7004_v4  ;;  %5797 = vmatpush3.msra.mxu1 %v3587_v38  ;;  %v2933_v4 = vld [vmem:[#allocation2 + $0x68] sm:$0xff] }
 0x1f0   : > { %5670 = vmatmul.mubr.f32.gmra.mxu1 %v2931_v7  ;;  %v1329_v6 = vpop.f32.mrf.mxu1  ;;  %5798 = vmatprep.subr.mxu1 %v3586_v55 }
 0x1f1   : > { %5672 = vmatprep.mubr.f32.mxu1 %v2932_v5  ;;  %5799 = vmatpush3.msra.mxu1 %v3586_v55  ;;  %v3576_v5 = vld [vmem:[#allocation6 + $0x418] sm:$0xff] }
 0x1f2   : > { %v5268_v29 = vpop.f32.mrf.mxu0  ;;  %5747 = vmatmul.mubr.f32.vlgmr.msra.gmra.mxu0 %v7012_v42  ;;  %v5194_v21 = vpop.f32.mrf.mxu1  ;;  %5800 = vmatprep.subr.mxu1 %v3585_v50 }
 0x1f3   : > { %v7127_v59 = vadd.f32 %v5268_v29, %v5188_v48  ;;  %5749 = vmatprep.mubr.f32.mxu0 %v7015_v25  ;;  %5801 = vmatpush3.msra.mxu1 %v3585_v50  ;;  %v2935_v25 = vld [vmem:[#allocation2 + $0x80] sm:$0xff] }
 0x1f4   : > { %v1544_v2 = vpop.f32.mrf.mxu0  ;;  %5673 = vmatmul.mubr.f32.gmra.mxu1 %v2933_v4  ;;  %v1339_v16 = vpop.f32.mrf.mxu1  ;;  %5802 = vmatprep.subr.mxu1 %v3584_v17  ;;  %v3575_v29 = vld [vmem:[#allocation6 + $0x410] sm:$0xff]  ;;  %v2942_v4 = vld [vmem:[#allocation2 + $0xd8] sm:$0xff] }
 0x1f5   : > { %v7130_v31 = vadd.f32 %v1544_v2, %v1319_v13  ;;  %5675 = vmatprep.mubr.f32.mxu1 %v2934_v32  ;;  %5803 = vmatpush3.msra.mxu1 %v3584_v17  ;;  %v3577_v13 = vld [vmem:[#allocation6 + $0x420] sm:$0xff]  ;;  %v3574_v32 = vld [vmem:[#allocation6 + $0x408] sm:$0xff] }
 0x1f6   : > { %v5271_v42 = vpop.f32.mrf.mxu0  ;;  %5750 = vmatmul.mubr.f32.gmra.mxu0 %v7020_v57  ;;  %v5197_v40 = vpop.f32.mrf.mxu1  ;;  %5804 = vmatprep.subr.mxu1 %v3583_v51 }
 0x1f7   : > { %v7133_v34 = vadd.f32 %v5271_v42, %v5191_v18  ;;  %5752 = vmatprep.mubr.f32.mxu0 %v7023_v47  ;;  %5805 = vmatpush3.msra.mxu1 %v3583_v51  ;;  %v2937_v47 = vld [vmem:[#allocation2 + $0x98] sm:$0xff]  ;;  %v2940_v18 = vld [vmem:[#allocation2 + $0xc0] sm:$0xff]  ;;  %v3573_v42 = vld [vmem:[#allocation6 + $0x400] sm:$0xff] }
 0x1f8   : > { %v1554_v35 = vpop.f32.mrf.mxu0  ;;  %5676 = vmatmul.mubr.f32.gmra.mxu1 %v2935_v25  ;;  %v1349_v56 = vpop.f32.mrf.mxu1  ;;  %5806 = vmatprep.subr.mxu1 %v3582_v28  ;;  %v2944_v25 = vld [vmem:[#allocation2 + $0xf0] sm:$0xff] }
 0x1f9   : > { %v7136_v1 = vadd.f32 %v1554_v35, %v1329_v6  ;;  %5678 = vmatprep.mubr.f32.mxu1 %v2936_v62  ;;  %5807 = vmatpush3.msra.mxu1 %v3582_v28 }
 0x1fa   : > { %v5274_v57 = vpop.f32.mrf.mxu0  ;;  %5753 = vmatmul.mubr.f32.gmra.mxu0 %v7028_v10  ;;  %v5200_v36 = vpop.f32.mrf.mxu1  ;;  %5808 = vmatprep.subr.mxu1 %v3581_v63 }
 0x1fb   : > { %v7139_v26 = vadd.f32 %v5274_v57, %v5194_v21  ;;  %5755 = vmatprep.mubr.f32.mxu0 %v7031_v41  ;;  %5809 = vmatpush3.msra.mxu1 %v3581_v63  ;;  %v2939_v41 = vld [vmem:[#allocation2 + $0xb0] sm:$0xff] }
 0x1fc   : > { %v1564_v39 = vpop.f32.mrf.mxu0  ;;  %5679 = vmatmul.mubr.f32.gmra.mxu1 %v2937_v47  ;;  %v1359_v52 = vpop.f32.mrf.mxu1  ;;  %5810 = vmatprep.subr.mxu1 %v3580_v49 }
 0x1fd   : > { %v7142_v48 = vadd.f32 %v1564_v39, %v1339_v16  ;;  %5681 = vmatprep.mubr.f32.mxu1 %v2938_v27  ;;  %5811 = vmatpush3.msra.mxu1 %v3580_v49 }
 0x1fe   : > { %v5277_v10 = vpop.f32.mrf.mxu0  ;;  %5756 = vmatmul.mubr.f32.gmra.mxu0 %v7036_v12  ;;  %v5203_v38 = vpop.f32.mrf.mxu1  ;;  %5812 = vmatprep.subr.mxu1 %v3579_v44 }
 0x1ff   : > { %v7145_v33 = vadd.f32 %v5277_v10, %v5197_v40  ;;  %5758 = vmatprep.mubr.f32.mxu0 %v7039_v54  ;;  %5813 = vmatpush3.msra.mxu1 %v3579_v44  ;;  %v2941_v54 = vld [vmem:[#allocation2 + $0xc8] sm:$0xff] }
 0x200   : > { %v1574_v55 = vpop.f32.mrf.mxu0  ;;  %5682 = vmatmul.mubr.f32.gmra.mxu1 %v2939_v41  ;;  %v1369_v7 = vpop.f32.mrf.mxu1  ;;  %5814 = vmatprep.subr.mxu1 %v3578_v19 }
 0x201   : > { %v7148_v50 = vadd.f32 %v1574_v55, %v1349_v56  ;;  %5684 = vmatprep.mubr.f32.mxu1 %v2940_v18  ;;  %5815 = vmatpush3.msra.mxu1 %v3578_v19  ;;  %v2947_v19 = vld [vmem:[#allocation2 + $0x110] sm:$0xff] }
 0x202   : > { %v5280_v12 = vpop.f32.mrf.mxu0  ;;  %5759 = vmatmul.mubr.f32.gmra.mxu0 %v7044_v37  ;;  %v5206_v6 = vpop.f32.mrf.mxu1  ;;  %5816 = vmatprep.subr.mxu1 %v3577_v13  ;;  %v3252_v18 = vld [vmem:[#allocation2 + $0x109] sm:$0xff] }
 0x203   : > { %v7151_v17 = vadd.f32 %v5280_v12, %v5200_v36  ;;  %5761 = vmatprep.mubr.f32.mxu0 %v7048_v0  ;;  %5817 = vmatpush3.msra.mxu1 %v3577_v13  ;;  %v2943_v0 = vld [vmem:[#allocation2 + $0xe0] sm:$0xff]  ;;  %v2946_v36 = vld [vmem:[#allocation2 + $0x108] sm:$0xff] }
 0x204   : > { %v1584_v21 = vpop.f32.mrf.mxu0  ;;  %5685 = vmatmul.mubr.f32.gmra.mxu1 %v2941_v54  ;;  %v1379_v51 = vpop.f32.mrf.mxu1  ;;  %5818 = vmatprep.subr.mxu1 %v3576_v5 }
 0x205   : > { %v7154_v2 = vadd.f32 %v1584_v21, %v1359_v52  ;;  %5687 = vmatprep.mubr.f32.mxu1 %v2942_v4  ;;  %5819 = vmatpush3.msra.mxu1 %v3576_v5  ;;  %v2949_v5 = vld [vmem:[#allocation2 + $0x128] sm:$0xff] }
 0x206   : > { %v5283_v37 = vpop.f32.mrf.mxu0  ;;  %5762 = vmatmul.mubr.f32.gmra.mxu0 %v7053_v24  ;;  %v5209_v16 = vpop.f32.mrf.mxu1  ;;  %5820 = vmatprep.subr.mxu1 %v3575_v29  ;;  %v3248_v24 = vld [vmem:[#allocation2 + $0xd9] sm:$0xff]  ;;  %v3254_v21 = vld [vmem:[#allocation2 + $0x121] sm:$0xff] }
 0x207   : > { %v7157_v28 = vadd.f32 %v5283_v37, %v5203_v38  ;;  %5764 = vmatprep.mubr.f32.mxu0 %v7056_v58  ;;  %5821 = vmatpush3.msra.mxu1 %v3575_v29  ;;  %v2945_v58 = vld [vmem:[#allocation2 + $0xf8] sm:$0xff]  ;;  %v2948_v38 = vld [vmem:[#allocation2 + $0x120] sm:$0xff]  ;;  %v2952_v37 = vld [vmem:[#allocation2 + $0x150] sm:$0xff] }
 0x208   : > { %v1594_v40 = vpop.f32.mrf.mxu0  ;;  %5688 = vmatmul.mubr.f32.gmra.mxu1 %v2943_v0  ;;  %v1389_v63 = vpop.f32.mrf.mxu1  ;;  %5822 = vmatprep.subr.mxu1 %v3574_v32  ;;  %v3255_v0 = vld [vmem:[#allocation2 + $0x129] sm:$0xff] }
 0x209   : > { %v7160_v35 = vadd.f32 %v1594_v40, %v1369_v7  ;;  %5690 = vmatprep.mubr.f32.mxu1 %v2944_v25  ;;  %5823 = vmatpush3.msra.mxu1 %v3574_v32 }
 0x20a   : > { %v5286_v62 = vpop.f32.mrf.mxu0  ;;  %5765 = vmatmul.mubr.f32.gmra.mxu0 %v7061_v23  ;;  %v5212_v56 = vpop.f32.mrf.mxu1  ;;  %5824 = vmatprep.subr.mxu1 %v3573_v42  ;;  %v3250_v23 = vld [vmem:[#allocation2 + $0xf1] sm:$0xff] }
 0x20b   : > { %v7163_v49 = vadd.f32 %v5286_v62, %v5206_v6  ;;  %5767 = vmatprep.mubr.f32.mxu0 %v3248_v24  ;;  %5825 = vmatpush3.msra.mxu1 %v3573_v42  ;;  %v2950_v6 = vld [vmem:[#allocation2 + $0x138] sm:$0xff]  ;;  %v2954_v62 = vld [vmem:[#allocation2 + $0x168] sm:$0xff] }
 0x20c   : > { %v1604_v57 = vpop.f32.mrf.mxu0  ;;  %5691 = vmatmul.mubr.f32.gmra.mxu1 %v2945_v58  ;;  %v7165_v47 = vpop.f32.mrf.mxu1 }
 0x20d   : > { %v7167_v44 = vadd.f32 %v1604_v57, %v1379_v51  ;;  %5693 = vmatprep.mubr.f32.mxu1 %v2946_v36  ;;  %v2955_v36 = vld [vmem:[#allocation2 + $0x170] sm:$0xff] }
 0x20e   : > { %v5289_v39 = vpop.f32.mrf.mxu0  ;;  %5768 = vmatmul.mubr.f32.gmra.mxu0 %v7067_v45  ;;  %v5215_v27 = vpop.f32.mrf.mxu1 }
 0x20f   : > { %v7170_v52 = vadd.f32 %v5289_v39, %v5209_v16  ;;  %5770 = vmatprep.mubr.f32.mxu0 %v3250_v23 }
 0x210   : > { %v1614_v10 = vpop.f32.mrf.mxu0  ;;  %5694 = vmatmul.mubr.f32.gmra.mxu1 %v2947_v19  ;;  %v7172_v41 = vpop.f32.mrf.mxu1 }
 0x211   : > { %v7174_v13 = vadd.f32 %v1614_v10, %v1389_v63  ;;  %5696 = vmatprep.mubr.f32.mxu1 %v2948_v38 }
 0x212   : > { %v5292_v55 = vpop.f32.mrf.mxu0  ;;  %5771 = vmatmul.mubr.f32.gmra.mxu0 %v7073_v60  ;;  %v5218_v7 = vpop.f32.mrf.mxu1  ;;  %v2951_v60 = vld [vmem:[#allocation2 + $0x140] sm:$0xff] }
 0x213   : > { %v7177_v45 = vadd.f32 %v5292_v55, %v5212_v56  ;;  %5773 = vmatprep.mubr.f32.mxu0 %v3252_v18 }
 0x214   : > { %v7179_v12 = vpop.f32.mrf.mxu0  ;;  %5697 = vmatmul.mubr.f32.gmra.mxu1 %v2949_v5  ;;  %v7181_v54 = vpop.f32.mrf.mxu1 }
 0x215   : > { %5699 = vmatprep.mubr.f32.mxu1 %v2950_v6  ;;  %v6036_v6 = vld [vmem:[#allocation2 + $0x199] sm:$0xff] }
 0x216   : > { %v5295_v29 = vpop.f32.mrf.mxu0  ;;  %5774 = vmatmul.mubr.f32.gmra.mxu0 %v7079_v46  ;;  %v5221_v4 = vpop.f32.mrf.mxu1  ;;  %v2953_v46 = vld [vmem:[#allocation2 + $0x158] sm:$0xff] }
 0x217   : > { %v7184_v51 = vadd.f32 %v5295_v29, %v5215_v27  ;;  %5776 = vmatprep.mubr.f32.mxu0 %v3254_v21 }
 0x218   : > { %v7186_v32 = vpop.f32.mrf.mxu0  ;;  %5700 = vmatmul.mubr.f32.gmra.mxu1 %v2951_v60  ;;  %v7188_v16 = vpop.f32.mrf.mxu1 }
 0x219   : > { %5702 = vmatprep.mubr.f32.mxu1 %v2952_v37  ;;  %v6037_v37 = vld [vmem:[#allocation2 + $0x1a1] sm:$0xff] }
 0x21a   : > { %v5298_v42 = vpop.f32.mrf.mxu0  ;;  %5777 = vmatmul.mubr.f32.gmra.mxu0 %v3255_v0  ;;  %v5224_v40 = vpop.f32.mrf.mxu1 }
 0x21b   : > { %v7190_v25 = vadd.f32 %v5298_v42, %v5218_v7  ;;  %5779 = vmatprep.mubr.f32.mxu0 %v7086_v30 }
 0x21c   : > { %v7193_v63 = vpop.f32.mrf.mxu0  ;;  %5703 = vmatmul.mubr.f32.gmra.mxu1 %v2953_v46  ;;  %v7195_v24 = vpop.f32.mrf.mxu1 }
 0x21d   : > { %5705 = vmatprep.mubr.f32.mxu1 %v2954_v62 }
 0x21e   : > { %v5301_v56 = vpop.f32.mrf.mxu0  ;;  %5780 = vmatmul.mubr.f32.gmra.mxu0 %v7091_v8  ;;  %v5227_v58 = vpop.f32.mrf.mxu1 }
 0x21f   : > { %v7198_v57 = vadd.f32 %v5301_v56, %v5221_v4  ;;  %5782 = vmatprep.mubr.f32.mxu0 %v7094_v61  ;;  %v2958_v61 = vld [vmem:[#allocation2 + $0x198] sm:$0xff]  ;;  %v3544_v56 = vld [vmem:[#allocation2 + $0x62] sm:$0xff] }
 0x220   : > { %v7201_v39 = vpop.f32.mrf.mxu0  ;;  %5706 = vmatmul.mubr.f32.gmra.mxu1 %v2955_v36  ;;  %v7203_v30 = vpop.f32.mrf.mxu1 }
 0x221   : > { %5708 = vmatprep.mubr.f32.mxu1 %v7001_v22 }
 0x222   : > { %v5304_v23 = vpop.f32.mrf.mxu0  ;;  %5783 = vmatmul.mubr.f32.gmra.mxu0 %v7099_v3  ;;  %v5230_v27 = vpop.f32.mrf.mxu1  ;;  %v2959_v3 = vld [vmem:[#allocation2 + $0x1a0] sm:$0xff] }
 0x223   : > { %v7207_v19 = vadd.f32 %v5304_v23, %v5224_v40  ;;  %5785 = vmatprep.mubr.f32.mxu0 %v7102_v9  ;;  %v3540_v9 = vld [vmem:[#allocation2 + $0x32] sm:$0xff] }
 0x224   : > { %v7210_v8 = vpop.f32.mrf.mxu0  ;;  %5709 = vmatmul.mubr.f32.gmra.mxu1 %v7007_v14  ;;  %v7213_v10 = vpop.f32.mrf.mxu1  ;;  %v3543_v40 = vld [vmem:[#allocation2 + $0x52] sm:$0xff] }
 0x225   : > { %5711 = vmatprep.mubr.f32.mxu1 %v2958_v61  ;;  %v3545_v61 = vld [vmem:[#allocation2 + $0x6a] sm:$0xff] }
 0x226   : > { %v5307_v38 = vpop.f32.mrf.mxu0  ;;  %5786 = vmatmul.mubr.f32.gmra.mxu0 %v7107_v15  ;;  %v5233_v22 = vpop.f32.mrf.mxu1  ;;  %v3541_v15 = vld [vmem:[#allocation2 + $0x3a] sm:$0xff] }
 0x227   : > { %v7216_v55 = vadd.f32 %v5307_v38, %v5227_v58  ;;  %5788 = vmatprep.mubr.f32.mxu0 %v7110_v11  ;;  %v3542_v11 = vld [vmem:[#allocation2 + $0x4a] sm:$0xff] }
 0x228   : > { %v7219_v18 = vpop.f32.mrf.mxu0  ;;  %5712 = vmatmul.mubr.f32.gmra.mxu1 %v2959_v3  ;;  %v7221_v7 = vpop.f32.mrf.mxu1 }
 0x229   : > { %5826 = vmatprep.mubr.f32.mxu1 %v3540_v9 }
 0x22a   : > { %v5310_v14 = vpop.f32.mrf.mxu0  ;;  %5789 = vmatmul.mubr.f32.gmra.mxu0 %v7115_v20 }
 0x22b   : > { %v7224_v5 = vadd.f32 %v5310_v14, %v5230_v27  ;;  %5791 = vmatprep.mubr.f32.mxu0 %v6036_v6 }
 0x22c   : > { %v7226_v29 = vpop.f32.mrf.mxu0  ;;  %v5348_v21 = vpop.f32.mrf.mxu1  ;;  %5827 = vmatmul.mubr.f32.vlgmr.msra.gmra.mxu1 %v3541_v15  ;;  %v3547_v15 = vld [vmem:[#allocation2 + $0x82] sm:$0xff] }
 0x22d   : > { %v1978_v4 = vadd.f32 %v5348_v21, %v7127_v59  ;;  %5829 = vmatprep.mubr.f32.mxu1 %v3542_v11  ;;  %v3548_v11 = vld [vmem:[#allocation2 + $0x92] sm:$0xff] }
 0x22e   : > { %v5313_v60 = vpop.f32.mrf.mxu0  ;;  %5792 = vmatmul.mubr.f32.gmra.mxu0 %v6037_v37  ;;  %v1818_v0 = vpop.f32.mrf.mxu1 }
 0x22f   : > { %v7229_v42 = vadd.f32 %v5313_v60, %v5233_v22  ;;  %v7232_v20 = vadd.f32 %v1818_v0, %v7130_v31  ;;  %v3546_v22 = vld [vmem:[#allocation2 + $0x7a] sm:$0xff] }
 0x230   : > { %v7234_v46 = vpop.f32.mrf.mxu0  ;;  %v5351_v62 = vpop.f32.mrf.mxu1  ;;  %5830 = vmatmul.mubr.f32.gmra.mxu1 %v3543_v40  ;;  %v3549_v40 = vld [vmem:[#allocation2 + $0x9a] sm:$0xff] }
 0x231   : > { %v1980_v58 = vadd.f32 %v5351_v62, %v7133_v34  ;;  %5832 = vmatprep.mubr.f32.mxu1 %v3544_v56  ;;  %v3550_v56 = vld [vmem:[#allocation2 + $0xaa] sm:$0xff] }
 0x232   : > { %v5428_v59 = vpop.f32.mrf.mxu0  ;;  %v1828_v36 = vpop.f32.mrf.mxu1 }
 0x233   : > { %v7237_v23 = vadd.f32 %v5428_v59, %v1978_v4  ;;  %v7240_v27 = vadd.f32 %v1828_v36, %v7136_v1 }
 0x234   : > { %v7242_v38 = vpop.f32.mrf.mxu0  ;;  %v5354_v31 = vpop.f32.mrf.mxu1  ;;  %5833 = vmatmul.mubr.f32.gmra.mxu1 %v3545_v61 }
 0x235   : > { %v1982_v3 = vadd.f32 %v5354_v31, %v7139_v26  ;;  %5835 = vmatprep.mubr.f32.mxu1 %v3546_v22  ;;  %v3551_v31 = vld [vmem:[#allocation2 + $0xb2] sm:$0xff] }
 0x236   : > { %v5431_v9 = vpop.f32.mrf.mxu0  ;;  %v1838_v14 = vpop.f32.mrf.mxu1 }
 0x237   : > { %v7245_v34 = vadd.f32 %v5431_v9, %v1980_v58  ;;  %v7248_v6 = vadd.f32 %v1838_v14, %v7142_v48  ;;  %v3552_v9 = vld [vmem:[#allocation2 + $0xc2] sm:$0xff] }
 0x238   : > { %v7250_v21 = vpop.f32.mrf.mxu0  ;;  %v5357_v1 = vpop.f32.mrf.mxu1  ;;  %5836 = vmatmul.mubr.f32.gmra.mxu1 %v3547_v15 }
 0x239   : > { %v1984_v4 = vadd.f32 %v5357_v1, %v7145_v33  ;;  %5838 = vmatprep.mubr.f32.mxu1 %v3548_v11  ;;  %v3553_v11 = vld [vmem:[#allocation2 + $0xca] sm:$0xff] }
 0x23a   : > { %v5434_v60 = vpop.f32.mrf.mxu0  ;;  %v1848_v37 = vpop.f32.mrf.mxu1 }
 0x23b   : > { %v7253_v26 = vadd.f32 %v5434_v60, %v1982_v3  ;;  %v7256_v0 = vadd.f32 %v1848_v37, %v7148_v50  ;;  %v3971_v50 = vld [vmem:[%s8095_s8 + $0x78] sm:$0xff] }
 0x23c   : > { %v7258_v62 = vpop.f32.mrf.mxu0  ;;  %v5360_v48 = vpop.f32.mrf.mxu1  ;;  %5839 = vmatmul.mubr.f32.gmra.mxu1 %v3549_v40  ;;  %5874 = vmatprep.subr.mxu0 %v3971_v50  ;;  %v3554_v40 = vld [vmem:[#allocation2 + $0xda] sm:$0xff] }
 0x23d   : > { %v1986_v58 = vadd.f32 %v5360_v48, %v7151_v17  ;;  %5841 = vmatprep.mubr.f32.mxu1 %v3550_v56  ;;  %5875 = vmatpush3.msra.mxu0 %v3971_v50 }
 0x23e   : > { %v5437_v59 = vpop.f32.mrf.mxu0  ;;  %v1858_v36 = vpop.f32.mrf.mxu1 }
 0x23f   : > { %v7261_v33 = vadd.f32 %v5437_v59, %v1984_v4  ;;  %v7264_v61 = vadd.f32 %v1858_v36, %v7154_v2  ;;  %v3970_v4 = vld [vmem:[%s8095_s8 + $0x70] sm:$0xff]  ;;  %v3555_v59 = vld [vmem:[#allocation2 + $0xe2] sm:$0xff] }
 0x240   : > { %v7269_v22 = vpop.f32.mrf.mxu0  ;;  %v5363_v3 = vpop.f32.mrf.mxu1  ;;  %5842 = vmatmul.mubr.f32.gmra.mxu1 %v3551_v31  ;;  %5876 = vmatprep.subr.mxu0 %v3970_v4  ;;  %v3969_v36 = vld [vmem:[%s8095_s8 + $0x68] sm:$0xff] }
 0x241   : > { %v1988_v17 = vadd.f32 %v5363_v3, %v7157_v28  ;;  %5844 = vmatprep.mubr.f32.mxu1 %v3552_v9  ;;  %5877 = vmatpush3.msra.mxu0 %v3970_v4  ;;  %v3556_v3 = vld [vmem:[#allocation2 + $0xf2] sm:$0xff] }
 0x242   : > { %v5440_v14 = vpop.f32.mrf.mxu0  ;;  %v1868_v15 = vpop.f32.mrf.mxu1  ;;  %5878 = vmatprep.subr.mxu0 %v3969_v36 }
 0x243   : > { %v7272_v1 = vadd.f32 %v5440_v14, %v1986_v58  ;;  %v7275_v2 = vadd.f32 %v1868_v15, %v7160_v35  ;;  %5879 = vmatpush3.msra.mxu0 %v3969_v36  ;;  %v3557_v15 = vld [vmem:[#allocation2 + $0xfa] sm:$0xff]  ;;  %v3559_v36 = vld [vmem:[#allocation2 + $0x112] sm:$0xff] }
 0x244   : > { %v7280_v60 = vpop.f32.mrf.mxu0  ;;  %v5366_v37 = vpop.f32.mrf.mxu1  ;;  %5845 = vmatmul.mubr.f32.gmra.mxu1 %v3553_v11  ;;  %v3968_v11 = vld [vmem:[%s8095_s8 + $0x60] sm:$0xff] }
 0x245   : > { %v1990_v28 = vadd.f32 %v5366_v37, %v7163_v49  ;;  %5847 = vmatprep.mubr.f32.mxu1 %v3554_v40  ;;  %v3558_v40 = vld [vmem:[#allocation2 + $0x10a] sm:$0xff]  ;;  %5880 = vmatprep.subr.mxu0 %v3968_v11 }
 0x246   : > { %v5443_v48 = vpop.f32.mrf.mxu0  ;;  %v1878_v56 = vpop.f32.mrf.mxu1  ;;  %5881 = vmatpush3.msra.mxu0 %v3968_v11 }
 0x247   : > { %v7283_v58 = vadd.f32 %v5443_v48, %v1988_v17  ;;  %v7286_v35 = vadd.f32 %v1878_v56, %v7167_v44 }
 0x248   : > { %v7291_v31 = vpop.f32.mrf.mxu0  ;;  %v5369_v50 = vpop.f32.mrf.mxu1  ;;  %5848 = vmatmul.mubr.f32.gmra.mxu1 %v3555_v59 }
 0x249   : > { %v1992_v49 = vadd.f32 %v5369_v50, %v7170_v52  ;;  %5850 = vmatprep.mubr.f32.mxu1 %v3556_v3  ;;  %v1625_v52 = vadd.f32 %v7179_v12, %v7165_v47  ;;  %v3967_v50 = vld [vmem:[%s8095_s8 + $0x58] sm:$0xff]  ;;  %v1635_v47 = vadd.f32 %v7186_v32, %v7172_v41  ;;  %v1645_v41 = vadd.f32 %v7193_v63, %v7181_v54 }
 0x24a   : > { %v5446_v9 = vpop.f32.mrf.mxu0  ;;  %v1888_v17 = vpop.f32.mrf.mxu1  ;;  %5882 = vmatprep.subr.mxu0 %v3967_v50  ;;  %v3564_v54 = vld [vmem:[#allocation2 + $0x152] sm:$0xff] }
 0x24b   : > { %v7294_v14 = vadd.f32 %v5446_v9, %v1990_v28  ;;  %v7297_v44 = vadd.f32 %v1888_v17, %v7174_v13  ;;  %v3560_v17 = vld [vmem:[#allocation2 + $0x122] sm:$0xff]  ;;  %5883 = vmatpush3.msra.mxu0 %v3967_v50 }
 0x24c   : > { %v7302_v4 = vpop.f32.mrf.mxu0  ;;  %v5372_v37 = vpop.f32.mrf.mxu1  ;;  %5851 = vmatmul.mubr.f32.gmra.mxu1 %v3557_v15 }
 0x24d   : > { %v1994_v28 = vadd.f32 %v5372_v37, %v7177_v45  ;;  %5853 = vmatprep.mubr.f32.mxu1 %v3558_v40  ;;  %v3561_v37 = vld [vmem:[#allocation2 + $0x12a] sm:$0xff] }
 0x24e   : > { %v5449_v13 = vpop.f32.mrf.mxu0  ;;  %v1898_v48 = vpop.f32.mrf.mxu1  ;;  %v3966_v40 = vld [vmem:[%s8095_s8 + $0x50] sm:$0xff] }
 0x24f   : > { %v7307_v56 = vadd.f32 %v5449_v13, %v1992_v49  ;;  %v1993_v59 = vadd.f32 %v1898_v48, %v1625_v52  ;;  %v3562_v48 = vld [vmem:[#allocation2 + $0x13a] sm:$0xff]  ;;  %5884 = vmatprep.subr.mxu0 %v3966_v40 }
 0x250   : > { %v7312_v3 = vpop.f32.mrf.mxu0  ;;  %v5375_v9 = vpop.f32.mrf.mxu1  ;;  %5854 = vmatmul.mubr.f32.gmra.mxu1 %v3559_v36  ;;  %5885 = vmatpush3.msra.mxu0 %v3966_v40 }
 0x251   : > { %v1996_v45 = vadd.f32 %v5375_v9, %v7184_v51  ;;  %5856 = vmatprep.mubr.f32.mxu1 %v3560_v17  ;;  %v3563_v17 = vld [vmem:[#allocation2 + $0x142] sm:$0xff] }
 0x252   : > { %v5452_v12 = vpop.f32.mrf.mxu0  ;;  %v1908_v49 = vpop.f32.mrf.mxu1 }
 0x253   : > { %v7317_v15 = vadd.f32 %v5452_v12, %v1994_v28  ;;  %v1995_v11 = vadd.f32 %v1908_v49, %v1635_v47  ;;  %v3965_v47 = vld [vmem:[%s8095_s8 + $0x48] sm:$0xff] }
 0x254   : > { %v2204_v52 = vpop.f32.mrf.mxu0  ;;  %v5378_v13 = vpop.f32.mrf.mxu1  ;;  %5857 = vmatmul.mubr.f32.gmra.mxu1 %v3561_v37  ;;  %5886 = vmatprep.subr.mxu0 %v3965_v47 }
 0x255   : > { %v7324_v51 = vadd.f32 %v2204_v52, %v1993_v59  ;;  %v1998_v32 = vadd.f32 %v5378_v13, %v7190_v25  ;;  %5859 = vmatprep.mubr.f32.mxu1 %v3562_v48  ;;  %v1655_v25 = vadd.f32 %v7201_v39, %v7188_v16  ;;  %5887 = vmatpush3.msra.mxu0 %v3965_v47  ;;  %v3565_v13 = vld [vmem:[#allocation2 + $0x15a] sm:$0xff]  ;;  %v3566_v16 = vld [vmem:[#allocation2 + $0x16a] sm:$0xff] }
 0x256   : > { %v5455_v28 = vpop.f32.mrf.mxu0  ;;  %v1918_v36 = vpop.f32.mrf.mxu1  ;;  %v3964_v48 = vld [vmem:[%s8095_s8 + $0x40] sm:$0xff] }
 0x257   : > { %v7327_v50 = vadd.f32 %v5455_v28, %v1996_v45  ;;  %v1997_v9 = vadd.f32 %v1918_v36, %v1645_v41  ;;  %5888 = vmatprep.subr.mxu0 %v3964_v48 }
 0x258   : > { %v2214_v12 = vpop.f32.mrf.mxu0  ;;  %v5381_v49 = vpop.f32.mrf.mxu1  ;;  %5860 = vmatmul.mubr.f32.gmra.mxu1 %v3563_v17  ;;  %5889 = vmatpush3.msra.mxu0 %v3964_v48 }
 0x259   : > { %v7334_v63 = vadd.f32 %v2214_v12, %v1995_v11  ;;  %v2000_v59 = vadd.f32 %v5381_v49, %v7198_v57  ;;  %5862 = vmatprep.mubr.f32.mxu1 %v3564_v54  ;;  %v1665_v57 = vadd.f32 %v7210_v8, %v7195_v24  ;;  %v3567_v12 = vld [vmem:[#allocation2 + $0x172] sm:$0xff]  ;;  %v1675_v24 = vadd.f32 %v7219_v18, %v7203_v30  ;;  %v3570_v30 = vld [vmem:[#allocation2 + $0x19a] sm:$0xff] }
 0x25a   : > { %v5458_v45 = vpop.f32.mrf.mxu0  ;;  %v1928_v37 = vpop.f32.mrf.mxu1  ;;  %v3963_v49 = vld [vmem:[%s8095_s8 + $0x38] sm:$0xff] }
 0x25b   : > { %v7337_v40 = vadd.f32 %v5458_v45, %v1998_v32  ;;  %v1999_v52 = vadd.f32 %v1928_v37, %v1655_v25  ;;  %5890 = vmatprep.subr.mxu0 %v3963_v49 }
 0x25c   : > { %v2224_v41 = vpop.f32.mrf.mxu0  ;;  %v5384_v28 = vpop.f32.mrf.mxu1  ;;  %5863 = vmatmul.mubr.f32.gmra.mxu1 %v3565_v13  ;;  %5891 = vmatpush3.msra.mxu0 %v3963_v49  ;;  %v3962_v13 = vld [vmem:[%s8095_s8 + $0x30] sm:$0xff] }
 0x25d   : > { %v7344_v39 = vadd.f32 %v2224_v41, %v1997_v9  ;;  %v2002_v11 = vadd.f32 %v5384_v28, %v7207_v19  ;;  %5865 = vmatprep.mubr.f32.mxu1 %v3566_v16  ;;  %5892 = vmatprep.subr.mxu0 %v3962_v13 }
 0x25e   : > { %v5461_v32 = vpop.f32.mrf.mxu0  ;;  %v1938_v36 = vpop.f32.mrf.mxu1  ;;  %5893 = vmatpush3.msra.mxu0 %v3962_v13 }
 0x25f   : > { %v7347_v17 = vadd.f32 %v5461_v32, %v2000_v59  ;;  %v2001_v47 = vadd.f32 %v1938_v36, %v1665_v57 }
 0x260   : > { %v2234_v54 = vpop.f32.mrf.mxu0  ;;  %v5387_v25 = vpop.f32.mrf.mxu1  ;;  %5866 = vmatmul.mubr.f32.gmra.mxu1 %v3567_v12 }
 0x261   : > { %v7354_v19 = vadd.f32 %v2234_v54, %v1999_v52  ;;  %v2004_v8 = vadd.f32 %v5387_v25, %v7216_v55  ;;  %5868 = vmatprep.mubr.f32.mxu1 %v7119_v53  ;;  %v1685_v55 = vadd.f32 %v7226_v29, %v7213_v10  ;;  %v1695_v10 = vadd.f32 %v7234_v46, %v7221_v7  ;;  %v3960_v25 = vld [vmem:[%s8095_s8 + $0x20] sm:$0xff] }
 0x262   : > { %v5464_v9 = vpop.f32.mrf.mxu0  ;;  %v1948_v59 = vpop.f32.mrf.mxu1  ;;  %v2283_v7 = vadd.f32 %v7242_v38, %v7232_v20  ;;  %v2285_v20 = vadd.f32 %v7250_v21, %v7240_v27  ;;  %v2287_v27 = vadd.f32 %v7258_v62, %v7248_v6  ;;  %v2289_v6 = vadd.f32 %v7269_v22, %v7256_v0 }
 0x263   : > { %v7358_v45 = vadd.f32 %v5464_v9, %v2002_v11  ;;  %v2003_v37 = vadd.f32 %v1948_v59, %v1675_v24  ;;  %v3571_v11 = vld [vmem:[#allocation2 + $0x1a2] sm:$0xff]  ;;  %v2291_v0 = vadd.f32 %v7280_v60, %v7264_v61 }
 0x264   : > { %v2244_v48 = vpop.f32.mrf.mxu0  ;;  %v5390_v41 = vpop.f32.mrf.mxu1  ;;  %5869 = vmatmul.mubr.f32.gmra.mxu1 %v7122_v43  ;;  %v3961_v43 = vld [vmem:[%s8095_s8 + $0x28] sm:$0xff] }
 0x265   : > { %v7366_v53 = vadd.f32 %v2244_v48, %v2001_v47  ;;  %v2006_v18 = vadd.f32 %v5390_v41, %v7224_v5  ;;  %5871 = vmatprep.mubr.f32.mxu1 %v3570_v30  ;;  %5894 = vmatprep.subr.mxu0 %v3961_v43  ;;  %v3959_v48 = vld [vmem:[%s8095_s8 + $0x18] sm:$0xff] }
 0x266   : > { %v5467_v52 = vpop.f32.mrf.mxu0  ;;  %v1958_v28 = vpop.f32.mrf.mxu1  ;;  %5895 = vmatpush3.msra.mxu0 %v3961_v43 }
 0x267   : > { %v7369_v16 = vadd.f32 %v5467_v52, %v2004_v8  ;;  %v2005_v57 = vadd.f32 %v1958_v28, %v1685_v55  ;;  %5896 = vmatprep.subr.mxu0 %v3960_v25  ;;  %v3958_v28 = vld [vmem:[%s8095_s8 + $0x10] sm:$0xff] }
 0x268   : > { %v2254_v32 = vpop.f32.mrf.mxu0  ;;  %v5393_v36 = vpop.f32.mrf.mxu1  ;;  %5872 = vmatmul.mubr.f32.gmra.mxu1 %v3571_v11  ;;  %5897 = vmatpush3.msra.mxu0 %v3960_v25 }
 0x269   : > { %v7376_v5 = vadd.f32 %v2254_v32, %v2003_v37  ;;  %v2008_v29 = vadd.f32 %v5393_v36, %v7229_v42  ;;  %5898 = vmatprep.subr.mxu0 %v3959_v48  ;;  %v3957_v36 = vld [vmem:[%s8095_s8 + $0x8] sm:$0xff] }
 0x26a   : > { %v5470_v47 = vpop.f32.mrf.mxu0  ;;  %v1968_v12 = vpop.f32.mrf.mxu1  ;;  %5899 = vmatpush3.msra.mxu0 %v3959_v48  ;;  %v2293_v48 = vadd.f32 %v7291_v31, %v7275_v2 }
 0x26b   : > { %v7379_v49 = vadd.f32 %v5470_v47, %v2006_v18  ;;  %v2007_v54 = vadd.f32 %v1968_v12, %v1695_v10  ;;  %5900 = vmatprep.subr.mxu0 %v3958_v28 }
 0x26c   : > { %v2264_v24 = vpop.f32.mrf.mxu0  ;;  %v5508_v8 = vpop.f32.mrf.mxu1  ;;  %5901 = vmatpush3.msra.mxu0 %v3958_v28 }
 0x26d   : > { %v7386_v46 = vadd.f32 %v2264_v24, %v2005_v57  ;;  %v7389_v42 = vadd.f32 %v5508_v8, %v7237_v23  ;;  %5902 = vmatprep.subr.mxu0 %v3957_v36 }
 0x26e   : > { %v5473_v9 = vpop.f32.mrf.mxu0  ;;  %v2430_v59 = vpop.f32.mrf.mxu1  ;;  %5903 = vmatpush3.msra.mxu0 %v3957_v36 }
 0x26f   : > { %v7391_v37 = vadd.f32 %v5473_v9, %v2008_v29  ;;  %v7393_v13 = vadd.f32 %v2430_v59, %v2283_v7 }
 0x270   : > { %v2274_v41 = vpop.f32.mrf.mxu0  ;;  %v5511_v30 = vpop.f32.mrf.mxu1 }
 0x271   : > { %v7400_v38 = vadd.f32 %v2274_v41, %v2007_v54  ;;  %v7403_v23 = vadd.f32 %v5511_v30, %v7245_v34  ;;  %v3956_v54 = vld [vmem:[%s8095_s8] sm:$0xff] }
 0x272   : > { %v7405_v55 = vpop.f32.mrf.mxu0  ;;  %v2440_v18 = vpop.f32.mrf.mxu1  ;;  %5904 = vmatprep.subr.mxu0 %v3956_v54 }
 0x273   : > { %v7407_v52 = vadd.f32 %v2440_v18, %v2285_v20  ;;  %5905 = vmatpush3.msra.mxu0 %v3956_v54  ;;  %v2295_v18 = vadd.f32 %v7302_v4, %v7286_v35 }
 0x274   : > { %v7412_v57 = vpop.f32.mrf.mxu0  ;;  %v5514_v11 = vpop.f32.mrf.mxu1 }
 0x275   : > { %v7417_v34 = vadd.f32 %v5514_v11, %v7253_v26 }
 0x276   : > { %v7419_v21 = vpop.f32.mrf.mxu0  ;;  %v2450_v43 = vpop.f32.mrf.mxu1 }
 0x277   : > { %v7421_v32 = vadd.f32 %v2450_v43, %v2287_v27  ;;  %v2297_v43 = vadd.f32 %v7312_v3, %v7297_v44 }
 0x278   : > { %v7426_v10 = vpop.f32.mrf.mxu0  ;;  %v5517_v29 = vpop.f32.mrf.mxu1 }
 0x279   : > { %v7431_v26 = vadd.f32 %v5517_v29, %v7261_v33 }
 0x27a   : > { %v7433_v62 = vpop.f32.mrf.mxu0  ;;  %v2460_v47 = vpop.f32.mrf.mxu1 }
 0x27b   : > { %v7435_v12 = vadd.f32 %v2460_v47, %v2289_v6 }
 0x27c   : > { %v7440_v25 = vpop.f32.mrf.mxu0  ;;  %v5520_v24 = vpop.f32.mrf.mxu1 }
 0x27d   : > { %v7445_v33 = vadd.f32 %v5520_v24, %v7272_v1 }
 0x27e   : > { %v7447_v22 = vpop.f32.mrf.mxu0  ;;  %v2470_v8 = vpop.f32.mrf.mxu1 }
 0x27f   : > { %v7449_v7 = vadd.f32 %v2470_v8, %v2291_v0 }
 0x280   : > { %v7451_v9 = vpop.f32.mrf.mxu0  ;;  %v5523_v59 = vpop.f32.mrf.mxu1 }
 0x281   : > { %v7456_v41 = vadd.f32 %v5523_v59, %v7283_v58 }
 0x282   : > { %v7458_v30 = vpop.f32.mrf.mxu0  ;;  %v2480_v61 = vpop.f32.mrf.mxu1 }
 0x283   : > { %v7460_v1 = vadd.f32 %v2480_v61, %v2293_v48 }
 0x284   : > { %v7462_v60 = vpop.f32.mrf.mxu0  ;;  %v5526_v20 = vpop.f32.mrf.mxu1 }
 0x285   : > { %v7467_v28 = vadd.f32 %v5526_v20, %v7294_v14 }
 0x286   : > { %v7469_v11 = vpop.f32.mrf.mxu0  ;;  %v2490_v2 = vpop.f32.mrf.mxu1 }
 0x287   : > { %v7471_v31 = vadd.f32 %v2490_v2, %v2295_v18 }
 0x288   : > { %v7473_v58 = vpop.f32.mrf.mxu0  ;;  %v5529_v27 = vpop.f32.mrf.mxu1 }
 0x289   : > { %v7478_v36 = vadd.f32 %v5529_v27, %v7307_v56 }
 0x28a   : > { %v7480_v29 = vpop.f32.mrf.mxu0  ;;  %v2500_v35 = vpop.f32.mrf.mxu1 }
 0x28b   : > { %8128 = vst [vmem:[#allocation16_spill] sm:$0xff] %v7478_v36  ;;  %v7482_v4 = vadd.f32 %v2500_v35, %v2297_v43 }
 0x28c   : > { %v7484_v14 = vpop.f32.mrf.mxu0  ;;  %v5532_v6 = vpop.f32.mrf.mxu1 }
 0x28d   : > { %8129 = vst [vmem:[#allocation17_spill] sm:$0xff] %v7482_v4  ;;  %v7487_v47 = vadd.f32 %v5532_v6, %v7317_v15 }
 0x28e   : > { %v7489_v54 = vpop.f32.mrf.mxu0  ;;  %v2510_v24 = vpop.f32.mrf.mxu1 }
 0x28f   : > { %8130 = vst [vmem:[#allocation18_spill] sm:$0xff] %v7487_v47  ;;  %8131 = vst [vmem:[#allocation19_spill] sm:$0xff] %v7489_v54  ;;  %v7492_v0 = vadd.f32 %v2510_v24, %v7324_v51 }
 0x290   : > { %v7494_v44 = vpop.f32.mrf.mxu0  ;;  %v5535_v56 = vpop.f32.mrf.mxu1 }
 0x291   : > { %8132 = vst [vmem:[#allocation20_spill] sm:$0xff] %v7492_v0  ;;  %8133 = vst [vmem:[#allocation21_spill] sm:$0xff] %v7494_v44  ;;  %v7497_v3 = vadd.f32 %v5535_v56, %v7327_v50 }
 0x292   : > { %v7499_v8 = vpop.f32.mrf.mxu0  ;;  %v2520_v59 = vpop.f32.mrf.mxu1 }
 0x293   : > { %8134 = vst [vmem:[#allocation22_spill] sm:$0xff] %v7497_v3  ;;  %8135 = vst [vmem:[#allocation23_spill] sm:$0xff] %v7499_v8  ;;  %v7502_v48 = vadd.f32 %v2520_v59, %v7334_v63 }
 0x294   : > { %v7504_v15 = vpop.f32.mrf.mxu0  ;;  %v5538_v61 = vpop.f32.mrf.mxu1 }
 0x295   : > { %8136 = vst [vmem:[#allocation24_spill] sm:$0xff] %v7502_v48  ;;  %8137 = vst [vmem:[#allocation25_spill] sm:$0xff] %v7504_v15  ;;  %v7507_v20 = vadd.f32 %v5538_v61, %v7337_v40 }
 0x296   : > { %v7509_v51 = vpop.f32.mrf.mxu0  ;;  %v2530_v18 = vpop.f32.mrf.mxu1 }
 0x297   : > { %8138 = vst [vmem:[#allocation26_spill] sm:$0xff] %v7507_v20  ;;  %8139 = vst [vmem:[#allocation27_spill] sm:$0xff] %v7509_v51  ;;  %v7512_v2 = vadd.f32 %v2530_v18, %v7344_v39 }
 0x298   : > { %v7514_v50 = vpop.f32.mrf.mxu0  ;;  %v5541_v27 = vpop.f32.mrf.mxu1 }
 0x299   : > { %8140 = vst [vmem:[#allocation28_spill] sm:$0xff] %v7512_v2  ;;  %8141 = vst [vmem:[#allocation29_spill] sm:$0xff] %v7514_v50  ;;  %v7517_v43 = vadd.f32 %v5541_v27, %v7347_v17 }
 0x29a   : > { %v7519_v63 = vpop.f32.mrf.mxu0  ;;  %v2540_v35 = vpop.f32.mrf.mxu1 }
 0x29b   : > { %8142 = vst [vmem:[#allocation30_spill] sm:$0xff] %v7517_v43  ;;  %8143 = vst [vmem:[#allocation31_spill] sm:$0xff] %v7519_v63  ;;  %v7522_v6 = vadd.f32 %v2540_v35, %v7354_v19 }
 0x29c   : > { %v7524_v40 = vpop.f32.mrf.mxu0  ;;  %v5544_v24 = vpop.f32.mrf.mxu1 }
 0x29d   : > { %8144 = vst [vmem:[#allocation32_spill] sm:$0xff] %v7522_v6  ;;  %8145 = vst [vmem:[#allocation33_spill] sm:$0xff] %v7524_v40  ;;  %v7527_v56 = vadd.f32 %v5544_v24, %v7358_v45 }
 0x29e   : > { %v7529_v39 = vpop.f32.mrf.mxu0  ;;  %v2550_v59 = vpop.f32.mrf.mxu1 }
 0x29f   : > { %8146 = vst [vmem:[#allocation34_spill] sm:$0xff] %v7527_v56  ;;  %8147 = vst [vmem:[#allocation35_spill] sm:$0xff] %v7529_v39  ;;  %v7532_v61 = vadd.f32 %v2550_v59, %v7366_v53 }
 0x2a0   : > { %v7534_v17 = vpop.f32.mrf.mxu0  ;;  %v5547_v18 = vpop.f32.mrf.mxu1 }
 0x2a1   : > { %8148 = vst [vmem:[#allocation36_spill] sm:$0xff] %v7532_v61  ;;  %8149 = vst [vmem:[#allocation37_spill] sm:$0xff] %v7534_v17  ;;  %v7537_v27 = vadd.f32 %v5547_v18, %v7369_v16 }
 0x2a2   : > { %v7539_v19 = vpop.f32.mrf.mxu0  ;;  %v2560_v35 = vpop.f32.mrf.mxu1 }
 0x2a3   : > { %8150 = vst [vmem:[#allocation38_spill] sm:$0xff] %v7537_v27  ;;  %8151 = vst [vmem:[#allocation39_spill] sm:$0xff] %v7539_v19  ;;  %v7542_v6 = vadd.f32 %v2560_v35, %v7376_v5 }
 0x2a4   : > { %v7544_v45 = vpop.f32.mrf.mxu0  ;;  %v5550_v24 = vpop.f32.mrf.mxu1 }
 0x2a5   : > { %8152 = vst [vmem:[#allocation40_spill] sm:$0xff] %v7542_v6  ;;  %8153 = vst [vmem:[#allocation41_spill] sm:$0xff] %v7544_v45  ;;  %v7547_v56 = vadd.f32 %v5550_v24, %v7379_v49 }
 0x2a6   : > { %v7549_v53 = vpop.f32.mrf.mxu0  ;;  %v2570_v59 = vpop.f32.mrf.mxu1 }
 0x2a7   : > { %8154 = vst [vmem:[#allocation42_spill] sm:$0xff] %v7547_v56  ;;  %8155 = vst [vmem:[#allocation43_spill] sm:$0xff] %v7549_v53  ;;  %v7552_v61 = vadd.f32 %v2570_v59, %v7386_v46 }
 0x2a8   : > { %v7554_v16 = vpop.f32.mrf.mxu0  ;;  %v5553_v18 = vpop.f32.mrf.mxu1 }
 0x2a9   : > { %8156 = vst [vmem:[#allocation44_spill] sm:$0xff] %v7552_v61  ;;  %8157 = vst [vmem:[#allocation45_spill] sm:$0xff] %v7554_v16  ;;  %v7557_v27 = vadd.f32 %v5553_v18, %v7391_v37 }
 0x2aa   : > { %v7559_v5 = vpop.f32.mrf.mxu0  ;;  %v2580_v35 = vpop.f32.mrf.mxu1 }
 0x2ab   : > { %8158 = vst [vmem:[#allocation46_spill] sm:$0xff] %v7557_v27  ;;  %8159 = vst [vmem:[#allocation47_spill] sm:$0xff] %v7559_v5  ;;  %v7562_v6 = vadd.f32 %v2580_v35, %v7400_v38 }
 0x2ac   : > { %v7564_v49 = vpop.f32.mrf.mxu0  ;;  %v5668_v24 = vpop.f32.mrf.mxu1 }
 0x2ad   : > { %8160 = vst [vmem:[#allocation48_spill] sm:$0xff] %v7562_v6  ;;  %8161 = vst [vmem:[#allocation49_spill] sm:$0xff] %v7564_v49 }
 0x2ae   : > { %v7566_v56 = vpop.f32.mrf.mxu0  ;;  %v3043_v53 = vpop.f32.mrf.mxu1 }
 0x2af   : > { %8162 = vst [vmem:[#allocation50_spill] sm:$0xff] %v7566_v56 }
 0x2b0   : > { %v7568_v46 = vpop.f32.mrf.mxu0  ;;  %v5671_v59 = vpop.f32.mrf.mxu1 }
 0x2b1   : > { %8163 = vst [vmem:[#allocation51_spill] sm:$0xff] %v7568_v46 }
 0x2b2   : > { %v5748_v61 = vpop.f32.mrf.mxu0  ;;  %v3053_v16 = vpop.f32.mrf.mxu1 }
 0x2b4   : > { %v3349_v45 = vpop.f32.mrf.mxu0  ;;  %v7570_v37 = vpop.f32.mrf.mxu1 }
 0x2b6   : > { %v5751_v18 = vpop.f32.mrf.mxu0  ;;  %v7572_v27 = vpop.f32.mrf.mxu1 }
 0x2b8   : > { %v3359_v5 = vpop.f32.mrf.mxu0  ;;  %v7574_v38 = vpop.f32.mrf.mxu1 }
 0x2ba   : > { %v7576_v35 = vpop.f32.mrf.mxu0  ;;  %v7578_v6 = vpop.f32.mrf.mxu1 }
 0x2bc   : > { %v7580_v56 = vpop.f32.mrf.mxu1  ;;  %v7582_v49 = vpop.f32.mrf.mxu0 }
 0x2be   : > { %v7584_v46 = vpop.f32.mrf.mxu1  ;;  %v7588_v17 = vpop.f32.mrf.mxu0 }
 0x2c0   : > { %v7586_v19 = vpop.f32.mrf.mxu1  ;;  %v7594_v40 = vpop.f32.mrf.mxu0 }
 0x2c2   : > { %v7590_v39 = vpop.f32.mrf.mxu1  ;;  %v7600_v20 = vpop.f32.mrf.mxu0 }
 0x2c4   : > { %v7592_v43 = vpop.f32.mrf.mxu1  ;;  %v7606_v51 = vpop.f32.mrf.mxu0 }
 0x2c6   : > { %v7596_v2 = vpop.f32.mrf.mxu1  ;;  %v7612_v0 = vpop.f32.mrf.mxu0 }
 0x2c7   : > { %8164 = vst [vmem:[#allocation52_spill] sm:$0xff] %v7596_v2 }
 0x2c8   : > { %v7598_v63 = vpop.f32.mrf.mxu1  ;;  %v7618_v44 = vpop.f32.mrf.mxu0 }
 0x2c9   : > { %8165 = vst [vmem:[#allocation53_spill] sm:$0xff] %v7598_v63 }
 0x2ca   : > { %v7602_v50 = vpop.f32.mrf.mxu1 }
 0x2cb   : > { %8166 = vst [vmem:[#allocation54_spill] sm:$0xff] %v7602_v50  ;;  %v7624_v50 = vpop.f32.mrf.mxu0 }
 0x2cc   : > { %v7604_v48 = vpop.f32.mrf.mxu1  ;;  %8174 = vst [vmem:[#allocation62_spill] sm:$0xff] %v7624_v50 }
 0x2cd   : > { %8167 = vst [vmem:[#allocation55_spill] sm:$0xff] %v7604_v48 }
 0x2ce   : > { %v7608_v3 = vpop.f32.mrf.mxu1 }
 0x2cf   : > { %8168 = vst [vmem:[#allocation56_spill] sm:$0xff] %v7608_v3  ;;  %v7630_v3 = vpop.f32.mrf.mxu0 }
 0x2d0   : > { %v7610_v15 = vpop.f32.mrf.mxu1  ;;  %8177 = vst [vmem:[#allocation65_spill] sm:$0xff] %v7630_v3 }
 0x2d1   : > { %8169 = vst [vmem:[#allocation57_spill] sm:$0xff] %v7610_v15 }
 0x2d2   : > { %v7614_v8 = vpop.f32.mrf.mxu1 }
 0x2d3   : > { %8170 = vst [vmem:[#allocation58_spill] sm:$0xff] %v7614_v8  ;;  %v7636_v8 = vpop.f32.mrf.mxu0 }
 0x2d4   : > { %v7616_v47 = vpop.f32.mrf.mxu1  ;;  %8180 = vst [vmem:[#allocation68_spill] sm:$0xff] %v7636_v8 }
 0x2d5   : > { %8171 = vst [vmem:[#allocation59_spill] sm:$0xff] %v7616_v47 }
 0x2d6   : > { %v7620_v63 = vpop.f32.mrf.mxu1 }
 0x2d7   : > { %8172 = vst [vmem:[#allocation60_spill] sm:$0xff] %v7620_v63  ;;  %v7642_v63 = vpop.f32.mrf.mxu0 }
 0x2d8   : > { %v7622_v4 = vpop.f32.mrf.mxu1  ;;  %8183 = vst [vmem:[#allocation71_spill] sm:$0xff] %v7642_v63 }
 0x2d9   : > { %8173 = vst [vmem:[#allocation61_spill] sm:$0xff] %v7622_v4 }
 0x2da   : > { %v7626_v48 = vpop.f32.mrf.mxu1 }
 0x2db   : > { %8175 = vst [vmem:[#allocation63_spill] sm:$0xff] %v7626_v48  ;;  %v2896_v48 = vadd.f32 %v7405_v55, %v7389_v42  ;;  %v7661_v42 = vld [vmem:[%s8093_s6] ss:$0 sm:$0xff]  ;;  %v2897_v55 = vadd.f32 %v7426_v10, %v7407_v52  ;;  %v2899_v52 = vadd.f32 %v7440_v25, %v7421_v32 }
 0x2dc   : > { %v7628_v2 = vpop.f32.mrf.mxu1 }
 0x2dd   : > { %8176 = vst [vmem:[#allocation64_spill] sm:$0xff] %v7628_v2  ;;  %v3203_v3 = vadd.f32 %v5668_v24, %v2896_v48  ;;  %v2900_v24 = vadd.f32 %v7433_v62, %v7417_v34 }
 0x2de   : > { %v7632_v15 = vpop.f32.mrf.mxu1 }
 0x2df   : > { %8178 = vst [vmem:[#allocation66_spill] sm:$0xff] %v7632_v15  ;;  %v2895_v15 = vadd.f32 %v7412_v57, %v7393_v13  ;;  %v3207_v34 = vadd.f32 %v7570_v37, %v2900_v24  ;;  %v2901_v37 = vadd.f32 %v7451_v9, %v7435_v12 }
 0x2e0   : > { %v7634_v54 = vpop.f32.mrf.mxu1 }
 0x2e1   : > { %8179 = vst [vmem:[#allocation67_spill] sm:$0xff] %v7634_v54  ;;  %v7652_v54 = vpop.f32.mrf.mxu0  ;;  %v3202_v63 = vadd.f32 %v3043_v53, %v2895_v15 }
 0x2e2   : > { %v7638_v47 = vpop.f32.mrf.mxu1 }
 0x2e3   : > { %8181 = vst [vmem:[#allocation69_spill] sm:$0xff] %v7638_v47  ;;  %v3509_v47 = vadd.f32 %v5748_v61, %v3203_v3  ;;  %v3508_v13 = vadd.f32 %v3349_v45, %v3202_v63  ;;  %v3204_v3 = vadd.f32 %v3053_v16, %v2897_v55  ;;  %v7673_v61 = vld [vmem:[%s8094_s7] ss:$0 sm:$0xff]  ;;  %v3206_v63 = vadd.f32 %v7572_v27, %v2899_v52 }
 0x2e4   : > { %v7640_v36 = vpop.f32.mrf.mxu1 }
 0x2e5   : > { %8182 = vst [vmem:[#allocation70_spill] sm:$0xff] %v7640_v36  ;;  %v2898_v36 = vadd.f32 %v7419_v21, %v7403_v23 }
 0x2e6   : > { %v7644_v4 = vpop.f32.mrf.mxu1 }
 0x2e7   : > { %v3205_v57 = vadd.f32 %v5671_v59, %v2898_v36  ;;  %v3510_v36 = vadd.f32 %v3359_v5, %v3204_v3 }
 0x2e8   : > { %v7648_v2 = vpop.f32.mrf.mxu1 }
 0x2e9   : > { %v3511_v21 = vadd.f32 %v5751_v18, %v3205_v57  ;;  %v3513_v18 = vadd.f32 %v7576_v35, %v3207_v34  ;;  %v2904_v35 = vadd.f32 %v7458_v30, %v7445_v33 }
 0x2ea   : > { %v7654_v8 = vpop.f32.mrf.mxu1 }
 0x2eb   : > { %8184 = vst [vmem:[#allocation72_spill] sm:$0xff] %v7654_v8  ;;  %v7667_v8 = vpop.f32.mrf.mxu0  ;;  %v3211_v33 = vadd.f32 %v7580_v56, %v2904_v35 }
 0x2ec   : > { %v5828_v50 = vpop.f32.mrf.mxu1 }
 0x2ed   : > { %v3815_v48 = vadd.f32 %v5828_v50, %v3509_v47  ;;  %v2902_v50 = vadd.f32 %v7447_v22, %v7431_v26  ;;  %v7682_v45 = vpop.f32.mrf.mxu0  ;;  %v3512_v22 = vadd.f32 %v7582_v49, %v3206_v63  ;;  %v3517_v56 = vadd.f32 %v7600_v20, %v3211_v33 }
 0x2ee   : > { %v3655_v23 = vpop.f32.mrf.mxu1  ;;  %v2905_v63 = vadd.f32 %v7473_v58, %v7460_v1  ;;  %v2908_v20 = vadd.f32 %v7480_v29, %v7467_v28 }
 0x2ef   : > { %v3854_v15 = vmul.f32 %v7661_v42, %v3815_v48  ;;  %v3814_v53 = vadd.f32 %v3655_v23, %v3508_v13  ;;  %v3209_v55 = vadd.f32 %v7574_v38, %v2902_v50  ;;  %v3208_v48 = vadd.f32 %v7578_v6, %v2901_v37  ;;  %v7696_v24 = vpop.f32.mrf.mxu0 }
 0x2f0   : > { %v5831_v10 = vpop.f32.mrf.mxu1  ;;  %v3215_v28 = vadd.f32 %v7592_v43, %v2908_v20  ;;  %v8188_v43 = vld [vmem:[#allocation62_spill] sm:$0xff] }
 0x2f1   : > { %v3853_v62 = vmul.f32 %v7661_v42, %v3814_v53  ;;  %v3817_v47 = vadd.f32 %v5831_v10, %v3511_v21  ;;  %v3893_v16 = vadd.f32 %v7673_v61, %v3854_v15  ;;  %v3515_v9 = vadd.f32 %v7588_v17, %v3209_v55  ;;  %v7710_v34 = vpop.f32.mrf.mxu0 }
 0x2f2   : > { %v3665_v59 = vpop.f32.mrf.mxu1  ;;  %v2903_v15 = vadd.f32 %v7462_v60, %v7449_v7  ;;  %v3514_v6 = vadd.f32 %v7594_v40, %v3208_v48  ;;  %v2906_v17 = vadd.f32 %v7469_v11, %v7456_v41  ;;  %v8187_v48 = vld [vmem:[#allocation52_spill] sm:$0xff] }
 0x2f3   : > { %v3856_v32 = vmul.f32 %v7661_v42, %v3817_v47  ;;  %v3816_v25 = vadd.f32 %v3665_v59, %v3510_v36  ;;  %v3892_v5 = vadd.f32 %v7673_v61, %v3853_v62  ;;  %v3925_v23 = vmax.f32 %v3893_v16, 0.0 }
 0x2f4   : > { %v5834_v26 = vpop.f32.mrf.mxu1  ;;  %v3210_v36 = vadd.f32 %v7584_v46, %v2903_v15  ;;  %v3213_v41 = vadd.f32 %v7586_v19, %v2906_v17  ;;  %v8190_v15 = vld [vmem:[#allocation21_spill] sm:$0xff] }
 0x2f5   : > { %v3855_v27 = vmul.f32 %v7661_v42, %v3816_v25  ;;  %v3819_v13 = vadd.f32 %v5834_v26, %v3513_v18  ;;  %v3924_v57 = vmax.f32 %v3892_v5, 0.0  ;;  %v3895_v21 = vadd.f32 %v7673_v61, %v3856_v32  ;;  %v7724_v25 = vpop.f32.mrf.mxu0 }
 0x2f6   : > { %v3675_v12 = vpop.f32.mrf.mxu1  ;;  %v3516_v46 = vadd.f32 %v7606_v51, %v3210_v36  ;;  %v3212_v32 = vadd.f32 %v7590_v39, %v2905_v63  ;;  %v3519_v19 = vadd.f32 %v7612_v0, %v3213_v41  ;;  %v2907_v26 = vadd.f32 %v7484_v14, %v7471_v31  ;;  %v8185_v0 = vld [vmem:[#allocation16_spill] sm:$0xff] }
 0x2f7   : > { %v3858_v38 = vmul.f32 %v7661_v42, %v3819_v13  ;;  %v3818_v49 = vadd.f32 %v3675_v12, %v3512_v22  ;;  %5906 = vmatprep.mubr.f32.mxu0 %v3924_v57  ;;  %v3894_v3 = vadd.f32 %v7673_v61, %v3855_v27  ;;  %v3927_v62 = vmax.f32 %v3895_v21, 0.0  ;;  %v8186_v57 = vld [vmem:[#allocation19_spill] sm:$0xff]  ;;  %v7738_v21 = vpop.f32.mrf.mxu0 }
 0x2f8   : > { %v5837_v30 = vpop.f32.mrf.mxu1  ;;  %5907 = vmatmul.mubr.f32.vlgmr.msra.gmra.mxu0 %v3925_v23  ;;  %v3518_v39 = vadd.f32 %v7618_v44, %v3212_v32  ;;  %v2910_v35 = vadd.f32 %v8186_v57, %v8185_v0  ;;  %v3214_v23 = vadd.f32 %v8187_v48, %v2907_v26  ;;  %v8197_v32 = vld [vmem:[#allocation20_spill] sm:$0xff] }
 0x2f9   : > { %v3857_v53 = vmul.f32 %v7661_v42, %v3818_v49  ;;  %v3821_v52 = vadd.f32 %v5837_v30, %v3515_v9  ;;  %v3926_v10 = vmax.f32 %v3894_v3, 0.0  ;;  %v3897_v7 = vadd.f32 %v7673_v61, %v3858_v38  ;;  %v8189_v3 = vld [vmem:[#allocation17_spill] sm:$0xff] }
 0x2fa   : > { %v3685_v60 = vpop.f32.mrf.mxu1  ;;  %v3521_v9 = vadd.f32 %v8188_v43, %v3215_v28  ;;  %v2909_v33 = vadd.f32 %v8190_v15, %v8189_v3  ;;  %v8191_v30 = vld [vmem:[#allocation53_spill] sm:$0xff] }
 0x2fb   : > { %v3860_v47 = vmul.f32 %v7661_v42, %v3821_v52  ;;  %v3820_v40 = vadd.f32 %v3685_v60, %v3514_v6  ;;  %5909 = vmatprep.mubr.f32.mxu0 %v3926_v10  ;;  %v3896_v50 = vadd.f32 %v7673_v61, %v3857_v53  ;;  %v3929_v5 = vmax.f32 %v3897_v7, 0.0  ;;  %v8192_v52 = vld [vmem:[#allocation65_spill] sm:$0xff]  ;;  %v8193_v7 = vld [vmem:[#allocation18_spill] sm:$0xff]  ;;  %v8194_v60 = vld [vmem:[#allocation23_spill] sm:$0xff] }
 0x2fc   : > { %v5840_v11 = vpop.f32.mrf.mxu1  ;;  %5910 = vmatmul.mubr.f32.gmra.mxu0 %v3927_v62  ;;  %v3217_v6 = vadd.f32 %v8191_v30, %v2910_v35  ;;  %v3520_v10 = vadd.f32 %v8192_v52, %v3214_v23  ;;  %v8208_v52 = vld [vmem:[#allocation31_spill] sm:$0xff] }
 0x2fd   : > { %v3859_v16 = vmul.f32 %v7661_v42, %v3820_v40  ;;  %v3823_v59 = vadd.f32 %v5840_v11, %v3517_v56  ;;  %v3928_v18 = vmax.f32 %v3896_v50, 0.0  ;;  %v3899_v1 = vadd.f32 %v7673_v61, %v3860_v47  ;;  %v8195_v47 = vld [vmem:[#allocation54_spill] sm:$0xff]  ;;  %v7752_v50 = vpop.f32.mrf.mxu0 }
 0x2fe   : > { %v3695_v58 = vpop.f32.mrf.mxu1  ;;  %v2912_v56 = vadd.f32 %v8194_v60, %v8193_v7  ;;  %v3216_v40 = vadd.f32 %v8195_v47, %v2909_v33 }
 0x2ff   : > { %v3862_v37 = vmul.f32 %v7661_v42, %v3823_v59  ;;  %v3822_v51 = vadd.f32 %v3695_v58, %v3516_v46  ;;  %5912 = vmatprep.mubr.f32.mxu0 %v3928_v18  ;;  %v3898_v55 = vadd.f32 %v7673_v61, %v3859_v16  ;;  %v3931_v12 = vmax.f32 %v3899_v1, 0.0  ;;  %v8196_v46 = vld [vmem:[#allocation68_spill] sm:$0xff]  ;;  %v8199_v58 = vld [vmem:[#allocation55_spill] sm:$0xff]  ;;  %v7766_v57 = vpop.f32.mrf.mxu0 }
 0x300   : > { %v5843_v29 = vpop.f32.mrf.mxu1  ;;  %5913 = vmatmul.mubr.f32.gmra.mxu0 %v3929_v5  ;;  %v3523_v16 = vadd.f32 %v8196_v46, %v3217_v6  ;;  %v8198_v5 = vld [vmem:[#allocation25_spill] sm:$0xff] }
 0x301   : > { %v3861_v22 = vmul.f32 %v7661_v42, %v3822_v51  ;;  %v3825_v27 = vadd.f32 %v5843_v29, %v3519_v19  ;;  %v3930_v13 = vmax.f32 %v3898_v55, 0.0  ;;  %v3901_v31 = vadd.f32 %v7673_v61, %v3862_v37  ;;  %v8200_v51 = vld [vmem:[#allocation71_spill] sm:$0xff] }
 0x302   : > { %v3705_v14 = vpop.f32.mrf.mxu1  ;;  %v2911_v1 = vadd.f32 %v8198_v5, %v8197_v32  ;;  %v3219_v19 = vadd.f32 %v8199_v58, %v2912_v56  ;;  %v3522_v55 = vadd.f32 %v8200_v51, %v3216_v40  ;;  %v8214_v58 = vld [vmem:[#allocation35_spill] sm:$0xff] }
 0x303   : > { %v3864_v38 = vmul.f32 %v7661_v42, %v3825_v27  ;;  %v3824_v44 = vadd.f32 %v3705_v14, %v3518_v39  ;;  %5915 = vmatprep.mubr.f32.mxu0 %v3930_v13  ;;  %v3900_v49 = vadd.f32 %v7673_v61, %v3861_v22  ;;  %v3933_v63 = vmax.f32 %v3901_v31, 0.0  ;;  %v8201_v39 = vld [vmem:[#allocation22_spill] sm:$0xff]  ;;  %v8202_v22 = vld [vmem:[#allocation27_spill] sm:$0xff]  ;;  %v8203_v13 = vld [vmem:[#allocation56_spill] sm:$0xff] }
 0x304   : > { %v5846_v53 = vpop.f32.mrf.mxu1  ;;  %5916 = vmatmul.mubr.f32.gmra.mxu0 %v3931_v12  ;;  %v2914_v27 = vadd.f32 %v8202_v22, %v8201_v39  ;;  %v3218_v0 = vadd.f32 %v8203_v13, %v2911_v1  ;;  %v3525_v12 = vadd.f32 %v7652_v54, %v3219_v19  ;;  %v8207_v54 = vld [vmem:[#allocation26_spill] sm:$0xff]  ;;  %v8216_v13 = vld [vmem:[#allocation32_spill] sm:$0xff] }
 0x305   : > { %v3863_v17 = vmul.f32 %v7661_v42, %v3824_v44  ;;  %v3827_v36 = vadd.f32 %v5846_v53, %v3521_v9  ;;  %v3932_v62 = vmax.f32 %v3900_v49, 0.0  ;;  %v3903_v41 = vadd.f32 %v7673_v61, %v3864_v38  ;;  %v8204_v9 = vld [vmem:[#allocation24_spill] sm:$0xff]  ;;  %v8205_v38 = vld [vmem:[#allocation29_spill] sm:$0xff] }
 0x306   : > { %v3715_v11 = vpop.f32.mrf.mxu1  ;;  %v2913_v44 = vadd.f32 %v8205_v38, %v8204_v9  ;;  %v8206_v49 = vld [vmem:[#allocation57_spill] sm:$0xff]  ;;  %v3524_v33 = vadd.f32 %v7667_v8, %v3218_v0  ;;  %v8220_v38 = vld [vmem:[#allocation39_spill] sm:$0xff] }
 0x307   : > { %v3866_v59 = vmul.f32 %v7661_v42, %v3827_v36  ;;  %v3826_v18 = vadd.f32 %v3715_v11, %v3520_v10  ;;  %5918 = vmatprep.mubr.f32.mxu0 %v3932_v62  ;;  %v3902_v20 = vadd.f32 %v7673_v61, %v3863_v17  ;;  %v3935_v35 = vmax.f32 %v3903_v41, 0.0  ;;  %v8209_v17 = vld [vmem:[#allocation58_spill] sm:$0xff]  ;;  %v7780_v62 = vpop.f32.mrf.mxu0  ;;  %v8210_v41 = vld [vmem:[#allocation28_spill] sm:$0xff]  ;;  %v8211_v11 = vld [vmem:[#allocation33_spill] sm:$0xff] }
 0x308   : > { %v5849_v37 = vpop.f32.mrf.mxu1  ;;  %5919 = vmatmul.mubr.f32.gmra.mxu0 %v3933_v63  ;;  %v3221_v3 = vadd.f32 %v8206_v49, %v2914_v27  ;;  %v2916_v10 = vadd.f32 %v8208_v52, %v8207_v54  ;;  %v3220_v36 = vadd.f32 %v8209_v17, %v2913_v44  ;;  %v2915_v46 = vadd.f32 %v8211_v11, %v8210_v41  ;;  %v8217_v0 = vld [vmem:[#allocation37_spill] sm:$0xff]  ;;  %v8221_v49 = vld [vmem:[#allocation63_spill] sm:$0xff] }
 0x309   : > { %v3865_v26 = vmul.f32 %v7661_v42, %v3826_v18  ;;  %v3829_v28 = vadd.f32 %v5849_v37, %v3523_v16  ;;  %v3934_v29 = vmax.f32 %v3902_v20, 0.0  ;;  %v3905_v48 = vadd.f32 %v7673_v61, %v3866_v59  ;;  %v8212_v16 = vld [vmem:[#allocation59_spill] sm:$0xff]  ;;  %v8215_v37 = vld [vmem:[#allocation60_spill] sm:$0xff]  ;;  %v8223_v17 = vld [vmem:[#allocation41_spill] sm:$0xff] }
 0x30a   : > { %v3725_v23 = vpop.f32.mrf.mxu1  ;;  %v3527_v47 = vadd.f32 %v7682_v45, %v3221_v3  ;;  %v3223_v59 = vadd.f32 %v8212_v16, %v2916_v10  ;;  %v3526_v20 = vadd.f32 %v7696_v24, %v3220_v36  ;;  %v8213_v45 = vld [vmem:[#allocation30_spill] sm:$0xff]  ;;  %v3222_v51 = vadd.f32 %v8215_v37, %v2915_v46  ;;  %v8222_v10 = vld [vmem:[#allocation36_spill] sm:$0xff]  ;;  %v8226_v41 = vld [vmem:[#allocation43_spill] sm:$0xff] }
 0x30b   : > { %v3868_v31 = vmul.f32 %v7661_v42, %v3829_v28  ;;  %v3828_v14 = vadd.f32 %v3725_v23, %v3522_v55  ;;  %5921 = vmatprep.mubr.f32.mxu0 %v3934_v29  ;;  %v3904_v43 = vadd.f32 %v7673_v61, %v3865_v26  ;;  %v3937_v7 = vmax.f32 %v3905_v48, 0.0  ;;  %v5787_v55 = vpop.f32.mrf.mxu0  ;;  %v8218_v48 = vld [vmem:[#allocation61_spill] sm:$0xff]  ;;  %v8227_v46 = vld [vmem:[#allocation66_spill] sm:$0xff] }
 0x30c   : > { %v5852_v15 = vpop.f32.mrf.mxu1  ;;  %5922 = vmatmul.mubr.f32.gmra.mxu0 %v3935_v35  ;;  %v2918_v19 = vadd.f32 %v8214_v58, %v8213_v45  ;;  %v3529_v39 = vadd.f32 %v7710_v34, %v3223_v59  ;;  %v2917_v35 = vadd.f32 %v8217_v0, %v8216_v13  ;;  %v8219_v34 = vld [vmem:[#allocation34_spill] sm:$0xff]  ;;  %v2919_v36 = vadd.f32 %v8223_v17, %v8222_v10  ;;  %v8228_v58 = vld [vmem:[#allocation40_spill] sm:$0xff]  ;;  %v8233_v0 = vld [vmem:[#allocation69_spill] sm:$0xff] }
 0x30d   : > { %v3867_v30 = vmul.f32 %v7661_v42, %v3828_v14  ;;  %v3831_v6 = vadd.f32 %v5852_v15, %v3525_v12  ;;  %v3936_v53 = vmax.f32 %v3904_v43, 0.0  ;;  %v3907_v60 = vadd.f32 %v7673_v61, %v3868_v31  ;;  %v3479_v15 = vpop.f32.mrf.mxu0 }
 0x30e   : > { %v3735_v56 = vpop.f32.mrf.mxu1  ;;  %v3225_v23 = vadd.f32 %v8218_v48, %v2918_v19  ;;  %v3528_v31 = vadd.f32 %v7724_v25, %v3222_v51  ;;  %v2920_v44 = vadd.f32 %v8220_v38, %v8219_v34  ;;  %v3224_v3 = vadd.f32 %v8221_v49, %v2917_v35  ;;  %v8229_v19 = vld [vmem:[#allocation45_spill] sm:$0xff]  ;;  %v8230_v51 = vld [vmem:[#allocation67_spill] sm:$0xff]  ;;  %v8234_v34 = vld [vmem:[#allocation44_spill] sm:$0xff] }
 0x30f   : > { %v3870_v40 = vmul.f32 %v7661_v42, %v3831_v6  ;;  %v3830_v8 = vadd.f32 %v3735_v56, %v3524_v33  ;;  %5924 = vmatprep.mubr.f32.mxu0 %v3936_v53  ;;  %v3906_v63 = vadd.f32 %v7673_v61, %v3867_v30  ;;  %v3939_v26 = vmax.f32 %v3907_v60, 0.0  ;;  %v5790_v59 = vpop.f32.mrf.mxu0  ;;  %v8235_v38 = vld [vmem:[#allocation49_spill] sm:$0xff]  ;;  %v8236_v49 = vld [vmem:[#allocation70_spill] sm:$0xff] }
 0x310   : > { %v5855_v18 = vpop.f32.mrf.mxu1  ;;  %5925 = vmatmul.mubr.f32.gmra.mxu0 %v3937_v7  ;;  %v3531_v53 = vadd.f32 %v7738_v21, %v3225_v23  ;;  %v8224_v7 = vld [vmem:[#allocation64_spill] sm:$0xff]  ;;  %v8225_v21 = vld [vmem:[#allocation38_spill] sm:$0xff]  ;;  %v3226_v16 = vadd.f32 %v8227_v46, %v2919_v36  ;;  %v2921_v37 = vadd.f32 %v8229_v19, %v8228_v58 }
 0x311   : > { %v3869_v32 = vmul.f32 %v7661_v42, %v3830_v8  ;;  %v3833_v5 = vadd.f32 %v5855_v18, %v3527_v47  ;;  %v3938_v1 = vmax.f32 %v3906_v63, 0.0  ;;  %v3909_v28 = vadd.f32 %v7673_v61, %v3870_v40  ;;  %v3489_v48 = vpop.f32.mrf.mxu0 }
 0x312   : > { %v3745_v29 = vpop.f32.mrf.mxu1  ;;  %v3227_v60 = vadd.f32 %v8224_v7, %v2920_v44  ;;  %v3530_v47 = vadd.f32 %v7752_v50, %v3224_v3  ;;  %v2922_v11 = vadd.f32 %v8226_v41, %v8225_v21  ;;  %v3228_v35 = vadd.f32 %v8233_v0, %v2921_v37 }
 0x313   : > { %v3872_v22 = vmul.f32 %v7661_v42, %v3833_v5  ;;  %v3832_v27 = vadd.f32 %v3745_v29, %v3526_v20  ;;  %5927 = vmatprep.mubr.f32.mxu0 %v3938_v1  ;;  %v3908_v24 = vadd.f32 %v7673_v61, %v3869_v32  ;;  %v3941_v33 = vmax.f32 %v3909_v28, 0.0  ;;  %v5793_v17 = vpop.f32.mrf.mxu0 }
 0x314   : > { %v5858_v12 = vpop.f32.mrf.mxu1  ;;  %5928 = vmatmul.mubr.f32.gmra.mxu0 %v3939_v26  ;;  %v3533_v5 = vadd.f32 %v7766_v57, %v3227_v60  ;;  %v3229_v26 = vadd.f32 %v8230_v51, %v2922_v11  ;;  %v3532_v29 = vadd.f32 %v7780_v62, %v3226_v16  ;;  %v8231_v57 = vld [vmem:[#allocation42_spill] sm:$0xff]  ;;  %v2923_v44 = vadd.f32 %v8235_v38, %v8234_v34 }
 0x315   : > { %v3871_v14 = vmul.f32 %v7661_v42, %v3832_v27  ;;  %v3835_v43 = vadd.f32 %v5858_v12, %v3529_v39  ;;  %v3940_v9 = vmax.f32 %v3908_v24, 0.0  ;;  %v3911_v30 = vadd.f32 %v7673_v61, %v3872_v22  ;;  %v8232_v24 = vld [vmem:[#allocation47_spill] sm:$0xff] }
 0x316   : > { %v3755_v6 = vpop.f32.mrf.mxu1  ;;  %v2924_v13 = vadd.f32 %v8232_v24, %v8231_v57  ;;  %v3230_v10 = vadd.f32 %v7644_v4, %v2923_v44 }
 0x317   : > { %v3874_v54 = vmul.f32 %v7661_v42, %v3835_v43  ;;  %v3834_v52 = vadd.f32 %v3755_v6, %v3528_v31  ;;  %5930 = vmatprep.mubr.f32.mxu0 %v3940_v9  ;;  %v3910_v25 = vadd.f32 %v7673_v61, %v3871_v14  ;;  %v3943_v18 = vmax.f32 %v3911_v30, 0.0 }
 0x318   : > { %v5861_v56 = vpop.f32.mrf.mxu1  ;;  %5931 = vmatmul.mubr.f32.gmra.mxu0 %v3941_v33  ;;  %v3535_v14 = vadd.f32 %v5787_v55, %v3229_v26  ;;  %v3231_v3 = vadd.f32 %v8236_v49, %v2924_v13  ;;  %v3534_v30 = vadd.f32 %v3479_v15, %v3228_v35  ;;  %v8238_v55 = vld [vmem:[#allocation50_spill] sm:$0xff]  ;;  %v3536_v4 = vadd.f32 %v3489_v48, %v3230_v10  ;;  %v6038_v49 = vld [vmem:[%s6405_s12 + $0x8] sm:$0xff] }
 0x319   : > { %v3873_v40 = vmul.f32 %v7661_v42, %v3834_v52  ;;  %v3837_v8 = vadd.f32 %v5861_v56, %v3531_v53  ;;  %v3942_v63 = vmax.f32 %v3910_v25, 0.0  ;;  %v3913_v20 = vadd.f32 %v7673_v61, %v3874_v54  ;;  %v8237_v52 = vld [vmem:[#allocation46_spill] sm:$0xff] }
 0x31a   : > { %v3765_v32 = vpop.f32.mrf.mxu1  ;;  %v2926_v25 = vadd.f32 %v8238_v55, %v8237_v52  ;;  %v3537_v56 = vadd.f32 %v5790_v59, %v3231_v3 }
 0x31b   : > { %v3876_v1 = vmul.f32 %v7661_v42, %v3837_v8  ;;  %v3836_v45 = vadd.f32 %v3765_v32, %v3530_v47  ;;  %5933 = vmatprep.mubr.f32.mxu0 %v3942_v63  ;;  %v3912_v50 = vadd.f32 %v7673_v61, %v3873_v40  ;;  %v3945_v23 = vmax.f32 %v3913_v20, 0.0  ;;  %v8239_v8 = vld [vmem:[#allocation48_spill] sm:$0xff]  ;;  %v8240_v63 = vld [vmem:[#allocation51_spill] sm:$0xff]  ;;  %v3499_v32 = vpop.f32.mrf.mxu0 }
 0x31c   : > { %v5864_v28 = vpop.f32.mrf.mxu1  ;;  %5934 = vmatmul.mubr.f32.gmra.mxu0 %v3943_v18  ;;  %v2925_v21 = vadd.f32 %v8240_v63, %v8239_v8  ;;  %v3233_v41 = vadd.f32 %v7648_v2, %v2926_v25  ;;  %v8241_v20 = vld [vmem:[#allocation72_spill] sm:$0xff] }
 0x31d   : > { %v3875_v39 = vmul.f32 %v7661_v42, %v3836_v45  ;;  %v3839_v22 = vadd.f32 %v5864_v28, %v3533_v5  ;;  %v3944_v27 = vmax.f32 %v3912_v50, 0.0  ;;  %v3915_v12 = vadd.f32 %v7673_v61, %v3876_v1 }
 0x31e   : > { %v3775_v31 = vpop.f32.mrf.mxu1  ;;  %v3232_v59 = vadd.f32 %v8241_v20, %v2925_v21  ;;  %v3539_v50 = vadd.f32 %v5793_v17, %v3233_v41 }
 0x31f   : > { %v3878_v43 = vmul.f32 %v7661_v42, %v3839_v22  ;;  %v3838_v9 = vadd.f32 %v3775_v31, %v3532_v29  ;;  %5936 = vmatprep.mubr.f32.mxu0 %v3944_v27  ;;  %v3914_v62 = vadd.f32 %v7673_v61, %v3875_v39  ;;  %v3947_v36 = vmax.f32 %v3915_v12, 0.0 }
 0x320   : > { %v5867_v33 = vpop.f32.mrf.mxu1  ;;  %5937 = vmatmul.mubr.f32.gmra.mxu0 %v3945_v23  ;;  %v3538_v51 = vadd.f32 %v3499_v32, %v3232_v59  ;;  %v6043_v32 = vld [vmem:[%s6405_s12 + $0x20] sm:$0xff] }
 0x321   : > { %v3877_v6 = vmul.f32 %v7661_v42, %v3838_v9  ;;  %v3841_v53 = vadd.f32 %v5867_v33, %v3535_v14  ;;  %v3946_v54 = vmax.f32 %v3914_v62, 0.0  ;;  %v3917_v7 = vadd.f32 %v7673_v61, %v3878_v43  ;;  %v7861_v43 = vld [vmem:[%s8242_s15] ss:$0 sm:$0xff] }
 0x322   : > { %v3785_v60 = vpop.f32.mrf.mxu1  ;;  %v7866_v9 = vld [vmem:[%s8243_s28] ss:$0 sm:$0xff] }
 0x323   : > { %v3880_v47 = vmul.f32 %v7661_v42, %v3841_v53  ;;  %v3840_v40 = vadd.f32 %v3785_v60, %v3534_v30  ;;  %5939 = vmatprep.mubr.f32.mxu0 %v3946_v54  ;;  %v3916_v15 = vadd.f32 %v7673_v61, %v3877_v6  ;;  %v3949_v5 = vmax.f32 %v3917_v7, 0.0  ;;  %v6039_v54 = vld [vmem:[%s6405_s12] sm:$0xff] }
 0x324   : > { %v5870_v11 = vpop.f32.mrf.mxu1  ;;  %5940 = vmatmul.mubr.f32.gmra.mxu0 %v3947_v36  ;;  %v6040_v36 = vld [vmem:[%s6405_s12 + $0x18] sm:$0xff] }
 0x325   : > { %v3879_v46 = vmul.f32 %v7661_v42, %v3840_v40  ;;  %v3843_v16 = vadd.f32 %v5870_v11, %v3537_v56  ;;  %v3948_v18 = vmax.f32 %v3916_v15, 0.0  ;;  %v3919_v1 = vadd.f32 %v7673_v61, %v3880_v47  ;;  %v6041_v15 = vld [vmem:[%s6405_s12 + $0x10] sm:$0xff] }
 0x326   : > { %v3795_v45 = vpop.f32.mrf.mxu1 }
 0x327   : > { %v3882_v58 = vmul.f32 %v7661_v42, %v3843_v16  ;;  %v3842_v19 = vadd.f32 %v3795_v45, %v3536_v4  ;;  %5942 = vmatprep.mubr.f32.mxu0 %v3948_v18  ;;  %v3918_v2 = vadd.f32 %v7673_v61, %v3879_v46  ;;  %v3951_v39 = vmax.f32 %v3919_v1, 0.0  ;;  %v6042_v4 = vld [vmem:[%s6405_s12 + $0x28] sm:$0xff] }
 0x328   : > { %v5873_v37 = vpop.f32.mrf.mxu1  ;;  %5943 = vmatmul.mubr.f32.gmra.mxu0 %v3949_v5 }
 0x329   : > { %v3881_v26 = vmul.f32 %v7661_v42, %v3842_v19  ;;  %v3845_v28 = vadd.f32 %v5873_v37, %v3539_v50  ;;  %v3950_v29 = vmax.f32 %v3918_v2, 0.0  ;;  %v3921_v22 = vadd.f32 %v7673_v61, %v3882_v58  ;;  %v6044_v19 = vld [vmem:[%s6405_s12 + $0x38] sm:$0xff] }
 0x32a   : > { %v3805_v27 = vpop.f32.mrf.mxu1 }
 0x32b   : > { %v3884_v57 = vmul.f32 %v7661_v42, %v3845_v28  ;;  %v3844_v24 = vadd.f32 %v3805_v27, %v3538_v51  ;;  %5945 = vmatprep.mubr.f32.mxu0 %v3950_v29  ;;  %v3920_v13 = vadd.f32 %v7673_v61, %v3881_v26  ;;  %v3953_v48 = vmax.f32 %v3921_v22, 0.0  ;;  %v6045_v29 = vld [vmem:[%s6405_s12 + $0x30] sm:$0xff] }
 0x32c   : > { %5946 = vmatmul.mubr.f32.gmra.mxu0 %v3951_v39 }
 0x32d   : > { %v3883_v0 = vmul.f32 %v7661_v42, %v3844_v24  ;;  %v3952_v35 = vmax.f32 %v3920_v13, 0.0  ;;  %v3923_v23 = vadd.f32 %v7673_v61, %v3884_v57  ;;  %v6046_v13 = vld [vmem:[%s6405_s12 + $0x48] sm:$0xff] }
 0x32f   : > { %5948 = vmatprep.mubr.f32.mxu0 %v3952_v35  ;;  %v3922_v12 = vadd.f32 %v7673_v61, %v3883_v0  ;;  %v3955_v14 = vmax.f32 %v3923_v23, 0.0 }
 0x330   : > { %5949 = vmatmul.mubr.f32.gmra.mxu0 %v3953_v48 }
 0x331   : > { %v3954_v31 = vmax.f32 %v3922_v12, 0.0 }
 0x333   : > { %5951 = vmatprep.mubr.f32.mxu0 %v3954_v31  ;;  %v6047_v31 = vld [vmem:[%s6405_s12 + $0x40] sm:$0xff] }
 0x334   : > { %5952 = vmatmul.mubr.f32.gmra.mxu0 %v3955_v14 }
 0x3b8   : > { %v5908_v42 = vpop.f32.mrf.mxu0 }
 0x3b9   : > { %v4205_v62 = vmul.f32 %v5908_v42, %v7861_v43 }
 0x3ba   : > { %v4038_v61 = vpop.f32.mrf.mxu0 }
 0x3bb   : > { %v4244_v34 = vadd.f32 %v7866_v9, %v4205_v62  ;;  %v4204_v38 = vmul.f32 %v7861_v43, %v4038_v61 }
 0x3bc   : > { %v5911_v44 = vpop.f32.mrf.mxu0 }
 0x3bd   : > { %v4276_v3 = vadd.f32 %v6038_v49, %v4244_v34  ;;  %v4243_v33 = vadd.f32 %v7866_v9, %v4204_v38  ;;  %v4207_v30 = vmul.f32 %v5911_v44, %v7861_v43  ;;  %v6048_v38 = vld [vmem:[%s6405_s12 + $0x58] sm:$0xff] }
 0x3be   : > { %v4048_v6 = vpop.f32.mrf.mxu0 }
 0x3bf   : > { %v4308_v53 = vmax.f32 %v4276_v3, 0.0  ;;  %v4275_v52 = vadd.f32 %v6039_v54, %v4243_v33  ;;  %v4246_v55 = vadd.f32 %v7866_v9, %v4207_v30  ;;  %v4206_v25 = vmul.f32 %v7861_v43, %v4048_v6  ;;  %v6049_v6 = vld [vmem:[%s6405_s12 + $0x50] sm:$0xff] }
 0x3c0   : > { %v5914_v10 = vpop.f32.mrf.mxu0 }
 0x3c1   : > { %4340 = vst.msk [vmem:[%s7879_s23 + $0x8] sm:$0xff] %vm545_vm0, %v4308_v53  ;;  %v4307_v17 = vmax.f32 %v4275_v52, 0.0  ;;  %v4278_v7 = vadd.f32 %v6040_v36, %v4246_v55  ;;  %v4245_v60 = vadd.f32 %v7866_v9, %v4206_v25  ;;  %v4209_v56 = vmul.f32 %v5914_v10, %v7861_v43  ;;  %v6050_v10 = vld [vmem:[%s6405_s12 + $0x68] sm:$0xff] }
 0x3c2   : > { %v4058_v47 = vpop.f32.mrf.mxu0 }
 0x3c3   : > { %4339 = vst.msk [vmem:[%s7879_s23] sm:$0xff] %vm545_vm0, %v4307_v17  ;;  %v4310_v40 = vmax.f32 %v4278_v7, 0.0  ;;  %v4277_v8 = vadd.f32 %v6041_v15, %v4245_v60  ;;  %v4248_v63 = vadd.f32 %v7866_v9, %v4209_v56  ;;  %v4208_v21 = vmul.f32 %v7861_v43, %v4058_v47  ;;  %v6051_v47 = vld [vmem:[%s6405_s12 + $0x60] sm:$0xff] }
 0x3c4   : > { %v5917_v41 = vpop.f32.mrf.mxu0 }
 0x3c5   : > { %4342 = vst.msk [vmem:[%s7879_s23 + $0x18] sm:$0xff] %vm545_vm0, %v4310_v40  ;;  %v4309_v11 = vmax.f32 %v4277_v8, 0.0  ;;  %v4280_v46 = vadd.f32 %v6042_v4, %v4248_v63  ;;  %v4247_v16 = vadd.f32 %v7866_v9, %v4208_v21  ;;  %v4211_v18 = vmul.f32 %v5917_v41, %v7861_v43  ;;  %v6052_v41 = vld [vmem:[%s6405_s12 + $0x78] sm:$0xff] }
 0x3c6   : > { %v4068_v20 = vpop.f32.mrf.mxu0 }
 0x3c7   : > { %4341 = vst.msk [vmem:[%s7879_s23 + $0x10] sm:$0xff] %vm545_vm0, %v4309_v11  ;;  %v4312_v59 = vmax.f32 %v4280_v46, 0.0  ;;  %v4279_v5 = vadd.f32 %v6043_v32, %v4247_v16  ;;  %v4250_v1 = vadd.f32 %v7866_v9, %v4211_v18  ;;  %v4210_v45 = vmul.f32 %v7861_v43, %v4068_v20  ;;  %v6053_v20 = vld [vmem:[%s6405_s12 + $0x70] sm:$0xff] }
 0x3c8   : > { %v5920_v50 = vpop.f32.mrf.mxu0 }
 0x3c9   : > { %4344 = vst.msk [vmem:[%s7879_s23 + $0x28] sm:$0xff] %vm545_vm0, %v4312_v59  ;;  %v4311_v58 = vmax.f32 %v4279_v5, 0.0  ;;  %v4282_v2 = vadd.f32 %v6044_v19, %v4250_v1  ;;  %v4249_v37 = vadd.f32 %v7866_v9, %v4210_v45  ;;  %v4213_v51 = vmul.f32 %v5920_v50, %v7861_v43  ;;  %v6054_v50 = vld [vmem:[%s6405_s12 + $0x88] sm:$0xff] }
 0x3ca   : > { %v4078_v26 = vpop.f32.mrf.mxu0 }
 0x3cb   : > { %4343 = vst.msk [vmem:[%s7879_s23 + $0x20] sm:$0xff] %vm545_vm0, %v4311_v58  ;;  %v4314_v28 = vmax.f32 %v4282_v2, 0.0  ;;  %v4281_v39 = vadd.f32 %v6045_v29, %v4249_v37  ;;  %v4252_v22 = vadd.f32 %v7866_v9, %v4213_v51  ;;  %v4212_v27 = vmul.f32 %v7861_v43, %v4078_v26  ;;  %v6055_v26 = vld [vmem:[%s6405_s12 + $0x80] sm:$0xff] }
 0x3cc   : > { %v5923_v57 = vpop.f32.mrf.mxu0 }
 0x3cd   : > { %4346 = vst.msk [vmem:[%s7879_s23 + $0x38] sm:$0xff] %vm545_vm0, %v4314_v28  ;;  %v4313_v24 = vmax.f32 %v4281_v39, 0.0  ;;  %v4284_v0 = vadd.f32 %v6046_v13, %v4252_v22  ;;  %v4251_v35 = vadd.f32 %v7866_v9, %v4212_v27  ;;  %v4215_v48 = vmul.f32 %v5923_v57, %v7861_v43  ;;  %v6056_v57 = vld [vmem:[%s6405_s12 + $0x98] sm:$0xff] }
 0x3ce   : > { %v4088_v23 = vpop.f32.mrf.mxu0 }
 0x3cf   : > { %4345 = vst.msk [vmem:[%s7879_s23 + $0x30] sm:$0xff] %vm545_vm0, %v4313_v24  ;;  %v4316_v12 = vmax.f32 %v4284_v0, 0.0  ;;  %v4283_v14 = vadd.f32 %v6047_v31, %v4251_v35  ;;  %v4254_v42 = vadd.f32 %v7866_v9, %v4215_v48  ;;  %v4214_v62 = vmul.f32 %v7861_v43, %v4088_v23  ;;  %v6057_v23 = vld [vmem:[%s6405_s12 + $0x90] sm:$0xff] }
 0x3d0   : > { %v5926_v61 = vpop.f32.mrf.mxu0 }
 0x3d1   : > { %4348 = vst.msk [vmem:[%s7879_s23 + $0x48] sm:$0xff] %vm545_vm0, %v4316_v12  ;;  %v4315_v34 = vmax.f32 %v4283_v14, 0.0  ;;  %v4286_v44 = vadd.f32 %v6048_v38, %v4254_v42  ;;  %v4253_v49 = vadd.f32 %v7866_v9, %v4214_v62  ;;  %v4217_v3 = vmul.f32 %v5926_v61, %v7861_v43  ;;  %v6058_v61 = vld [vmem:[%s6405_s12 + $0xa8] sm:$0xff] }
 0x3d2   : > { %v4098_v33 = vpop.f32.mrf.mxu0 }
 0x3d3   : > { %4347 = vst.msk [vmem:[%s7879_s23 + $0x40] sm:$0xff] %vm545_vm0, %v4315_v34  ;;  %v4318_v30 = vmax.f32 %v4286_v44, 0.0  ;;  %v4285_v53 = vadd.f32 %v6049_v6, %v4253_v49  ;;  %v4256_v54 = vadd.f32 %v7866_v9, %v4217_v3  ;;  %v4216_v52 = vmul.f32 %v7861_v43, %v4098_v33  ;;  %v6059_v33 = vld [vmem:[%s6405_s12 + $0xa0] sm:$0xff] }
 0x3d4   : > { %v5929_v55 = vpop.f32.mrf.mxu0 }
 0x3d5   : > { %4350 = vst.msk [vmem:[%s7879_s23 + $0x58] sm:$0xff] %vm545_vm0, %v4318_v30  ;;  %v4317_v25 = vmax.f32 %v4285_v53, 0.0  ;;  %v4288_v17 = vadd.f32 %v6050_v10, %v4256_v54  ;;  %v4255_v36 = vadd.f32 %v7866_v9, %v4216_v52  ;;  %v4219_v7 = vmul.f32 %v5929_v55, %v7861_v43  ;;  %v6060_v55 = vld [vmem:[%s6405_s12 + $0xb8] sm:$0xff] }
 0x3d6   : > { %v4108_v60 = vpop.f32.mrf.mxu0 }
 0x3d7   : > { %4349 = vst.msk [vmem:[%s7879_s23 + $0x50] sm:$0xff] %vm545_vm0, %v4317_v25  ;;  %v4320_v56 = vmax.f32 %v4288_v17, 0.0  ;;  %v4287_v40 = vadd.f32 %v6051_v47, %v4255_v36  ;;  %v4258_v15 = vadd.f32 %v7866_v9, %v4219_v7  ;;  %v4218_v8 = vmul.f32 %v7861_v43, %v4108_v60  ;;  %v6061_v60 = vld [vmem:[%s6405_s12 + $0xb0] sm:$0xff] }
 0x3d8   : > { %v5932_v63 = vpop.f32.mrf.mxu0 }
 0x3d9   : > { %4352 = vst.msk [vmem:[%s7879_s23 + $0x68] sm:$0xff] %vm545_vm0, %v4320_v56  ;;  %v4319_v21 = vmax.f32 %v4287_v40, 0.0  ;;  %v4290_v11 = vadd.f32 %v6052_v41, %v4258_v15  ;;  %v4257_v4 = vadd.f32 %v7866_v9, %v4218_v8  ;;  %v4221_v46 = vmul.f32 %v5932_v63, %v7861_v43  ;;  %v6062_v63 = vld [vmem:[%s6405_s12 + $0xc8] sm:$0xff] }
 0x3da   : > { %v4118_v16 = vpop.f32.mrf.mxu0 }
 0x3db   : > { %4351 = vst.msk [vmem:[%s7879_s23 + $0x60] sm:$0xff] %vm545_vm0, %v4319_v21  ;;  %v4322_v18 = vmax.f32 %v4290_v11, 0.0  ;;  %v4289_v59 = vadd.f32 %v6053_v20, %v4257_v4  ;;  %v4260_v32 = vadd.f32 %v7866_v9, %v4221_v46  ;;  %v4220_v5 = vmul.f32 %v7861_v43, %v4118_v16  ;;  %v6063_v16 = vld [vmem:[%s6405_s12 + $0xc0] sm:$0xff] }
 0x3dc   : > { %v5935_v1 = vpop.f32.mrf.mxu0 }
 0x3dd   : > { %4354 = vst.msk [vmem:[%s7879_s23 + $0x78] sm:$0xff] %vm545_vm0, %v4322_v18  ;;  %v4321_v45 = vmax.f32 %v4289_v59, 0.0  ;;  %v4292_v58 = vadd.f32 %v6054_v50, %v4260_v32  ;;  %v4259_v19 = vadd.f32 %v7866_v9, %v4220_v5  ;;  %v4223_v2 = vmul.f32 %v5935_v1, %v7861_v43  ;;  %v6064_v1 = vld [vmem:[%s6405_s12 + $0xd8] sm:$0xff] }
 0x3de   : > { %v4128_v37 = vpop.f32.mrf.mxu0 }
 0x3df   : > { %4353 = vst.msk [vmem:[%s7879_s23 + $0x70] sm:$0xff] %vm545_vm0, %v4321_v45  ;;  %v4324_v51 = vmax.f32 %v4292_v58, 0.0  ;;  %v4291_v28 = vadd.f32 %v6055_v26, %v4259_v19  ;;  %v4262_v29 = vadd.f32 %v7866_v9, %v4223_v2  ;;  %v4222_v39 = vmul.f32 %v7861_v43, %v4128_v37  ;;  %v6065_v37 = vld [vmem:[%s6405_s12 + $0xd0] sm:$0xff] }
 0x3e0   : > { %v5938_v22 = vpop.f32.mrf.mxu0 }
 0x3e1   : > { %4356 = vst.msk [vmem:[%s7879_s23 + $0x88] sm:$0xff] %vm545_vm0, %v4324_v51  ;;  %v4323_v27 = vmax.f32 %v4291_v28, 0.0  ;;  %v4294_v24 = vadd.f32 %v6056_v57, %v4262_v29  ;;  %v4261_v13 = vadd.f32 %v7866_v9, %v4222_v39  ;;  %v4225_v0 = vmul.f32 %v5938_v22, %v7861_v43  ;;  %v6066_v22 = vld [vmem:[%s6405_s12 + $0xe8] sm:$0xff] }
 0x3e2   : > { %v4138_v35 = vpop.f32.mrf.mxu0 }
 0x3e3   : > { %4355 = vst.msk [vmem:[%s7879_s23 + $0x80] sm:$0xff] %vm545_vm0, %v4323_v27  ;;  %v4326_v48 = vmax.f32 %v4294_v24, 0.0  ;;  %v4293_v12 = vadd.f32 %v6057_v23, %v4261_v13  ;;  %v4264_v31 = vadd.f32 %v7866_v9, %v4225_v0  ;;  %v4224_v14 = vmul.f32 %v7861_v43, %v4138_v35  ;;  %v6067_v35 = vld [vmem:[%s6405_s12 + $0xe0] sm:$0xff] }
 0x3e4   : > { %v5941_v42 = vpop.f32.mrf.mxu0 }
 0x3e5   : > { %4358 = vst.msk [vmem:[%s7879_s23 + $0x98] sm:$0xff] %vm545_vm0, %v4326_v48  ;;  %v4325_v62 = vmax.f32 %v4293_v12, 0.0  ;;  %v4296_v34 = vadd.f32 %v6058_v61, %v4264_v31  ;;  %v4263_v38 = vadd.f32 %v7866_v9, %v4224_v14  ;;  %v4227_v44 = vmul.f32 %v5941_v42, %v7861_v43  ;;  %v6068_v14 = vld [vmem:[%s6405_s12 + $0xf8] sm:$0xff] }
 0x3e6   : > { %v4148_v49 = vpop.f32.mrf.mxu0 }
 0x3e7   : > { %4357 = vst.msk [vmem:[%s7879_s23 + $0x90] sm:$0xff] %vm545_vm0, %v4325_v62  ;;  %v4328_v3 = vmax.f32 %v4296_v34, 0.0  ;;  %v4295_v30 = vadd.f32 %v6059_v33, %v4263_v38  ;;  %v4266_v6 = vadd.f32 %v7866_v9, %v4227_v44  ;;  %v4226_v53 = vmul.f32 %v7861_v43, %v4148_v49  ;;  %v6069_v34 = vld [vmem:[%s6405_s12 + $0xf0] sm:$0xff]  ;;  %s6215_s12 = smov [#allocation8]  }
 0x3e8   : > { %v5944_v54 = vpop.f32.mrf.mxu0  ;;  %s6128_s24 = sshll.u32 %s6215_s12, 4  ;;  %s6129_s24 = int_to_ptr.vmem [resolvable:$false] %s6128_s24 }
 0x3e9   : > { %4360 = vst.msk [vmem:[%s7879_s23 + $0xa8] sm:$0xff] %vm545_vm0, %v4328_v3  ;;  %v4327_v52 = vmax.f32 %v4295_v30, 0.0  ;;  %v4298_v25 = vadd.f32 %v6060_v55, %v4266_v6  ;;  %v4265_v10 = vadd.f32 %v7866_v9, %v4226_v53  ;;  %v4229_v17 = vmul.f32 %v5944_v54, %v7861_v43  ;;  %s6130_s26 = scalar_lea.vmem %s6129_s24, 8192  ;;  %p6131_p2 = scmp.lt.s32.totalorder %s8035_s9, %s6129_s24 }
 0x3ea   : > { %v4158_v36 = vpop.f32.mrf.mxu0  ;;  %p6132_p3 = scmp.lt.s32.totalorder %s6130_s26, %s6124_s27 }
 0x3eb   : > { %4359 = vst.msk [vmem:[%s7879_s23 + $0xa0] sm:$0xff] %vm545_vm0, %v4327_v52  ;;  %v4330_v7 = vmax.f32 %v4298_v25, 0.0  ;;  %v4297_v56 = vadd.f32 %v6061_v60, %v4265_v10  ;;  %v4268_v47 = vadd.f32 %v7866_v9, %v4229_v17  ;;  %v4228_v40 = vmul.f32 %v7861_v43, %v4158_v36 }
 0x3ec   : > { %v5947_v15 = vpop.f32.mrf.mxu0  ;;  %p6133_p5 = por %p6132_p3, %p6131_p2 }
 0x3ed   : > { %4362 = vst.msk [vmem:[%s7879_s23 + $0xb8] sm:$0xff] %vm545_vm0, %v4330_v7  ;;  %v4329_v8 = vmax.f32 %v4297_v56, 0.0  ;;  %v4300_v21 = vadd.f32 %v6062_v63, %v4268_v47  ;;  %v4267_v41 = vadd.f32 %v7866_v9, %v4228_v40  ;;  %v4231_v11 = vmul.f32 %v5947_v15, %v7861_v43 }
 0x3ee   : > { %v4168_v4 = vpop.f32.mrf.mxu0  ;;  %p6134_p7 = pnand %p6133_p5, %p6127_p0 }
 0x3ef   : > { %4361 = vst.msk [vmem:[%s7879_s23 + $0xb0] sm:$0xff] %vm545_vm0, %v4329_v8  ;;  %v4332_v46 = vmax.f32 %v4300_v21, 0.0  ;;  %v4299_v18 = vadd.f32 %v6063_v16, %v4267_v41  ;;  %v4270_v20 = vadd.f32 %v7866_v9, %v4231_v11  ;;  %v4230_v59 = vmul.f32 %v7861_v43, %v4168_v4 }
 0x3f0   : > { %v5950_v32 = vpop.f32.mrf.mxu0 }
 0x3f1   : > { %4364 = vst.msk [vmem:[%s7879_s23 + $0xc8] sm:$0xff] %vm545_vm0, %v4332_v46  ;;  %v4331_v5 = vmax.f32 %v4299_v18, 0.0  ;;  %v4302_v45 = vadd.f32 %v6064_v1, %v4270_v20  ;;  %v4269_v50 = vadd.f32 %v7866_v9, %v4230_v59  ;;  %v4233_v58 = vmul.f32 %v5950_v32, %v7861_v43 }
 0x3f2   : > { %v4178_v19 = vpop.f32.mrf.mxu0 }
 0x3f3   : > { %4363 = vst.msk [vmem:[%s7879_s23 + $0xc0] sm:$0xff] %vm545_vm0, %v4331_v5  ;;  %v4334_v2 = vmax.f32 %v4302_v45, 0.0  ;;  %v4301_v51 = vadd.f32 %v6065_v37, %v4269_v50  ;;  %v4272_v26 = vadd.f32 %v7866_v9, %v4233_v58  ;;  %v4232_v28 = vmul.f32 %v7861_v43, %v4178_v19 }
 0x3f4   : > { %v5953_v29 = vpop.f32.mrf.mxu0 }
 0x3f5   : > { %4366 = vst.msk [vmem:[%s7879_s23 + $0xd8] sm:$0xff] %vm545_vm0, %v4334_v2  ;;  %v4333_v39 = vmax.f32 %v4301_v51, 0.0  ;;  %v4304_v27 = vadd.f32 %v6066_v22, %v4272_v26  ;;  %v4271_v57 = vadd.f32 %v7866_v9, %v4232_v28  ;;  %v4235_v24 = vmul.f32 %v5953_v29, %v7861_v43 }
 0x3f6   : > { %v4188_v13 = vpop.f32.mrf.mxu0 }
 0x3f7   : > { %4365 = vst.msk [vmem:[%s7879_s23 + $0xd0] sm:$0xff] %vm545_vm0, %v4333_v39  ;;  %v4336_v0 = vmax.f32 %v4304_v27, 0.0  ;;  %v4303_v48 = vadd.f32 %v6067_v35, %v4271_v57  ;;  %v4274_v23 = vadd.f32 %v7866_v9, %v4235_v24  ;;  %v4234_v12 = vmul.f32 %v7861_v43, %v4188_v13 }
 0x3f9   : > { %4368 = vst.msk [vmem:[%s7879_s23 + $0xe8] sm:$0xff] %vm545_vm0, %v4336_v0  ;;  %v4335_v31 = vmax.f32 %v4303_v48, 0.0  ;;  %v4306_v42 = vadd.f32 %v6068_v14, %v4274_v23  ;;  %v4273_v62 = vadd.f32 %v7866_v9, %v4234_v12 }
 0x3fb   : > { %4367 = vst.msk [vmem:[%s7879_s23 + $0xe0] sm:$0xff] %vm545_vm0, %v4335_v31  ;;  %v4338_v61 = vmax.f32 %v4306_v42, 0.0  ;;  %v4305_v38 = vadd.f32 %v6069_v34, %v4273_v62 }
 0x3fd   : > { %4370 = vst.msk [vmem:[%s7879_s23 + $0xf8] sm:$0xff] %vm545_vm0, %v4338_v61  ;;  %v4337_v43 = vmax.f32 %v4305_v38, 0.0 }
 0x3ff   : > { %4369 = vst.msk [vmem:[%s7879_s23 + $0xf0] sm:$0xff] %vm545_vm0, %v4337_v43 }
 0x400   : > { %6137 = shalt.err (!%p6134_p7)
}
 0x401   : > { %s6138_s17 = scalar_lea.hbm %s8033_s25, 4096  ;;  %s6142_s10 = scalar_lea.hbm %s8244_s14, 8192 }
 0x402   : > { %p6139_p4 = scmp.ne.s32.totalorder %s8033_s25, %s6138_s17  ;;  %p6143_p11 = scmp.lt.s32.totalorder %s8033_s25, %s8244_s14 }
 0x403   : > { %p6144_p10 = scmp.lt.s32.totalorder %s6142_s10, %s6138_s17 }
 0x404   : > { %p6140_p6 = pnand %p6139_p4, %p6368_p13 }
 0x405   : > { %p6145_p1 = por %p6144_p10, %p6143_p11 }
 0x406   : > { %p6141_p9 = pneg %p6140_p6 }
 0x408   : > { %p6146_p8 = pnand %p6145_p1, %p6141_p9 }
 0x40a   : > { %6149 = shalt.err (!%p6146_p8)
}
 0x40b   : > { %s6216_s21 = smov 128   ;;  %s6217_s11 = smov 8  }
 0x40c   : > { %5964 = dma.vmem_to_hbm [thread:$0]  (%p6368_p13), %s8035_s9, 4096, %s8033_s25, %s4372_s20, %s6216_s21, %s6216_s21, %s6217_s11  }
 0x40d PF: > { %s8245_s29 = sld [smem:[#allocation12_spill]]  ;;  %p8248_p0 = scmp.ge.s32.totalorder %s6208_s22, 2 }
 0x40e   : > { %s8246_s27 = sld [smem:[#allocation14_spill]] }
 0x413   : > { %s4403_s12 = sand.u32 1, %s8245_s29  }
 0x414   : > { %p8247_p12 = scmp.ne.s32.totalorder %s8246_s27, 0  ;;  %s4404_s24 = scalar_lea.sflag [#allocation5], %s4403_s12 }
 0x416   : > { %p5975_p2 = pnand %p8248_p0, %p8247_p12 }
 0x418   : > { %p5976_p3 = pneg %p5975_p2 }
 0x41a   : > { %6183 = dma.done.wait (%p5976_p3), %s4404_s24, 4096  }
 0x41b   : > { %6185 = vsyncadd (%p5976_p3), %s4404_s24, 4294963200  ;;  %s28_s22 = sadd.s32 1, %s6208_s22   ;;  %s8249_s20 = sld [smem:[#allocation13_spill]] }
 0x41c   : > { %p25_p5 = scmp.ge.s32.totalorder %s28_s22, 4   ;;  %s8250_s21 = sld [smem:[#allocation15_spill]] }
 0x41d   : > { %s8251_s17 = smov %s6192_s18  ;;  %s8252_s18 = smov %s6196_s19 }
 0x41e   : > { %s8253_s19 = smov %s6377_s30  ;;  %27 = sbr.rel (!%p25_p5) target bundleno = 12 (0xc), region = 127 }
 0x423   :  { %4409 = vsyncpa [#allocation4], 1 }
 0x424   :  { %4411 = vsyncpa [#allocation4 + $0x1], 1 }
 0x425   :  { %4412 = vsyncpa [#allocation7], 1 }
 0x426   :  { %4413 = vsyncpa [#allocation5], 1 }
 0x427   :  { %4415 = vsyncpa [#allocation5 + $0x1], 1 }

</bundles_post_ra>
